<compile_context>
chip_gen: v7x
topology: tpu7x:2x2x1
jax: 0.10.0
libtpu: 0.0.40
codegen_flags: <defaults>
</compile_context>

<pallas_src>
import random

import jax
import jax.numpy as jnp
from jax.experimental import pallas as pl
from jax.experimental.pallas import tpu as pltpu


def _round_up(x, m):
    return ((x + m - 1) // m) * m


def _block_bytes(tk, d, itemsize):
    # Conservative padded-block estimate (sublane 8 / lane 128, >=4B elems).
    return _round_up(tk, 8) * _round_up(d, 128) * max(itemsize, 4)


def _pick_tk(K, D, itemsize, vmem_budget_bytes):
    """Rows gathered per grid step (multiple of 8)."""
    row_bytes = max(D * itemsize, 1)
    # ~512 KiB of kept rows in flight per pipeline slot, <=64 outstanding row
    # DMAs per slot, >=8 rows (sublane granularity).
    tk = max(8, min(64, (512 * 1024) // row_bytes))
    tk = min(tk, _round_up(K, 8))
    # Keep >=4 token-chunk steps per image (when K allows) so the cross-step
    # row prefetch has a previous chunk to overlap with.
    while tk > 8 and pl.cdiv(K, tk) < 4:
        tk //= 2
    tk = _round_up(tk, 8)
    # Honest VMEM accounting: 2 pipelined out blocks + 2 gather slots + slack.
    while tk > 8 and 5 * _block_bytes(tk, D, itemsize) > vmem_budget_bytes:
        tk = _round_up(max(tk // 2, 8), 8)
    return tk


def _gather_rows_kernel(ids_ref, x_hbm, out_ref, buf_ref, sem_ref):
    """Gather TK kept token rows for one (image, token-chunk) grid step.

    ids_ref: SMEM int32 [N, K_pad]   (scalar-prefetched keep indices)
    x_hbm:   ANY (HBM)  [N, L, D]    (full features, never streamed)
    out_ref: VMEM       [TK, D]      (output block for (b, kb))
    buf_ref: VMEM       [2, TK, D]   (double-buffered gather destination)
    sem_ref: DMA sems   [2]          (one shared semaphore per slot)
    """
    b = pl.program_id(0)
    kb = pl.program_id(1)
    num_kb = pl.num_programs(1)
    tk = out_ref.shape[0]
    slot = kb % 2

    def issue(kb_idx, slot_idx):
        base = kb_idx * tk
        for j in range(tk):
            row = ids_ref[b, base + j]
            pltpu.make_async_copy(
                x_hbm.at[b, pl.ds(row, 1), :],
                buf_ref.at[slot_idx, pl.ds(j, 1), :],
                sem_ref.at[slot_idx],
            ).start()

    # Prime the pipeline for the first chunk of this image.
    @pl.when(kb == 0)
    def _():
        issue(0, 0)

    # Prefetch next chunk's rows before waiting on the current ones.
    @pl.when(kb + 1 < num_kb)
    def _():
        issue(kb + 1, 1 - slot)

    # Wait for all tk row copies of the current slot.  All copies of a slot
    # share one DMA semaphore and have identical sizes, so tk waits consume
    # exactly the tk completions.
    for j in range(tk):
        pltpu.make_async_copy(
            x_hbm.at[b, pl.ds(0, 1), :],
            buf_ref.at[slot, pl.ds(j, 1), :],
            sem_ref.at[slot],
        ).wait()

    out_ref[...] = buf_ref[slot]


def gather_tokens_pallas(x, ids_keep, *, vmem_budget_bytes=32 * 1024 * 1024):
    """x: [N, L, D]; ids_keep: [N, K] int -> [N, K, D] via kept-rows DMA gather."""
    N, L, D = x.shape
    K = ids_keep.shape[1]
    itemsize = jnp.dtype(x.dtype).itemsize

    tk = _pick_tk(K, D, itemsize, vmem_budget_bytes)
    k_pad = pl.cdiv(K, tk) * tk
    num_kb = k_pad // tk

    ids = ids_keep.astype(jnp.int32)
    if k_pad != K:
        # Padded slots read row 0 (always in range) and are sliced off below.
        ids = jnp.pad(ids, ((0, 0), (0, k_pad - K)))

    vmem_limit = min(
        max(4 * 1024 * 1024, 5 * _block_bytes(tk, D, itemsize) + (2 << 20)),
        48 * 1024 * 1024,
    )

    out = pl.pallas_call(
        _gather_rows_kernel,
        out_shape=jax.ShapeDtypeStruct((N, k_pad, D), x.dtype),
        grid_spec=pltpu.PrefetchScalarGridSpec(
            num_scalar_prefetch=1,
            grid=(N, num_kb),
            in_specs=[pl.BlockSpec(memory_space=pl.ANY)],       # x stays in HBM
            out_specs=pl.BlockSpec((None, tk, D), lambda b, kb, ids: (b, kb, 0)),
            scratch_shapes=[
                pltpu.VMEM((2, tk, D), x.dtype),
                pltpu.SemaphoreType.DMA((2,)),
            ],
        ),
        compiler_params=pltpu.CompilerParams(
            # Images are independent -> shard the batch axis across both
            # TensorCores on v7x; token chunks run sequentially per image so
            # the cross-step row prefetch chain is valid.
            dimension_semantics=("parallel", "arbitrary"),
            vmem_limit_bytes=vmem_limit,
        ),
    )(ids, x)

    return out[:, :K] if k_pad != K else out


def gather_tokens(x, ids_keep):
    """Dispatch: tiny problems go to XLA's native gather (kernel launch and
    pipeline-fill overhead dominate there); everything else uses the Pallas
    kept-rows DMA gather."""
    N, L, D = x.shape
    if N * L * D * jnp.dtype(x.dtype).itemsize <= 128 * 1024:
        return jnp.take_along_axis(x, ids_keep[..., None].astype(jnp.int32), axis=1)
    return gather_tokens_pallas(x, ids_keep)


class MaskedDrop:
    """JAX/Pallas port of the PyTorch MaskedDrop resampler (forward pass)."""

    def __init__(self, mode="fixed", skip_percentage=0.0, ratio=0.5,
                 ratio_upper=0.5, ratio_lower=0.25):
        self.mode = mode
        self.skip_percentage = skip_percentage
        self.ratio = ratio
        self.ratio_upper = ratio_upper
        self.ratio_lower = ratio_lower
        self.training = True  # no parameters; behaves like nn.Module.training

    def random_masking(self, x, len_keep, key):
        """x: [N, L, D]. Returns (x_masked [N, len_keep, D], mask [N, L] f32, ids_restore)."""
        N, L, D = x.shape
        # PyTorch uses torch.randn noise; any iid noise induces the same
        # uniform permutation distribution, so this is statistically faithful.
        noise = jax.random.normal(key, (N, L), dtype=jnp.float32)
        ids_shuffle = jnp.argsort(noise, axis=1)
        ids_restore = jnp.argsort(ids_shuffle, axis=1)
        ids_keep = ids_shuffle[:, :len_keep].astype(jnp.int32)
        # Hot path: kept-rows gather done by the Pallas kernel.
        x_masked = gather_tokens(x, ids_keep)
        mask = jnp.ones((N, L), dtype=jnp.float32).at[:, :len_keep].set(0.0)
        mask = jnp.take_along_axis(mask, ids_restore, axis=1)
        return x_masked, mask, ids_restore

    def __call__(self, image_features, key):
        if not self.training:
            return image_features
        # Host-side python RNG branch, exactly like the PyTorch module.
        if self.skip_percentage > random.random():
            return image_features

        N, L, D = image_features.shape
        if self.mode == "fixed":
            num_keep = int(L * self.ratio)
            return self.random_masking(image_features, num_keep, key)[0]
        elif self.mode == "range":
            # Per-image variable keep count (python RNG, like PyTorch) ->
            # pad to K_max, run ONE batched gather, slice per image.
            keeps = [
                max(int(L * random.uniform(self.ratio_lower, self.ratio_upper)), 1)
                for _ in range(N)
            ]
            k_max = max(keeps)
            noise = jax.random.normal(key, (N, L), dtype=jnp.float32)
            ids_keep = jnp.argsort(noise, axis=1)[:, :k_max].astype(jnp.int32)
            x_masked = gather_tokens(image_features, ids_keep)
            return [x_masked[i, :keeps[i]] for i in range(N)]
        elif self.mode == "cls_only":
            return image_features[:, 0:1]
        else:
            raise ValueError(f"Unexpected masked drop mode: {self.mode}")


if __name__ == "__main__":
    random.seed(0)
    key = jax.random.PRNGKey(0)
    k_data, k_noise = jax.random.split(key)

    # Small shapes consistent with the module (vision tokens x hidden); D a
    # multiple of 128 so output blocks are lane-dense, L large enough that the
    # Pallas path (not the tiny-shape fallback) is exercised.
    N, L, D = 2, 256, 128
    image_features = jax.random.normal(k_data, (N, L, D), dtype=jnp.float32)

    module = MaskedDrop(mode="fixed", skip_percentage=0.0, ratio=0.5)
    out = jax.block_until_ready(module(image_features, k_noise))
    num_keep = int(L * 0.5)
    assert out.shape == (N, num_keep, D), out.shape

    # Correctness check of the Pallas gather against a pure-JAX reference,
    # reproducing the same noise / argsort as random_masking.
    noise = jax.random.normal(k_noise, (N, L), dtype=jnp.float32)
    ids_full = jnp.argsort(noise, axis=1).astype(jnp.int32)
    ids_keep = ids_full[:, :num_keep]
    ref = jnp.take_along_axis(image_features, ids_keep[..., None], axis=1)
    kern = jax.block_until_ready(gather_tokens_pallas(image_features, ids_keep))
    assert jnp.array_equal(kern, ref), "Pallas gather mismatch vs reference"
    assert jnp.array_equal(out, ref), "Module output mismatch vs reference"

    # Ragged K (not a multiple of the per-step chunk) exercises the padding path.
    ids_k40 = ids_full[:, :40]
    ref40 = jnp.take_along_axis(image_features, ids_k40[..., None], axis=1)
    kern40 = jax.block_until_ready(gather_tokens_pallas(image_features, ids_k40))
    assert jnp.array_equal(kern40, ref40), "ragged-K gather mismatch"

    # bf16 path (pure data movement; halves HBM traffic in production).
    x_bf16 = image_features.astype(jnp.bfloat16)
    ref_bf16 = jnp.take_along_axis(x_bf16, ids_keep[..., None], axis=1)
    kern_bf16 = jax.block_until_ready(gather_tokens_pallas(x_bf16, ids_keep))
    assert jnp.array_equal(kern_bf16, ref_bf16), "bf16 gather mismatch"

    # 'range' mode: one batched kernel call, ragged list output.
    rng_mod = MaskedDrop(mode="range", ratio_lower=0.25, ratio_upper=0.5)
    rng_out = rng_mod(image_features, k_noise)
    assert isinstance(rng_out, list) and len(rng_out) == N
    full_ref = jnp.take_along_axis(image_features, ids_full[..., None], axis=1)
    for i, o in enumerate(rng_out):
        o = jax.block_until_ready(o)
        ki = o.shape[0]
        assert o.ndim == 2 and o.shape[1] == D and 1 <= ki <= L
        assert jnp.array_equal(o, full_ref[i, :ki]), "range-mode gather mismatch"

    # cls_only mode sanity check (pure slicing, no kernel needed).
    cls_out = MaskedDrop(mode="cls_only")(image_features, k_noise)
    assert cls_out.shape == (N, 1, D)

    print("KERNEL_OK")
</pallas_src>

<mosaic_0001>
module attributes {stable_mosaic.version = 11 : i64} {
  func.func @_gather_rows_kernel(%arg0: i32, %arg1: i32, %arg2: memref<2x128xi32, #tpu.memory_space<smem>>, %arg3: memref<2x256x128xf32, #tpu.memory_space<any>>, %arg4: memref<1x32x128xf32, #tpu.memory_space<vmem>>, %arg5: memref<2x32x128xf32, #tpu.memory_space<vmem>>, %arg6: memref<2x!tpu.dma_semaphore, #tpu.memory_space<semaphore_mem>>) attributes {dimension_semantics = [#tpu.dimension_semantics<parallel>, #tpu.dimension_semantics<arbitrary>], iteration_bounds = array<i64: 2, 4>, scalar_prefetch = 1 : i64, scratch_operands = 2 : i64, tpu.core_type = #tpu.core_type<tc>, window_params = [{}, {transform_indices = @transform_1, window_bounds = array<i64: 1, 32, 128>}]} {
    %c2_i32 = arith.constant 2 : i32
    %c0_i32 = arith.constant 0 : i32
    %0 = arith.cmpi eq, %c2_i32, %c0_i32 : i32
    %c1_i32 = arith.constant 1 : i32
    %1 = arith.select %0, %c1_i32, %c2_i32 : i32
    %2 = arith.remsi %arg1, %1 : i32
    %c0_i32_0 = arith.constant 0 : i32
    %3 = arith.cmpi ne, %2, %c0_i32_0 : i32
    %c0_i32_1 = arith.constant 0 : i32
    %4 = arith.cmpi slt, %2, %c0_i32_1 : i32
    %c0_i32_2 = arith.constant 0 : i32
    %5 = arith.cmpi slt, %1, %c0_i32_2 : i32
    %6 = arith.xori %4, %5 : i1
    %7 = arith.andi %6, %3 : i1
    %8 = arith.addi %2, %1 : i32
    %9 = arith.select %7, %8, %2 : i32
    %c0_i32_3 = arith.constant 0 : i32
    %10 = arith.cmpi eq, %arg1, %c0_i32_3 : i32
    %11 = arith.extui %10 : i1 to i32
    %c0_i32_4 = arith.constant 0 : i32
    %12 = arith.cmpi ne, %11, %c0_i32_4 : i32
    scf.if %12 {
      %215 = arith.index_cast %arg0 : i32 to index
      %c0_111 = arith.constant 0 : index
      %216 = memref.load %arg2[%215, %c0_111] : memref<2x128xi32, #tpu.memory_space<smem>>
      %c0_i32_112 = arith.constant 0 : i32
      %c0_i32_113 = arith.constant 0 : i32
      %c0_i32_114 = arith.constant 0 : i32
      %217 = tpu.memref_slice %arg3[%arg0, %216, %c0_i32_114] : memref<2x256x128xf32, #tpu.memory_space<any>> -> memref<1x1x128xf32, #tpu.memory_space<any>>
      %218 = tpu.memref_squeeze %217 : memref<1x1x128xf32, #tpu.memory_space<any>> -> memref<1x128xf32, #tpu.memory_space<any>>
      %c0_i32_115 = arith.constant 0 : i32
      %c0_i32_116 = arith.constant 0 : i32
      %219 = tpu.memref_slice %arg5[%c0_i32_112, %c0_i32_115, %c0_i32_116] : memref<2x32x128xf32, #tpu.memory_space<vmem>> -> memref<1x1x128xf32, #tpu.memory_space<vmem>>
      %220 = tpu.memref_squeeze %219 : memref<1x1x128xf32, #tpu.memory_space<vmem>> -> memref<1x128xf32, #tpu.memory_space<vmem>>
      %221 = tpu.memref_slice %arg6[%c0_i32_113] : memref<2x!tpu.dma_semaphore, #tpu.memory_space<semaphore_mem>> -> memref<1x!tpu.dma_semaphore, #tpu.memory_space<semaphore_mem>>
      %222 = tpu.memref_squeeze %221 : memref<1x!tpu.dma_semaphore, #tpu.memory_space<semaphore_mem>> -> memref<!tpu.dma_semaphore, #tpu.memory_space<semaphore_mem>>
      tpu.enqueue_dma source(%218 : memref<1x128xf32, #tpu.memory_space<any>>) target(%220 : memref<1x128xf32, #tpu.memory_space<vmem>>) target_semaphore(%222 : memref<!tpu.dma_semaphore, #tpu.memory_space<semaphore_mem>>)
      %223 = arith.index_cast %arg0 : i32 to index
      %c1 = arith.constant 1 : index
      %224 = memref.load %arg2[%223, %c1] : memref<2x128xi32, #tpu.memory_space<smem>>
      %c0_i32_117 = arith.constant 0 : i32
      %c0_i32_118 = arith.constant 0 : i32
      %c0_i32_119 = arith.constant 0 : i32
      %225 = tpu.memref_slice %arg3[%arg0, %224, %c0_i32_119] : memref<2x256x128xf32, #tpu.memory_space<any>> -> memref<1x1x128xf32, #tpu.memory_space<any>>
      %226 = tpu.memref_squeeze %225 : memref<1x1x128xf32, #tpu.memory_space<any>> -> memref<1x128xf32, #tpu.memory_space<any>>
      %c1_i32_120 = arith.constant 1 : i32
      %c0_i32_121 = arith.constant 0 : i32
      %227 = tpu.memref_slice %arg5[%c0_i32_117, %c1_i32_120, %c0_i32_121] : memref<2x32x128xf32, #tpu.memory_space<vmem>> -> memref<1x1x128xf32, #tpu.memory_space<vmem>>
      %228 = tpu.memref_squeeze %227 : memref<1x1x128xf32, #tpu.memory_space<vmem>> -> memref<1x128xf32, #tpu.memory_space<vmem>>
      %229 = tpu.memref_slice %arg6[%c0_i32_118] : memref<2x!tpu.dma_semaphore, #tpu.memory_space<semaphore_mem>> -> memref<1x!tpu.dma_semaphore, #tpu.memory_space<semaphore_mem>>
      %230 = tpu.memref_squeeze %229 : memref<1x!tpu.dma_semaphore, #tpu.memory_space<semaphore_mem>> -> memref<!tpu.dma_semaphore, #tpu.memory_space<semaphore_mem>>
      tpu.enqueue_dma source(%226 : memref<1x128xf32, #tpu.memory_space<any>>) target(%228 : memref<1x128xf32, #tpu.memory_space<vmem>>) target_semaphore(%230 : memref<!tpu.dma_semaphore, #tpu.memory_space<semaphore_mem>>)
      %231 = arith.index_cast %arg0 : i32 to index
      %c2 = arith.constant 2 : index
      %232 = memref.load %arg2[%231, %c2] : memref<2x128xi32, #tpu.memory_space<smem>>
      %c0_i32_122 = arith.constant 0 : i32
      %c0_i32_123 = arith.constant 0 : i32
      %c0_i32_124 = arith.constant 0 : i32
      %233 = tpu.memref_slice %arg3[%arg0, %232, %c0_i32_124] : memref<2x256x128xf32, #tpu.memory_space<any>> -> memref<1x1x128xf32, #tpu.memory_space<any>>
      %234 = tpu.memref_squeeze %233 : memref<1x1x128xf32, #tpu.memory_space<any>> -> memref<1x128xf32, #tpu.memory_space<any>>
      %c2_i32_125 = arith.constant 2 : i32
      %c0_i32_126 = arith.constant 0 : i32
      %235 = tpu.memref_slice %arg5[%c0_i32_122, %c2_i32_125, %c0_i32_126] : memref<2x32x128xf32, #tpu.memory_space<vmem>> -> memref<1x1x128xf32, #tpu.memory_space<vmem>>
      %236 = tpu.memref_squeeze %235 : memref<1x1x128xf32, #tpu.memory_space<vmem>> -> memref<1x128xf32, #tpu.memory_space<vmem>>
      %237 = tpu.memref_slice %arg6[%c0_i32_123] : memref<2x!tpu.dma_semaphore, #tpu.memory_space<semaphore_mem>> -> memref<1x!tpu.dma_semaphore, #tpu.memory_space<semaphore_mem>>
      %238 = tpu.memref_squeeze %237 : memref<1x!tpu.dma_semaphore, #tpu.memory_space<semaphore_mem>> -> memref<!tpu.dma_semaphore, #tpu.memory_space<semaphore_mem>>
      tpu.enqueue_dma source(%234 : memref<1x128xf32, #tpu.memory_space<any>>) target(%236 : memref<1x128xf32, #tpu.memory_space<vmem>>) target_semaphore(%238 : memref<!tpu.dma_semaphore, #tpu.memory_space<semaphore_mem>>)
      %239 = arith.index_cast %arg0 : i32 to index
      %c3 = arith.constant 3 : index
      %240 = memref.load %arg2[%239, %c3] : memref<2x128xi32, #tpu.memory_space<smem>>
      %c0_i32_127 = arith.constant 0 : i32
      %c0_i32_128 = arith.constant 0 : i32
      %c0_i32_129 = arith.constant 0 : i32
      %241 = tpu.memref_slice %arg3[%arg0, %240, %c0_i32_129] : memref<2x256x128xf32, #tpu.memory_space<any>> -> memref<1x1x128xf32, #tpu.memory_space<any>>
      %242 = tpu.memref_squeeze %241 : memref<1x1x128xf32, #tpu.memory_space<any>> -> memref<1x128xf32, #tpu.memory_space<any>>
      %c3_i32_130 = arith.constant 3 : i32
      %c0_i32_131 = arith.constant 0 : i32
      %243 = tpu.memref_slice %arg5[%c0_i32_127, %c3_i32_130, %c0_i32_131] : memref<2x32x128xf32, #tpu.memory_space<vmem>> -> memref<1x1x128xf32, #tpu.memory_space<vmem>>
      %244 = tpu.memref_squeeze %243 : memref<1x1x128xf32, #tpu.memory_space<vmem>> -> memref<1x128xf32, #tpu.memory_space<vmem>>
      %245 = tpu.memref_slice %arg6[%c0_i32_128] : memref<2x!tpu.dma_semaphore, #tpu.memory_space<semaphore_mem>> -> memref<1x!tpu.dma_semaphore, #tpu.memory_space<semaphore_mem>>
      %246 = tpu.memref_squeeze %245 : memref<1x!tpu.dma_semaphore, #tpu.memory_space<semaphore_mem>> -> memref<!tpu.dma_semaphore, #tpu.memory_space<semaphore_mem>>
      tpu.enqueue_dma source(%242 : memref<1x128xf32, #tpu.memory_space<any>>) target(%244 : memref<1x128xf32, #tpu.memory_space<vmem>>) target_semaphore(%246 : memref<!tpu.dma_semaphore, #tpu.memory_space<semaphore_mem>>)
      %247 = arith.index_cast %arg0 : i32 to index
      %c4 = arith.constant 4 : index
      %248 = memref.load %arg2[%247, %c4] : memref<2x128xi32, #tpu.memory_space<smem>>
      %c0_i32_132 = arith.constant 0 : i32
      %c0_i32_133 = arith.constant 0 : i32
      %c0_i32_134 = arith.constant 0 : i32
      %249 = tpu.memref_slice %arg3[%arg0, %248, %c0_i32_134] : memref<2x256x128xf32, #tpu.memory_space<any>> -> memref<1x1x128xf32, #tpu.memory_space<any>>
      %250 = tpu.memref_squeeze %249 : memref<1x1x128xf32, #tpu.memory_space<any>> -> memref<1x128xf32, #tpu.memory_space<any>>
      %c4_i32_135 = arith.constant 4 : i32
      %c0_i32_136 = arith.constant 0 : i32
      %251 = tpu.memref_slice %arg5[%c0_i32_132, %c4_i32_135, %c0_i32_136] : memref<2x32x128xf32, #tpu.memory_space<vmem>> -> memref<1x1x128xf32, #tpu.memory_space<vmem>>
      %252 = tpu.memref_squeeze %251 : memref<1x1x128xf32, #tpu.memory_space<vmem>> -> memref<1x128xf32, #tpu.memory_space<vmem>>
      %253 = tpu.memref_slice %arg6[%c0_i32_133] : memref<2x!tpu.dma_semaphore, #tpu.memory_space<semaphore_mem>> -> memref<1x!tpu.dma_semaphore, #tpu.memory_space<semaphore_mem>>
      %254 = tpu.memref_squeeze %253 : memref<1x!tpu.dma_semaphore, #tpu.memory_space<semaphore_mem>> -> memref<!tpu.dma_semaphore, #tpu.memory_space<semaphore_mem>>
      tpu.enqueue_dma source(%250 : memref<1x128xf32, #tpu.memory_space<any>>) target(%252 : memref<1x128xf32, #tpu.memory_space<vmem>>) target_semaphore(%254 : memref<!tpu.dma_semaphore, #tpu.memory_space<semaphore_mem>>)
      %255 = arith.index_cast %arg0 : i32 to index
      %c5 = arith.constant 5 : index
      %256 = memref.load %arg2[%255, %c5] : memref<2x128xi32, #tpu.memory_space<smem>>
      %c0_i32_137 = arith.constant 0 : i32
      %c0_i32_138 = arith.constant 0 : i32
      %c0_i32_139 = arith.constant 0 : i32
      %257 = tpu.memref_slice %arg3[%arg0, %256, %c0_i32_139] : memref<2x256x128xf32, #tpu.memory_space<any>> -> memref<1x1x128xf32, #tpu.memory_space<any>>
      %258 = tpu.memref_squeeze %257 : memref<1x1x128xf32, #tpu.memory_space<any>> -> memref<1x128xf32, #tpu.memory_space<any>>
      %c5_i32_140 = arith.constant 5 : i32
      %c0_i32_141 = arith.constant 0 : i32
      %259 = tpu.memref_slice %arg5[%c0_i32_137, %c5_i32_140, %c0_i32_141] : memref<2x32x128xf32, #tpu.memory_space<vmem>> -> memref<1x1x128xf32, #tpu.memory_space<vmem>>
      %260 = tpu.memref_squeeze %259 : memref<1x1x128xf32, #tpu.memory_space<vmem>> -> memref<1x128xf32, #tpu.memory_space<vmem>>
      %261 = tpu.memref_slice %arg6[%c0_i32_138] : memref<2x!tpu.dma_semaphore, #tpu.memory_space<semaphore_mem>> -> memref<1x!tpu.dma_semaphore, #tpu.memory_space<semaphore_mem>>
      %262 = tpu.memref_squeeze %261 : memref<1x!tpu.dma_semaphore, #tpu.memory_space<semaphore_mem>> -> memref<!tpu.dma_semaphore, #tpu.memory_space<semaphore_mem>>
      tpu.enqueue_dma source(%258 : memref<1x128xf32, #tpu.memory_space<any>>) target(%260 : memref<1x128xf32, #tpu.memory_space<vmem>>) target_semaphore(%262 : memref<!tpu.dma_semaphore, #tpu.memory_space<semaphore_mem>>)
      %263 = arith.index_cast %arg0 : i32 to index
      %c6 = arith.constant 6 : index
      %264 = memref.load %arg2[%263, %c6] : memref<2x128xi32, #tpu.memory_space<smem>>
      %c0_i32_142 = arith.constant 0 : i32
      %c0_i32_143 = arith.constant 0 : i32
      %c0_i32_144 = arith.constant 0 : i32
      %265 = tpu.memref_slice %arg3[%arg0, %264, %c0_i32_144] : memref<2x256x128xf32, #tpu.memory_space<any>> -> memref<1x1x128xf32, #tpu.memory_space<any>>
      %266 = tpu.memref_squeeze %265 : memref<1x1x128xf32, #tpu.memory_space<any>> -> memref<1x128xf32, #tpu.memory_space<any>>
      %c6_i32_145 = arith.constant 6 : i32
      %c0_i32_146 = arith.constant 0 : i32
      %267 = tpu.memref_slice %arg5[%c0_i32_142, %c6_i32_145, %c0_i32_146] : memref<2x32x128xf32, #tpu.memory_space<vmem>> -> memref<1x1x128xf32, #tpu.memory_space<vmem>>
      %268 = tpu.memref_squeeze %267 : memref<1x1x128xf32, #tpu.memory_space<vmem>> -> memref<1x128xf32, #tpu.memory_space<vmem>>
      %269 = tpu.memref_slice %arg6[%c0_i32_143] : memref<2x!tpu.dma_semaphore, #tpu.memory_space<semaphore_mem>> -> memref<1x!tpu.dma_semaphore, #tpu.memory_space<semaphore_mem>>
      %270 = tpu.memref_squeeze %269 : memref<1x!tpu.dma_semaphore, #tpu.memory_space<semaphore_mem>> -> memref<!tpu.dma_semaphore, #tpu.memory_space<semaphore_mem>>
      tpu.enqueue_dma source(%266 : memref<1x128xf32, #tpu.memory_space<any>>) target(%268 : memref<1x128xf32, #tpu.memory_space<vmem>>) target_semaphore(%270 : memref<!tpu.dma_semaphore, #tpu.memory_space<semaphore_mem>>)
      %271 = arith.index_cast %arg0 : i32 to index
      %c7 = arith.constant 7 : index
      %272 = memref.load %arg2[%271, %c7] : memref<2x128xi32, #tpu.memory_space<smem>>
      %c0_i32_147 = arith.constant 0 : i32
      %c0_i32_148 = arith.constant 0 : i32
      %c0_i32_149 = arith.constant 0 : i32
      %273 = tpu.memref_slice %arg3[%arg0, %272, %c0_i32_149] : memref<2x256x128xf32, #tpu.memory_space<any>> -> memref<1x1x128xf32, #tpu.memory_space<any>>
      %274 = tpu.memref_squeeze %273 : memref<1x1x128xf32, #tpu.memory_space<any>> -> memref<1x128xf32, #tpu.memory_space<any>>
      %c7_i32_150 = arith.constant 7 : i32
      %c0_i32_151 = arith.constant 0 : i32
      %275 = tpu.memref_slice %arg5[%c0_i32_147, %c7_i32_150, %c0_i32_151] : memref<2x32x128xf32, #tpu.memory_space<vmem>> -> memref<1x1x128xf32, #tpu.memory_space<vmem>>
      %276 = tpu.memref_squeeze %275 : memref<1x1x128xf32, #tpu.memory_space<vmem>> -> memref<1x128xf32, #tpu.memory_space<vmem>>
      %277 = tpu.memref_slice %arg6[%c0_i32_148] : memref<2x!tpu.dma_semaphore, #tpu.memory_space<semaphore_mem>> -> memref<1x!tpu.dma_semaphore, #tpu.memory_space<semaphore_mem>>
      %278 = tpu.memref_squeeze %277 : memref<1x!tpu.dma_semaphore, #tpu.memory_space<semaphore_mem>> -> memref<!tpu.dma_semaphore, #tpu.memory_space<semaphore_mem>>
      tpu.enqueue_dma source(%274 : memref<1x128xf32, #tpu.memory_space<any>>) target(%276 : memref<1x128xf32, #tpu.memory_space<vmem>>) target_semaphore(%278 : memref<!tpu.dma_semaphore, #tpu.memory_space<semaphore_mem>>)
      %279 = arith.index_cast %arg0 : i32 to index
      %c8 = arith.constant 8 : index
      %280 = memref.load %arg2[%279, %c8] : memref<2x128xi32, #tpu.memory_space<smem>>
      %c0_i32_152 = arith.constant 0 : i32
      %c0_i32_153 = arith.constant 0 : i32
      %c0_i32_154 = arith.constant 0 : i32
      %281 = tpu.memref_slice %arg3[%arg0, %280, %c0_i32_154] : memref<2x256x128xf32, #tpu.memory_space<any>> -> memref<1x1x128xf32, #tpu.memory_space<any>>
      %282 = tpu.memref_squeeze %281 : memref<1x1x128xf32, #tpu.memory_space<any>> -> memref<1x128xf32, #tpu.memory_space<any>>
      %c8_i32_155 = arith.constant 8 : i32
      %c0_i32_156 = arith.constant 0 : i32
      %283 = tpu.memref_slice %arg5[%c0_i32_152, %c8_i32_155, %c0_i32_156] : memref<2x32x128xf32, #tpu.memory_space<vmem>> -> memref<1x1x128xf32, #tpu.memory_space<vmem>>
      %284 = tpu.memref_squeeze %283 : memref<1x1x128xf32, #tpu.memory_space<vmem>> -> memref<1x128xf32, #tpu.memory_space<vmem>>
      %285 = tpu.memref_slice %arg6[%c0_i32_153] : memref<2x!tpu.dma_semaphore, #tpu.memory_space<semaphore_mem>> -> memref<1x!tpu.dma_semaphore, #tpu.memory_space<semaphore_mem>>
      %286 = tpu.memref_squeeze %285 : memref<1x!tpu.dma_semaphore, #tpu.memory_space<semaphore_mem>> -> memref<!tpu.dma_semaphore, #tpu.memory_space<semaphore_mem>>
      tpu.enqueue_dma source(%282 : memref<1x128xf32, #tpu.memory_space<any>>) target(%284 : memref<1x128xf32, #tpu.memory_space<vmem>>) target_semaphore(%286 : memref<!tpu.dma_semaphore, #tpu.memory_space<semaphore_mem>>)
      %287 = arith.index_cast %arg0 : i32 to index
      %c9 = arith.constant 9 : index
      %288 = memref.load %arg2[%287, %c9] : memref<2x128xi32, #tpu.memory_space<smem>>
      %c0_i32_157 = arith.constant 0 : i32
      %c0_i32_158 = arith.constant 0 : i32
      %c0_i32_159 = arith.constant 0 : i32
      %289 = tpu.memref_slice %arg3[%arg0, %288, %c0_i32_159] : memref<2x256x128xf32, #tpu.memory_space<any>> -> memref<1x1x128xf32, #tpu.memory_space<any>>
      %290 = tpu.memref_squeeze %289 : memref<1x1x128xf32, #tpu.memory_space<any>> -> memref<1x128xf32, #tpu.memory_space<any>>
      %c9_i32_160 = arith.constant 9 : i32
      %c0_i32_161 = arith.constant 0 : i32
      %291 = tpu.memref_slice %arg5[%c0_i32_157, %c9_i32_160, %c0_i32_161] : memref<2x32x128xf32, #tpu.memory_space<vmem>> -> memref<1x1x128xf32, #tpu.memory_space<vmem>>
      %292 = tpu.memref_squeeze %291 : memref<1x1x128xf32, #tpu.memory_space<vmem>> -> memref<1x128xf32, #tpu.memory_space<vmem>>
      %293 = tpu.memref_slice %arg6[%c0_i32_158] : memref<2x!tpu.dma_semaphore, #tpu.memory_space<semaphore_mem>> -> memref<1x!tpu.dma_semaphore, #tpu.memory_space<semaphore_mem>>
      %294 = tpu.memref_squeeze %293 : memref<1x!tpu.dma_semaphore, #tpu.memory_space<semaphore_mem>> -> memref<!tpu.dma_semaphore, #tpu.memory_space<semaphore_mem>>
      tpu.enqueue_dma source(%290 : memref<1x128xf32, #tpu.memory_space<any>>) target(%292 : memref<1x128xf32, #tpu.memory_space<vmem>>) target_semaphore(%294 : memref<!tpu.dma_semaphore, #tpu.memory_space<semaphore_mem>>)
      %295 = arith.index_cast %arg0 : i32 to index
      %c10 = arith.constant 10 : index
      %296 = memref.load %arg2[%295, %c10] : memref<2x128xi32, #tpu.memory_space<smem>>
      %c0_i32_162 = arith.constant 0 : i32
      %c0_i32_163 = arith.constant 0 : i32
      %c0_i32_164 = arith.constant 0 : i32
      %297 = tpu.memref_slice %arg3[%arg0, %296, %c0_i32_164] : memref<2x256x128xf32, #tpu.memory_space<any>> -> memref<1x1x128xf32, #tpu.memory_space<any>>
      %298 = tpu.memref_squeeze %297 : memref<1x1x128xf32, #tpu.memory_space<any>> -> memref<1x128xf32, #tpu.memory_space<any>>
      %c10_i32_165 = arith.constant 10 : i32
      %c0_i32_166 = arith.constant 0 : i32
      %299 = tpu.memref_slice %arg5[%c0_i32_162, %c10_i32_165, %c0_i32_166] : memref<2x32x128xf32, #tpu.memory_space<vmem>> -> memref<1x1x128xf32, #tpu.memory_space<vmem>>
      %300 = tpu.memref_squeeze %299 : memref<1x1x128xf32, #tpu.memory_space<vmem>> -> memref<1x128xf32, #tpu.memory_space<vmem>>
      %301 = tpu.memref_slice %arg6[%c0_i32_163] : memref<2x!tpu.dma_semaphore, #tpu.memory_space<semaphore_mem>> -> memref<1x!tpu.dma_semaphore, #tpu.memory_space<semaphore_mem>>
      %302 = tpu.memref_squeeze %301 : memref<1x!tpu.dma_semaphore, #tpu.memory_space<semaphore_mem>> -> memref<!tpu.dma_semaphore, #tpu.memory_space<semaphore_mem>>
      tpu.enqueue_dma source(%298 : memref<1x128xf32, #tpu.memory_space<any>>) target(%300 : memref<1x128xf32, #tpu.memory_space<vmem>>) target_semaphore(%302 : memref<!tpu.dma_semaphore, #tpu.memory_space<semaphore_mem>>)
      %303 = arith.index_cast %arg0 : i32 to index
      %c11 = arith.constant 11 : index
      %304 = memref.load %arg2[%303, %c11] : memref<2x128xi32, #tpu.memory_space<smem>>
      %c0_i32_167 = arith.constant 0 : i32
      %c0_i32_168 = arith.constant 0 : i32
      %c0_i32_169 = arith.constant 0 : i32
      %305 = tpu.memref_slice %arg3[%arg0, %304, %c0_i32_169] : memref<2x256x128xf32, #tpu.memory_space<any>> -> memref<1x1x128xf32, #tpu.memory_space<any>>
      %306 = tpu.memref_squeeze %305 : memref<1x1x128xf32, #tpu.memory_space<any>> -> memref<1x128xf32, #tpu.memory_space<any>>
      %c11_i32_170 = arith.constant 11 : i32
      %c0_i32_171 = arith.constant 0 : i32
      %307 = tpu.memref_slice %arg5[%c0_i32_167, %c11_i32_170, %c0_i32_171] : memref<2x32x128xf32, #tpu.memory_space<vmem>> -> memref<1x1x128xf32, #tpu.memory_space<vmem>>
      %308 = tpu.memref_squeeze %307 : memref<1x1x128xf32, #tpu.memory_space<vmem>> -> memref<1x128xf32, #tpu.memory_space<vmem>>
      %309 = tpu.memref_slice %arg6[%c0_i32_168] : memref<2x!tpu.dma_semaphore, #tpu.memory_space<semaphore_mem>> -> memref<1x!tpu.dma_semaphore, #tpu.memory_space<semaphore_mem>>
      %310 = tpu.memref_squeeze %309 : memref<1x!tpu.dma_semaphore, #tpu.memory_space<semaphore_mem>> -> memref<!tpu.dma_semaphore, #tpu.memory_space<semaphore_mem>>
      tpu.enqueue_dma source(%306 : memref<1x128xf32, #tpu.memory_space<any>>) target(%308 : memref<1x128xf32, #tpu.memory_space<vmem>>) target_semaphore(%310 : memref<!tpu.dma_semaphore, #tpu.memory_space<semaphore_mem>>)
      %311 = arith.index_cast %arg0 : i32 to index
      %c12 = arith.constant 12 : index
      %312 = memref.load %arg2[%311, %c12] : memref<2x128xi32, #tpu.memory_space<smem>>
      %c0_i32_172 = arith.constant 0 : i32
      %c0_i32_173 = arith.constant 0 : i32
      %c0_i32_174 = arith.constant 0 : i32
      %313 = tpu.memref_slice %arg3[%arg0, %312, %c0_i32_174] : memref<2x256x128xf32, #tpu.memory_space<any>> -> memref<1x1x128xf32, #tpu.memory_space<any>>
      %314 = tpu.memref_squeeze %313 : memref<1x1x128xf32, #tpu.memory_space<any>> -> memref<1x128xf32, #tpu.memory_space<any>>
      %c12_i32_175 = arith.constant 12 : i32
      %c0_i32_176 = arith.constant 0 : i32
      %315 = tpu.memref_slice %arg5[%c0_i32_172, %c12_i32_175, %c0_i32_176] : memref<2x32x128xf32, #tpu.memory_space<vmem>> -> memref<1x1x128xf32, #tpu.memory_space<vmem>>
      %316 = tpu.memref_squeeze %315 : memref<1x1x128xf32, #tpu.memory_space<vmem>> -> memref<1x128xf32, #tpu.memory_space<vmem>>
      %317 = tpu.memref_slice %arg6[%c0_i32_173] : memref<2x!tpu.dma_semaphore, #tpu.memory_space<semaphore_mem>> -> memref<1x!tpu.dma_semaphore, #tpu.memory_space<semaphore_mem>>
      %318 = tpu.memref_squeeze %317 : memref<1x!tpu.dma_semaphore, #tpu.memory_space<semaphore_mem>> -> memref<!tpu.dma_semaphore, #tpu.memory_space<semaphore_mem>>
      tpu.enqueue_dma source(%314 : memref<1x128xf32, #tpu.memory_space<any>>) target(%316 : memref<1x128xf32, #tpu.memory_space<vmem>>) target_semaphore(%318 : memref<!tpu.dma_semaphore, #tpu.memory_space<semaphore_mem>>)
      %319 = arith.index_cast %arg0 : i32 to index
      %c13 = arith.constant 13 : index
      %320 = memref.load %arg2[%319, %c13] : memref<2x128xi32, #tpu.memory_space<smem>>
      %c0_i32_177 = arith.constant 0 : i32
      %c0_i32_178 = arith.constant 0 : i32
      %c0_i32_179 = arith.constant 0 : i32
      %321 = tpu.memref_slice %arg3[%arg0, %320, %c0_i32_179] : memref<2x256x128xf32, #tpu.memory_space<any>> -> memref<1x1x128xf32, #tpu.memory_space<any>>
      %322 = tpu.memref_squeeze %321 : memref<1x1x128xf32, #tpu.memory_space<any>> -> memref<1x128xf32, #tpu.memory_space<any>>
      %c13_i32_180 = arith.constant 13 : i32
      %c0_i32_181 = arith.constant 0 : i32
      %323 = tpu.memref_slice %arg5[%c0_i32_177, %c13_i32_180, %c0_i32_181] : memref<2x32x128xf32, #tpu.memory_space<vmem>> -> memref<1x1x128xf32, #tpu.memory_space<vmem>>
      %324 = tpu.memref_squeeze %323 : memref<1x1x128xf32, #tpu.memory_space<vmem>> -> memref<1x128xf32, #tpu.memory_space<vmem>>
      %325 = tpu.memref_slice %arg6[%c0_i32_178] : memref<2x!tpu.dma_semaphore, #tpu.memory_space<semaphore_mem>> -> memref<1x!tpu.dma_semaphore, #tpu.memory_space<semaphore_mem>>
      %326 = tpu.memref_squeeze %325 : memref<1x!tpu.dma_semaphore, #tpu.memory_space<semaphore_mem>> -> memref<!tpu.dma_semaphore, #tpu.memory_space<semaphore_mem>>
      tpu.enqueue_dma source(%322 : memref<1x128xf32, #tpu.memory_space<any>>) target(%324 : memref<1x128xf32, #tpu.memory_space<vmem>>) target_semaphore(%326 : memref<!tpu.dma_semaphore, #tpu.memory_space<semaphore_mem>>)
      %327 = arith.index_cast %arg0 : i32 to index
      %c14 = arith.constant 14 : index
      %328 = memref.load %arg2[%327, %c14] : memref<2x128xi32, #tpu.memory_space<smem>>
      %c0_i32_182 = arith.constant 0 : i32
      %c0_i32_183 = arith.constant 0 : i32
      %c0_i32_184 = arith.constant 0 : i32
      %329 = tpu.memref_slice %arg3[%arg0, %328, %c0_i32_184] : memref<2x256x128xf32, #tpu.memory_space<any>> -> memref<1x1x128xf32, #tpu.memory_space<any>>
      %330 = tpu.memref_squeeze %329 : memref<1x1x128xf32, #tpu.memory_space<any>> -> memref<1x128xf32, #tpu.memory_space<any>>
      %c14_i32_185 = arith.constant 14 : i32
      %c0_i32_186 = arith.constant 0 : i32
      %331 = tpu.memref_slice %arg5[%c0_i32_182, %c14_i32_185, %c0_i32_186] : memref<2x32x128xf32, #tpu.memory_space<vmem>> -> memref<1x1x128xf32, #tpu.memory_space<vmem>>
      %332 = tpu.memref_squeeze %331 : memref<1x1x128xf32, #tpu.memory_space<vmem>> -> memref<1x128xf32, #tpu.memory_space<vmem>>
      %333 = tpu.memref_slice %arg6[%c0_i32_183] : memref<2x!tpu.dma_semaphore, #tpu.memory_space<semaphore_mem>> -> memref<1x!tpu.dma_semaphore, #tpu.memory_space<semaphore_mem>>
      %334 = tpu.memref_squeeze %333 : memref<1x!tpu.dma_semaphore, #tpu.memory_space<semaphore_mem>> -> memref<!tpu.dma_semaphore, #tpu.memory_space<semaphore_mem>>
      tpu.enqueue_dma source(%330 : memref<1x128xf32, #tpu.memory_space<any>>) target(%332 : memref<1x128xf32, #tpu.memory_space<vmem>>) target_semaphore(%334 : memref<!tpu.dma_semaphore, #tpu.memory_space<semaphore_mem>>)
      %335 = arith.index_cast %arg0 : i32 to index
      %c15 = arith.constant 15 : index
      %336 = memref.load %arg2[%335, %c15] : memref<2x128xi32, #tpu.memory_space<smem>>
      %c0_i32_187 = arith.constant 0 : i32
      %c0_i32_188 = arith.constant 0 : i32
      %c0_i32_189 = arith.constant 0 : i32
      %337 = tpu.memref_slice %arg3[%arg0, %336, %c0_i32_189] : memref<2x256x128xf32, #tpu.memory_space<any>> -> memref<1x1x128xf32, #tpu.memory_space<any>>
      %338 = tpu.memref_squeeze %337 : memref<1x1x128xf32, #tpu.memory_space<any>> -> memref<1x128xf32, #tpu.memory_space<any>>
      %c15_i32_190 = arith.constant 15 : i32
      %c0_i32_191 = arith.constant 0 : i32
      %339 = tpu.memref_slice %arg5[%c0_i32_187, %c15_i32_190, %c0_i32_191] : memref<2x32x128xf32, #tpu.memory_space<vmem>> -> memref<1x1x128xf32, #tpu.memory_space<vmem>>
      %340 = tpu.memref_squeeze %339 : memref<1x1x128xf32, #tpu.memory_space<vmem>> -> memref<1x128xf32, #tpu.memory_space<vmem>>
      %341 = tpu.memref_slice %arg6[%c0_i32_188] : memref<2x!tpu.dma_semaphore, #tpu.memory_space<semaphore_mem>> -> memref<1x!tpu.dma_semaphore, #tpu.memory_space<semaphore_mem>>
      %342 = tpu.memref_squeeze %341 : memref<1x!tpu.dma_semaphore, #tpu.memory_space<semaphore_mem>> -> memref<!tpu.dma_semaphore, #tpu.memory_space<semaphore_mem>>
      tpu.enqueue_dma source(%338 : memref<1x128xf32, #tpu.memory_space<any>>) target(%340 : memref<1x128xf32, #tpu.memory_space<vmem>>) target_semaphore(%342 : memref<!tpu.dma_semaphore, #tpu.memory_space<semaphore_mem>>)
      %343 = arith.index_cast %arg0 : i32 to index
      %c16 = arith.constant 16 : index
      %344 = memref.load %arg2[%343, %c16] : memref<2x128xi32, #tpu.memory_space<smem>>
      %c0_i32_192 = arith.constant 0 : i32
      %c0_i32_193 = arith.constant 0 : i32
      %c0_i32_194 = arith.constant 0 : i32
      %345 = tpu.memref_slice %arg3[%arg0, %344, %c0_i32_194] : memref<2x256x128xf32, #tpu.memory_space<any>> -> memref<1x1x128xf32, #tpu.memory_space<any>>
      %346 = tpu.memref_squeeze %345 : memref<1x1x128xf32, #tpu.memory_space<any>> -> memref<1x128xf32, #tpu.memory_space<any>>
      %c16_i32_195 = arith.constant 16 : i32
      %c0_i32_196 = arith.constant 0 : i32
      %347 = tpu.memref_slice %arg5[%c0_i32_192, %c16_i32_195, %c0_i32_196] : memref<2x32x128xf32, #tpu.memory_space<vmem>> -> memref<1x1x128xf32, #tpu.memory_space<vmem>>
      %348 = tpu.memref_squeeze %347 : memref<1x1x128xf32, #tpu.memory_space<vmem>> -> memref<1x128xf32, #tpu.memory_space<vmem>>
      %349 = tpu.memref_slice %arg6[%c0_i32_193] : memref<2x!tpu.dma_semaphore, #tpu.memory_space<semaphore_mem>> -> memref<1x!tpu.dma_semaphore, #tpu.memory_space<semaphore_mem>>
      %350 = tpu.memref_squeeze %349 : memref<1x!tpu.dma_semaphore, #tpu.memory_space<semaphore_mem>> -> memref<!tpu.dma_semaphore, #tpu.memory_space<semaphore_mem>>
      tpu.enqueue_dma source(%346 : memref<1x128xf32, #tpu.memory_space<any>>) target(%348 : memref<1x128xf32, #tpu.memory_space<vmem>>) target_semaphore(%350 : memref<!tpu.dma_semaphore, #tpu.memory_space<semaphore_mem>>)
      %351 = arith.index_cast %arg0 : i32 to index
      %c17 = arith.constant 17 : index
      %352 = memref.load %arg2[%351, %c17] : memref<2x128xi32, #tpu.memory_space<smem>>
      %c0_i32_197 = arith.constant 0 : i32
      %c0_i32_198 = arith.constant 0 : i32
      %c0_i32_199 = arith.constant 0 : i32
      %353 = tpu.memref_slice %arg3[%arg0, %352, %c0_i32_199] : memref<2x256x128xf32, #tpu.memory_space<any>> -> memref<1x1x128xf32, #tpu.memory_space<any>>
      %354 = tpu.memref_squeeze %353 : memref<1x1x128xf32, #tpu.memory_space<any>> -> memref<1x128xf32, #tpu.memory_space<any>>
      %c17_i32_200 = arith.constant 17 : i32
      %c0_i32_201 = arith.constant 0 : i32
      %355 = tpu.memref_slice %arg5[%c0_i32_197, %c17_i32_200, %c0_i32_201] : memref<2x32x128xf32, #tpu.memory_space<vmem>> -> memref<1x1x128xf32, #tpu.memory_space<vmem>>
      %356 = tpu.memref_squeeze %355 : memref<1x1x128xf32, #tpu.memory_space<vmem>> -> memref<1x128xf32, #tpu.memory_space<vmem>>
      %357 = tpu.memref_slice %arg6[%c0_i32_198] : memref<2x!tpu.dma_semaphore, #tpu.memory_space<semaphore_mem>> -> memref<1x!tpu.dma_semaphore, #tpu.memory_space<semaphore_mem>>
      %358 = tpu.memref_squeeze %357 : memref<1x!tpu.dma_semaphore, #tpu.memory_space<semaphore_mem>> -> memref<!tpu.dma_semaphore, #tpu.memory_space<semaphore_mem>>
      tpu.enqueue_dma source(%354 : memref<1x128xf32, #tpu.memory_space<any>>) target(%356 : memref<1x128xf32, #tpu.memory_space<vmem>>) target_semaphore(%358 : memref<!tpu.dma_semaphore, #tpu.memory_space<semaphore_mem>>)
      %359 = arith.index_cast %arg0 : i32 to index
      %c18 = arith.constant 18 : index
      %360 = memref.load %arg2[%359, %c18] : memref<2x128xi32, #tpu.memory_space<smem>>
      %c0_i32_202 = arith.constant 0 : i32
      %c0_i32_203 = arith.constant 0 : i32
      %c0_i32_204 = arith.constant 0 : i32
      %361 = tpu.memref_slice %arg3[%arg0, %360, %c0_i32_204] : memref<2x256x128xf32, #tpu.memory_space<any>> -> memref<1x1x128xf32, #tpu.memory_space<any>>
      %362 = tpu.memref_squeeze %361 : memref<1x1x128xf32, #tpu.memory_space<any>> -> memref<1x128xf32, #tpu.memory_space<any>>
      %c18_i32_205 = arith.constant 18 : i32
      %c0_i32_206 = arith.constant 0 : i32
      %363 = tpu.memref_slice %arg5[%c0_i32_202, %c18_i32_205, %c0_i32_206] : memref<2x32x128xf32, #tpu.memory_space<vmem>> -> memref<1x1x128xf32, #tpu.memory_space<vmem>>
      %364 = tpu.memref_squeeze %363 : memref<1x1x128xf32, #tpu.memory_space<vmem>> -> memref<1x128xf32, #tpu.memory_space<vmem>>
      %365 = tpu.memref_slice %arg6[%c0_i32_203] : memref<2x!tpu.dma_semaphore, #tpu.memory_space<semaphore_mem>> -> memref<1x!tpu.dma_semaphore, #tpu.memory_space<semaphore_mem>>
      %366 = tpu.memref_squeeze %365 : memref<1x!tpu.dma_semaphore, #tpu.memory_space<semaphore_mem>> -> memref<!tpu.dma_semaphore, #tpu.memory_space<semaphore_mem>>
      tpu.enqueue_dma source(%362 : memref<1x128xf32, #tpu.memory_space<any>>) target(%364 : memref<1x128xf32, #tpu.memory_space<vmem>>) target_semaphore(%366 : memref<!tpu.dma_semaphore, #tpu.memory_space<semaphore_mem>>)
      %367 = arith.index_cast %arg0 : i32 to index
      %c19 = arith.constant 19 : index
      %368 = memref.load %arg2[%367, %c19] : memref<2x128xi32, #tpu.memory_space<smem>>
      %c0_i32_207 = arith.constant 0 : i32
      %c0_i32_208 = arith.constant 0 : i32
      %c0_i32_209 = arith.constant 0 : i32
      %369 = tpu.memref_slice %arg3[%arg0, %368, %c0_i32_209] : memref<2x256x128xf32, #tpu.memory_space<any>> -> memref<1x1x128xf32, #tpu.memory_space<any>>
      %370 = tpu.memref_squeeze %369 : memref<1x1x128xf32, #tpu.memory_space<any>> -> memref<1x128xf32, #tpu.memory_space<any>>
      %c19_i32_210 = arith.constant 19 : i32
      %c0_i32_211 = arith.constant 0 : i32
      %371 = tpu.memref_slice %arg5[%c0_i32_207, %c19_i32_210, %c0_i32_211] : memref<2x32x128xf32, #tpu.memory_space<vmem>> -> memref<1x1x128xf32, #tpu.memory_space<vmem>>
      %372 = tpu.memref_squeeze %371 : memref<1x1x128xf32, #tpu.memory_space<vmem>> -> memref<1x128xf32, #tpu.memory_space<vmem>>
      %373 = tpu.memref_slice %arg6[%c0_i32_208] : memref<2x!tpu.dma_semaphore, #tpu.memory_space<semaphore_mem>> -> memref<1x!tpu.dma_semaphore, #tpu.memory_space<semaphore_mem>>
      %374 = tpu.memref_squeeze %373 : memref<1x!tpu.dma_semaphore, #tpu.memory_space<semaphore_mem>> -> memref<!tpu.dma_semaphore, #tpu.memory_space<semaphore_mem>>
      tpu.enqueue_dma source(%370 : memref<1x128xf32, #tpu.memory_space<any>>) target(%372 : memref<1x128xf32, #tpu.memory_space<vmem>>) target_semaphore(%374 : memref<!tpu.dma_semaphore, #tpu.memory_space<semaphore_mem>>)
      %375 = arith.index_cast %arg0 : i32 to index
      %c20 = arith.constant 20 : index
      %376 = memref.load %arg2[%375, %c20] : memref<2x128xi32, #tpu.memory_space<smem>>
      %c0_i32_212 = arith.constant 0 : i32
      %c0_i32_213 = arith.constant 0 : i32
      %c0_i32_214 = arith.constant 0 : i32
      %377 = tpu.memref_slice %arg3[%arg0, %376, %c0_i32_214] : memref<2x256x128xf32, #tpu.memory_space<any>> -> memref<1x1x128xf32, #tpu.memory_space<any>>
      %378 = tpu.memref_squeeze %377 : memref<1x1x128xf32, #tpu.memory_space<any>> -> memref<1x128xf32, #tpu.memory_space<any>>
      %c20_i32_215 = arith.constant 20 : i32
      %c0_i32_216 = arith.constant 0 : i32
      %379 = tpu.memref_slice %arg5[%c0_i32_212, %c20_i32_215, %c0_i32_216] : memref<2x32x128xf32, #tpu.memory_space<vmem>> -> memref<1x1x128xf32, #tpu.memory_space<vmem>>
      %380 = tpu.memref_squeeze %379 : memref<1x1x128xf32, #tpu.memory_space<vmem>> -> memref<1x128xf32, #tpu.memory_space<vmem>>
      %381 = tpu.memref_slice %arg6[%c0_i32_213] : memref<2x!tpu.dma_semaphore, #tpu.memory_space<semaphore_mem>> -> memref<1x!tpu.dma_semaphore, #tpu.memory_space<semaphore_mem>>
      %382 = tpu.memref_squeeze %381 : memref<1x!tpu.dma_semaphore, #tpu.memory_space<semaphore_mem>> -> memref<!tpu.dma_semaphore, #tpu.memory_space<semaphore_mem>>
      tpu.enqueue_dma source(%378 : memref<1x128xf32, #tpu.memory_space<any>>) target(%380 : memref<1x128xf32, #tpu.memory_space<vmem>>) target_semaphore(%382 : memref<!tpu.dma_semaphore, #tpu.memory_space<semaphore_mem>>)
      %383 = arith.index_cast %arg0 : i32 to index
      %c21 = arith.constant 21 : index
      %384 = memref.load %arg2[%383, %c21] : memref<2x128xi32, #tpu.memory_space<smem>>
      %c0_i32_217 = arith.constant 0 : i32
      %c0_i32_218 = arith.constant 0 : i32
      %c0_i32_219 = arith.constant 0 : i32
      %385 = tpu.memref_slice %arg3[%arg0, %384, %c0_i32_219] : memref<2x256x128xf32, #tpu.memory_space<any>> -> memref<1x1x128xf32, #tpu.memory_space<any>>
      %386 = tpu.memref_squeeze %385 : memref<1x1x128xf32, #tpu.memory_space<any>> -> memref<1x128xf32, #tpu.memory_space<any>>
      %c21_i32_220 = arith.constant 21 : i32
      %c0_i32_221 = arith.constant 0 : i32
      %387 = tpu.memref_slice %arg5[%c0_i32_217, %c21_i32_220, %c0_i32_221] : memref<2x32x128xf32, #tpu.memory_space<vmem>> -> memref<1x1x128xf32, #tpu.memory_space<vmem>>
      %388 = tpu.memref_squeeze %387 : memref<1x1x128xf32, #tpu.memory_space<vmem>> -> memref<1x128xf32, #tpu.memory_space<vmem>>
      %389 = tpu.memref_slice %arg6[%c0_i32_218] : memref<2x!tpu.dma_semaphore, #tpu.memory_space<semaphore_mem>> -> memref<1x!tpu.dma_semaphore, #tpu.memory_space<semaphore_mem>>
      %390 = tpu.memref_squeeze %389 : memref<1x!tpu.dma_semaphore, #tpu.memory_space<semaphore_mem>> -> memref<!tpu.dma_semaphore, #tpu.memory_space<semaphore_mem>>
      tpu.enqueue_dma source(%386 : memref<1x128xf32, #tpu.memory_space<any>>) target(%388 : memref<1x128xf32, #tpu.memory_space<vmem>>) target_semaphore(%390 : memref<!tpu.dma_semaphore, #tpu.memory_space<semaphore_mem>>)
      %391 = arith.index_cast %arg0 : i32 to index
      %c22 = arith.constant 22 : index
      %392 = memref.load %arg2[%391, %c22] : memref<2x128xi32, #tpu.memory_space<smem>>
      %c0_i32_222 = arith.constant 0 : i32
      %c0_i32_223 = arith.constant 0 : i32
      %c0_i32_224 = arith.constant 0 : i32
      %393 = tpu.memref_slice %arg3[%arg0, %392, %c0_i32_224] : memref<2x256x128xf32, #tpu.memory_space<any>> -> memref<1x1x128xf32, #tpu.memory_space<any>>
      %394 = tpu.memref_squeeze %393 : memref<1x1x128xf32, #tpu.memory_space<any>> -> memref<1x128xf32, #tpu.memory_space<any>>
      %c22_i32_225 = arith.constant 22 : i32
      %c0_i32_226 = arith.constant 0 : i32
      %395 = tpu.memref_slice %arg5[%c0_i32_222, %c22_i32_225, %c0_i32_226] : memref<2x32x128xf32, #tpu.memory_space<vmem>> -> memref<1x1x128xf32, #tpu.memory_space<vmem>>
      %396 = tpu.memref_squeeze %395 : memref<1x1x128xf32, #tpu.memory_space<vmem>> -> memref<1x128xf32, #tpu.memory_space<vmem>>
      %397 = tpu.memref_slice %arg6[%c0_i32_223] : memref<2x!tpu.dma_semaphore, #tpu.memory_space<semaphore_mem>> -> memref<1x!tpu.dma_semaphore, #tpu.memory_space<semaphore_mem>>
      %398 = tpu.memref_squeeze %397 : memref<1x!tpu.dma_semaphore, #tpu.memory_space<semaphore_mem>> -> memref<!tpu.dma_semaphore, #tpu.memory_space<semaphore_mem>>
      tpu.enqueue_dma source(%394 : memref<1x128xf32, #tpu.memory_space<any>>) target(%396 : memref<1x128xf32, #tpu.memory_space<vmem>>) target_semaphore(%398 : memref<!tpu.dma_semaphore, #tpu.memory_space<semaphore_mem>>)
      %399 = arith.index_cast %arg0 : i32 to index
      %c23 = arith.constant 23 : index
      %400 = memref.load %arg2[%399, %c23] : memref<2x128xi32, #tpu.memory_space<smem>>
      %c0_i32_227 = arith.constant 0 : i32
      %c0_i32_228 = arith.constant 0 : i32
      %c0_i32_229 = arith.constant 0 : i32
      %401 = tpu.memref_slice %arg3[%arg0, %400, %c0_i32_229] : memref<2x256x128xf32, #tpu.memory_space<any>> -> memref<1x1x128xf32, #tpu.memory_space<any>>
      %402 = tpu.memref_squeeze %401 : memref<1x1x128xf32, #tpu.memory_space<any>> -> memref<1x128xf32, #tpu.memory_space<any>>
      %c23_i32_230 = arith.constant 23 : i32
      %c0_i32_231 = arith.constant 0 : i32
      %403 = tpu.memref_slice %arg5[%c0_i32_227, %c23_i32_230, %c0_i32_231] : memref<2x32x128xf32, #tpu.memory_space<vmem>> -> memref<1x1x128xf32, #tpu.memory_space<vmem>>
      %404 = tpu.memref_squeeze %403 : memref<1x1x128xf32, #tpu.memory_space<vmem>> -> memref<1x128xf32, #tpu.memory_space<vmem>>
      %405 = tpu.memref_slice %arg6[%c0_i32_228] : memref<2x!tpu.dma_semaphore, #tpu.memory_space<semaphore_mem>> -> memref<1x!tpu.dma_semaphore, #tpu.memory_space<semaphore_mem>>
      %406 = tpu.memref_squeeze %405 : memref<1x!tpu.dma_semaphore, #tpu.memory_space<semaphore_mem>> -> memref<!tpu.dma_semaphore, #tpu.memory_space<semaphore_mem>>
      tpu.enqueue_dma source(%402 : memref<1x128xf32, #tpu.memory_space<any>>) target(%404 : memref<1x128xf32, #tpu.memory_space<vmem>>) target_semaphore(%406 : memref<!tpu.dma_semaphore, #tpu.memory_space<semaphore_mem>>)
      %407 = arith.index_cast %arg0 : i32 to index
      %c24 = arith.constant 24 : index
      %408 = memref.load %arg2[%407, %c24] : memref<2x128xi32, #tpu.memory_space<smem>>
      %c0_i32_232 = arith.constant 0 : i32
      %c0_i32_233 = arith.constant 0 : i32
      %c0_i32_234 = arith.constant 0 : i32
      %409 = tpu.memref_slice %arg3[%arg0, %408, %c0_i32_234] : memref<2x256x128xf32, #tpu.memory_space<any>> -> memref<1x1x128xf32, #tpu.memory_space<any>>
      %410 = tpu.memref_squeeze %409 : memref<1x1x128xf32, #tpu.memory_space<any>> -> memref<1x128xf32, #tpu.memory_space<any>>
      %c24_i32_235 = arith.constant 24 : i32
      %c0_i32_236 = arith.constant 0 : i32
      %411 = tpu.memref_slice %arg5[%c0_i32_232, %c24_i32_235, %c0_i32_236] : memref<2x32x128xf32, #tpu.memory_space<vmem>> -> memref<1x1x128xf32, #tpu.memory_space<vmem>>
      %412 = tpu.memref_squeeze %411 : memref<1x1x128xf32, #tpu.memory_space<vmem>> -> memref<1x128xf32, #tpu.memory_space<vmem>>
      %413 = tpu.memref_slice %arg6[%c0_i32_233] : memref<2x!tpu.dma_semaphore, #tpu.memory_space<semaphore_mem>> -> memref<1x!tpu.dma_semaphore, #tpu.memory_space<semaphore_mem>>
      %414 = tpu.memref_squeeze %413 : memref<1x!tpu.dma_semaphore, #tpu.memory_space<semaphore_mem>> -> memref<!tpu.dma_semaphore, #tpu.memory_space<semaphore_mem>>
      tpu.enqueue_dma source(%410 : memref<1x128xf32, #tpu.memory_space<any>>) target(%412 : memref<1x128xf32, #tpu.memory_space<vmem>>) target_semaphore(%414 : memref<!tpu.dma_semaphore, #tpu.memory_space<semaphore_mem>>)
      %415 = arith.index_cast %arg0 : i32 to index
      %c25 = arith.constant 25 : index
      %416 = memref.load %arg2[%415, %c25] : memref<2x128xi32, #tpu.memory_space<smem>>
      %c0_i32_237 = arith.constant 0 : i32
      %c0_i32_238 = arith.constant 0 : i32
      %c0_i32_239 = arith.constant 0 : i32
      %417 = tpu.memref_slice %arg3[%arg0, %416, %c0_i32_239] : memref<2x256x128xf32, #tpu.memory_space<any>> -> memref<1x1x128xf32, #tpu.memory_space<any>>
      %418 = tpu.memref_squeeze %417 : memref<1x1x128xf32, #tpu.memory_space<any>> -> memref<1x128xf32, #tpu.memory_space<any>>
      %c25_i32_240 = arith.constant 25 : i32
      %c0_i32_241 = arith.constant 0 : i32
      %419 = tpu.memref_slice %arg5[%c0_i32_237, %c25_i32_240, %c0_i32_241] : memref<2x32x128xf32, #tpu.memory_space<vmem>> -> memref<1x1x128xf32, #tpu.memory_space<vmem>>
      %420 = tpu.memref_squeeze %419 : memref<1x1x128xf32, #tpu.memory_space<vmem>> -> memref<1x128xf32, #tpu.memory_space<vmem>>
      %421 = tpu.memref_slice %arg6[%c0_i32_238] : memref<2x!tpu.dma_semaphore, #tpu.memory_space<semaphore_mem>> -> memref<1x!tpu.dma_semaphore, #tpu.memory_space<semaphore_mem>>
      %422 = tpu.memref_squeeze %421 : memref<1x!tpu.dma_semaphore, #tpu.memory_space<semaphore_mem>> -> memref<!tpu.dma_semaphore, #tpu.memory_space<semaphore_mem>>
      tpu.enqueue_dma source(%418 : memref<1x128xf32, #tpu.memory_space<any>>) target(%420 : memref<1x128xf32, #tpu.memory_space<vmem>>) target_semaphore(%422 : memref<!tpu.dma_semaphore, #tpu.memory_space<semaphore_mem>>)
      %423 = arith.index_cast %arg0 : i32 to index
      %c26 = arith.constant 26 : index
      %424 = memref.load %arg2[%423, %c26] : memref<2x128xi32, #tpu.memory_space<smem>>
      %c0_i32_242 = arith.constant 0 : i32
      %c0_i32_243 = arith.constant 0 : i32
      %c0_i32_244 = arith.constant 0 : i32
      %425 = tpu.memref_slice %arg3[%arg0, %424, %c0_i32_244] : memref<2x256x128xf32, #tpu.memory_space<any>> -> memref<1x1x128xf32, #tpu.memory_space<any>>
      %426 = tpu.memref_squeeze %425 : memref<1x1x128xf32, #tpu.memory_space<any>> -> memref<1x128xf32, #tpu.memory_space<any>>
      %c26_i32_245 = arith.constant 26 : i32
      %c0_i32_246 = arith.constant 0 : i32
      %427 = tpu.memref_slice %arg5[%c0_i32_242, %c26_i32_245, %c0_i32_246] : memref<2x32x128xf32, #tpu.memory_space<vmem>> -> memref<1x1x128xf32, #tpu.memory_space<vmem>>
      %428 = tpu.memref_squeeze %427 : memref<1x1x128xf32, #tpu.memory_space<vmem>> -> memref<1x128xf32, #tpu.memory_space<vmem>>
      %429 = tpu.memref_slice %arg6[%c0_i32_243] : memref<2x!tpu.dma_semaphore, #tpu.memory_space<semaphore_mem>> -> memref<1x!tpu.dma_semaphore, #tpu.memory_space<semaphore_mem>>
      %430 = tpu.memref_squeeze %429 : memref<1x!tpu.dma_semaphore, #tpu.memory_space<semaphore_mem>> -> memref<!tpu.dma_semaphore, #tpu.memory_space<semaphore_mem>>
      tpu.enqueue_dma source(%426 : memref<1x128xf32, #tpu.memory_space<any>>) target(%428 : memref<1x128xf32, #tpu.memory_space<vmem>>) target_semaphore(%430 : memref<!tpu.dma_semaphore, #tpu.memory_space<semaphore_mem>>)
      %431 = arith.index_cast %arg0 : i32 to index
      %c27 = arith.constant 27 : index
      %432 = memref.load %arg2[%431, %c27] : memref<2x128xi32, #tpu.memory_space<smem>>
      %c0_i32_247 = arith.constant 0 : i32
      %c0_i32_248 = arith.constant 0 : i32
      %c0_i32_249 = arith.constant 0 : i32
      %433 = tpu.memref_slice %arg3[%arg0, %432, %c0_i32_249] : memref<2x256x128xf32, #tpu.memory_space<any>> -> memref<1x1x128xf32, #tpu.memory_space<any>>
      %434 = tpu.memref_squeeze %433 : memref<1x1x128xf32, #tpu.memory_space<any>> -> memref<1x128xf32, #tpu.memory_space<any>>
      %c27_i32_250 = arith.constant 27 : i32
      %c0_i32_251 = arith.constant 0 : i32
      %435 = tpu.memref_slice %arg5[%c0_i32_247, %c27_i32_250, %c0_i32_251] : memref<2x32x128xf32, #tpu.memory_space<vmem>> -> memref<1x1x128xf32, #tpu.memory_space<vmem>>
      %436 = tpu.memref_squeeze %435 : memref<1x1x128xf32, #tpu.memory_space<vmem>> -> memref<1x128xf32, #tpu.memory_space<vmem>>
      %437 = tpu.memref_slice %arg6[%c0_i32_248] : memref<2x!tpu.dma_semaphore, #tpu.memory_space<semaphore_mem>> -> memref<1x!tpu.dma_semaphore, #tpu.memory_space<semaphore_mem>>
      %438 = tpu.memref_squeeze %437 : memref<1x!tpu.dma_semaphore, #tpu.memory_space<semaphore_mem>> -> memref<!tpu.dma_semaphore, #tpu.memory_space<semaphore_mem>>
      tpu.enqueue_dma source(%434 : memref<1x128xf32, #tpu.memory_space<any>>) target(%436 : memref<1x128xf32, #tpu.memory_space<vmem>>) target_semaphore(%438 : memref<!tpu.dma_semaphore, #tpu.memory_space<semaphore_mem>>)
      %439 = arith.index_cast %arg0 : i32 to index
      %c28 = arith.constant 28 : index
      %440 = memref.load %arg2[%439, %c28] : memref<2x128xi32, #tpu.memory_space<smem>>
      %c0_i32_252 = arith.constant 0 : i32
      %c0_i32_253 = arith.constant 0 : i32
      %c0_i32_254 = arith.constant 0 : i32
      %441 = tpu.memref_slice %arg3[%arg0, %440, %c0_i32_254] : memref<2x256x128xf32, #tpu.memory_space<any>> -> memref<1x1x128xf32, #tpu.memory_space<any>>
      %442 = tpu.memref_squeeze %441 : memref<1x1x128xf32, #tpu.memory_space<any>> -> memref<1x128xf32, #tpu.memory_space<any>>
      %c28_i32_255 = arith.constant 28 : i32
      %c0_i32_256 = arith.constant 0 : i32
      %443 = tpu.memref_slice %arg5[%c0_i32_252, %c28_i32_255, %c0_i32_256] : memref<2x32x128xf32, #tpu.memory_space<vmem>> -> memref<1x1x128xf32, #tpu.memory_space<vmem>>
      %444 = tpu.memref_squeeze %443 : memref<1x1x128xf32, #tpu.memory_space<vmem>> -> memref<1x128xf32, #tpu.memory_space<vmem>>
      %445 = tpu.memref_slice %arg6[%c0_i32_253] : memref<2x!tpu.dma_semaphore, #tpu.memory_space<semaphore_mem>> -> memref<1x!tpu.dma_semaphore, #tpu.memory_space<semaphore_mem>>
      %446 = tpu.memref_squeeze %445 : memref<1x!tpu.dma_semaphore, #tpu.memory_space<semaphore_mem>> -> memref<!tpu.dma_semaphore, #tpu.memory_space<semaphore_mem>>
      tpu.enqueue_dma source(%442 : memref<1x128xf32, #tpu.memory_space<any>>) target(%444 : memref<1x128xf32, #tpu.memory_space<vmem>>) target_semaphore(%446 : memref<!tpu.dma_semaphore, #tpu.memory_space<semaphore_mem>>)
      %447 = arith.index_cast %arg0 : i32 to index
      %c29 = arith.constant 29 : index
      %448 = memref.load %arg2[%447, %c29] : memref<2x128xi32, #tpu.memory_space<smem>>
      %c0_i32_257 = arith.constant 0 : i32
      %c0_i32_258 = arith.constant 0 : i32
      %c0_i32_259 = arith.constant 0 : i32
      %449 = tpu.memref_slice %arg3[%arg0, %448, %c0_i32_259] : memref<2x256x128xf32, #tpu.memory_space<any>> -> memref<1x1x128xf32, #tpu.memory_space<any>>
      %450 = tpu.memref_squeeze %449 : memref<1x1x128xf32, #tpu.memory_space<any>> -> memref<1x128xf32, #tpu.memory_space<any>>
      %c29_i32_260 = arith.constant 29 : i32
      %c0_i32_261 = arith.constant 0 : i32
      %451 = tpu.memref_slice %arg5[%c0_i32_257, %c29_i32_260, %c0_i32_261] : memref<2x32x128xf32, #tpu.memory_space<vmem>> -> memref<1x1x128xf32, #tpu.memory_space<vmem>>
      %452 = tpu.memref_squeeze %451 : memref<1x1x128xf32, #tpu.memory_space<vmem>> -> memref<1x128xf32, #tpu.memory_space<vmem>>
      %453 = tpu.memref_slice %arg6[%c0_i32_258] : memref<2x!tpu.dma_semaphore, #tpu.memory_space<semaphore_mem>> -> memref<1x!tpu.dma_semaphore, #tpu.memory_space<semaphore_mem>>
      %454 = tpu.memref_squeeze %453 : memref<1x!tpu.dma_semaphore, #tpu.memory_space<semaphore_mem>> -> memref<!tpu.dma_semaphore, #tpu.memory_space<semaphore_mem>>
      tpu.enqueue_dma source(%450 : memref<1x128xf32, #tpu.memory_space<any>>) target(%452 : memref<1x128xf32, #tpu.memory_space<vmem>>) target_semaphore(%454 : memref<!tpu.dma_semaphore, #tpu.memory_space<semaphore_mem>>)
      %455 = arith.index_cast %arg0 : i32 to index
      %c30 = arith.constant 30 : index
      %456 = memref.load %arg2[%455, %c30] : memref<2x128xi32, #tpu.memory_space<smem>>
      %c0_i32_262 = arith.constant 0 : i32
      %c0_i32_263 = arith.constant 0 : i32
      %c0_i32_264 = arith.constant 0 : i32
      %457 = tpu.memref_slice %arg3[%arg0, %456, %c0_i32_264] : memref<2x256x128xf32, #tpu.memory_space<any>> -> memref<1x1x128xf32, #tpu.memory_space<any>>
      %458 = tpu.memref_squeeze %457 : memref<1x1x128xf32, #tpu.memory_space<any>> -> memref<1x128xf32, #tpu.memory_space<any>>
      %c30_i32_265 = arith.constant 30 : i32
      %c0_i32_266 = arith.constant 0 : i32
      %459 = tpu.memref_slice %arg5[%c0_i32_262, %c30_i32_265, %c0_i32_266] : memref<2x32x128xf32, #tpu.memory_space<vmem>> -> memref<1x1x128xf32, #tpu.memory_space<vmem>>
      %460 = tpu.memref_squeeze %459 : memref<1x1x128xf32, #tpu.memory_space<vmem>> -> memref<1x128xf32, #tpu.memory_space<vmem>>
      %461 = tpu.memref_slice %arg6[%c0_i32_263] : memref<2x!tpu.dma_semaphore, #tpu.memory_space<semaphore_mem>> -> memref<1x!tpu.dma_semaphore, #tpu.memory_space<semaphore_mem>>
      %462 = tpu.memref_squeeze %461 : memref<1x!tpu.dma_semaphore, #tpu.memory_space<semaphore_mem>> -> memref<!tpu.dma_semaphore, #tpu.memory_space<semaphore_mem>>
      tpu.enqueue_dma source(%458 : memref<1x128xf32, #tpu.memory_space<any>>) target(%460 : memref<1x128xf32, #tpu.memory_space<vmem>>) target_semaphore(%462 : memref<!tpu.dma_semaphore, #tpu.memory_space<semaphore_mem>>)
      %463 = arith.index_cast %arg0 : i32 to index
      %c31 = arith.constant 31 : index
      %464 = memref.load %arg2[%463, %c31] : memref<2x128xi32, #tpu.memory_space<smem>>
      %c0_i32_267 = arith.constant 0 : i32
      %c0_i32_268 = arith.constant 0 : i32
      %c0_i32_269 = arith.constant 0 : i32
      %465 = tpu.memref_slice %arg3[%arg0, %464, %c0_i32_269] : memref<2x256x128xf32, #tpu.memory_space<any>> -> memref<1x1x128xf32, #tpu.memory_space<any>>
      %466 = tpu.memref_squeeze %465 : memref<1x1x128xf32, #tpu.memory_space<any>> -> memref<1x128xf32, #tpu.memory_space<any>>
      %c31_i32_270 = arith.constant 31 : i32
      %c0_i32_271 = arith.constant 0 : i32
      %467 = tpu.memref_slice %arg5[%c0_i32_267, %c31_i32_270, %c0_i32_271] : memref<2x32x128xf32, #tpu.memory_space<vmem>> -> memref<1x1x128xf32, #tpu.memory_space<vmem>>
      %468 = tpu.memref_squeeze %467 : memref<1x1x128xf32, #tpu.memory_space<vmem>> -> memref<1x128xf32, #tpu.memory_space<vmem>>
      %469 = tpu.memref_slice %arg6[%c0_i32_268] : memref<2x!tpu.dma_semaphore, #tpu.memory_space<semaphore_mem>> -> memref<1x!tpu.dma_semaphore, #tpu.memory_space<semaphore_mem>>
      %470 = tpu.memref_squeeze %469 : memref<1x!tpu.dma_semaphore, #tpu.memory_space<semaphore_mem>> -> memref<!tpu.dma_semaphore, #tpu.memory_space<semaphore_mem>>
      tpu.enqueue_dma source(%466 : memref<1x128xf32, #tpu.memory_space<any>>) target(%468 : memref<1x128xf32, #tpu.memory_space<vmem>>) target_semaphore(%470 : memref<!tpu.dma_semaphore, #tpu.memory_space<semaphore_mem>>)
    } else {
    }
    %c1_i32_5 = arith.constant 1 : i32
    %13 = arith.addi %arg1, %c1_i32_5 : i32
    %c4_i32 = arith.constant 4 : i32
    %14 = arith.cmpi slt, %13, %c4_i32 : i32
    %15 = arith.extui %14 : i1 to i32
    %c0_i32_6 = arith.constant 0 : i32
    %16 = arith.cmpi ne, %15, %c0_i32_6 : i32
    scf.if %16 {
      %c1_i32_111 = arith.constant 1 : i32
      %215 = arith.addi %arg1, %c1_i32_111 : i32
      %c1_i32_112 = arith.constant 1 : i32
      %216 = arith.subi %c1_i32_112, %9 : i32
      %c32_i32 = arith.constant 32 : i32
      %217 = arith.muli %215, %c32_i32 : i32
      %c0_i32_113 = arith.constant 0 : i32
      %218 = arith.addi %217, %c0_i32_113 : i32
      %219 = arith.index_cast %arg0 : i32 to index
      %220 = arith.index_cast %218 : i32 to index
      %221 = memref.load %arg2[%219, %220] : memref<2x128xi32, #tpu.memory_space<smem>>
      %c0_i32_114 = arith.constant 0 : i32
      %222 = tpu.memref_slice %arg3[%arg0, %221, %c0_i32_114] : memref<2x256x128xf32, #tpu.memory_space<any>> -> memref<1x1x128xf32, #tpu.memory_space<any>>
      %223 = tpu.memref_squeeze %222 : memref<1x1x128xf32, #tpu.memory_space<any>> -> memref<1x128xf32, #tpu.memory_space<any>>
      %c0_i32_115 = arith.constant 0 : i32
      %c0_i32_116 = arith.constant 0 : i32
      %224 = tpu.memref_slice %arg5[%216, %c0_i32_115, %c0_i32_116] : memref<2x32x128xf32, #tpu.memory_space<vmem>> -> memref<1x1x128xf32, #tpu.memory_space<vmem>>
      %225 = tpu.memref_squeeze %224 : memref<1x1x128xf32, #tpu.memory_space<vmem>> -> memref<1x128xf32, #tpu.memory_space<vmem>>
      %226 = tpu.memref_slice %arg6[%216] : memref<2x!tpu.dma_semaphore, #tpu.memory_space<semaphore_mem>> -> memref<1x!tpu.dma_semaphore, #tpu.memory_space<semaphore_mem>>
      %227 = tpu.memref_squeeze %226 : memref<1x!tpu.dma_semaphore, #tpu.memory_space<semaphore_mem>> -> memref<!tpu.dma_semaphore, #tpu.memory_space<semaphore_mem>>
      tpu.enqueue_dma source(%223 : memref<1x128xf32, #tpu.memory_space<any>>) target(%225 : memref<1x128xf32, #tpu.memory_space<vmem>>) target_semaphore(%227 : memref<!tpu.dma_semaphore, #tpu.memory_space<semaphore_mem>>)
      %c1_i32_117 = arith.constant 1 : i32
      %228 = arith.addi %217, %c1_i32_117 : i32
      %229 = arith.index_cast %arg0 : i32 to index
      %230 = arith.index_cast %228 : i32 to index
      %231 = memref.load %arg2[%229, %230] : memref<2x128xi32, #tpu.memory_space<smem>>
      %c0_i32_118 = arith.constant 0 : i32
      %232 = tpu.memref_slice %arg3[%arg0, %231, %c0_i32_118] : memref<2x256x128xf32, #tpu.memory_space<any>> -> memref<1x1x128xf32, #tpu.memory_space<any>>
      %233 = tpu.memref_squeeze %232 : memref<1x1x128xf32, #tpu.memory_space<any>> -> memref<1x128xf32, #tpu.memory_space<any>>
      %c1_i32_119 = arith.constant 1 : i32
      %c0_i32_120 = arith.constant 0 : i32
      %234 = tpu.memref_slice %arg5[%216, %c1_i32_119, %c0_i32_120] : memref<2x32x128xf32, #tpu.memory_space<vmem>> -> memref<1x1x128xf32, #tpu.memory_space<vmem>>
      %235 = tpu.memref_squeeze %234 : memref<1x1x128xf32, #tpu.memory_space<vmem>> -> memref<1x128xf32, #tpu.memory_space<vmem>>
      %236 = tpu.memref_slice %arg6[%216] : memref<2x!tpu.dma_semaphore, #tpu.memory_space<semaphore_mem>> -> memref<1x!tpu.dma_semaphore, #tpu.memory_space<semaphore_mem>>
      %237 = tpu.memref_squeeze %236 : memref<1x!tpu.dma_semaphore, #tpu.memory_space<semaphore_mem>> -> memref<!tpu.dma_semaphore, #tpu.memory_space<semaphore_mem>>
      tpu.enqueue_dma source(%233 : memref<1x128xf32, #tpu.memory_space<any>>) target(%235 : memref<1x128xf32, #tpu.memory_space<vmem>>) target_semaphore(%237 : memref<!tpu.dma_semaphore, #tpu.memory_space<semaphore_mem>>)
      %c2_i32_121 = arith.constant 2 : i32
      %238 = arith.addi %217, %c2_i32_121 : i32
      %239 = arith.index_cast %arg0 : i32 to index
      %240 = arith.index_cast %238 : i32 to index
      %241 = memref.load %arg2[%239, %240] : memref<2x128xi32, #tpu.memory_space<smem>>
      %c0_i32_122 = arith.constant 0 : i32
      %242 = tpu.memref_slice %arg3[%arg0, %241, %c0_i32_122] : memref<2x256x128xf32, #tpu.memory_space<any>> -> memref<1x1x128xf32, #tpu.memory_space<any>>
      %243 = tpu.memref_squeeze %242 : memref<1x1x128xf32, #tpu.memory_space<any>> -> memref<1x128xf32, #tpu.memory_space<any>>
      %c2_i32_123 = arith.constant 2 : i32
      %c0_i32_124 = arith.constant 0 : i32
      %244 = tpu.memref_slice %arg5[%216, %c2_i32_123, %c0_i32_124] : memref<2x32x128xf32, #tpu.memory_space<vmem>> -> memref<1x1x128xf32, #tpu.memory_space<vmem>>
      %245 = tpu.memref_squeeze %244 : memref<1x1x128xf32, #tpu.memory_space<vmem>> -> memref<1x128xf32, #tpu.memory_space<vmem>>
      %246 = tpu.memref_slice %arg6[%216] : memref<2x!tpu.dma_semaphore, #tpu.memory_space<semaphore_mem>> -> memref<1x!tpu.dma_semaphore, #tpu.memory_space<semaphore_mem>>
      %247 = tpu.memref_squeeze %246 : memref<1x!tpu.dma_semaphore, #tpu.memory_space<semaphore_mem>> -> memref<!tpu.dma_semaphore, #tpu.memory_space<semaphore_mem>>
      tpu.enqueue_dma source(%243 : memref<1x128xf32, #tpu.memory_space<any>>) target(%245 : memref<1x128xf32, #tpu.memory_space<vmem>>) target_semaphore(%247 : memref<!tpu.dma_semaphore, #tpu.memory_space<semaphore_mem>>)
      %c3_i32_125 = arith.constant 3 : i32
      %248 = arith.addi %217, %c3_i32_125 : i32
      %249 = arith.index_cast %arg0 : i32 to index
      %250 = arith.index_cast %248 : i32 to index
      %251 = memref.load %arg2[%249, %250] : memref<2x128xi32, #tpu.memory_space<smem>>
      %c0_i32_126 = arith.constant 0 : i32
      %252 = tpu.memref_slice %arg3[%arg0, %251, %c0_i32_126] : memref<2x256x128xf32, #tpu.memory_space<any>> -> memref<1x1x128xf32, #tpu.memory_space<any>>
      %253 = tpu.memref_squeeze %252 : memref<1x1x128xf32, #tpu.memory_space<any>> -> memref<1x128xf32, #tpu.memory_space<any>>
      %c3_i32_127 = arith.constant 3 : i32
      %c0_i32_128 = arith.constant 0 : i32
      %254 = tpu.memref_slice %arg5[%216, %c3_i32_127, %c0_i32_128] : memref<2x32x128xf32, #tpu.memory_space<vmem>> -> memref<1x1x128xf32, #tpu.memory_space<vmem>>
      %255 = tpu.memref_squeeze %254 : memref<1x1x128xf32, #tpu.memory_space<vmem>> -> memref<1x128xf32, #tpu.memory_space<vmem>>
      %256 = tpu.memref_slice %arg6[%216] : memref<2x!tpu.dma_semaphore, #tpu.memory_space<semaphore_mem>> -> memref<1x!tpu.dma_semaphore, #tpu.memory_space<semaphore_mem>>
      %257 = tpu.memref_squeeze %256 : memref<1x!tpu.dma_semaphore, #tpu.memory_space<semaphore_mem>> -> memref<!tpu.dma_semaphore, #tpu.memory_space<semaphore_mem>>
      tpu.enqueue_dma source(%253 : memref<1x128xf32, #tpu.memory_space<any>>) target(%255 : memref<1x128xf32, #tpu.memory_space<vmem>>) target_semaphore(%257 : memref<!tpu.dma_semaphore, #tpu.memory_space<semaphore_mem>>)
      %c4_i32_129 = arith.constant 4 : i32
      %258 = arith.addi %217, %c4_i32_129 : i32
      %259 = arith.index_cast %arg0 : i32 to index
      %260 = arith.index_cast %258 : i32 to index
      %261 = memref.load %arg2[%259, %260] : memref<2x128xi32, #tpu.memory_space<smem>>
      %c0_i32_130 = arith.constant 0 : i32
      %262 = tpu.memref_slice %arg3[%arg0, %261, %c0_i32_130] : memref<2x256x128xf32, #tpu.memory_space<any>> -> memref<1x1x128xf32, #tpu.memory_space<any>>
      %263 = tpu.memref_squeeze %262 : memref<1x1x128xf32, #tpu.memory_space<any>> -> memref<1x128xf32, #tpu.memory_space<any>>
      %c4_i32_131 = arith.constant 4 : i32
      %c0_i32_132 = arith.constant 0 : i32
      %264 = tpu.memref_slice %arg5[%216, %c4_i32_131, %c0_i32_132] : memref<2x32x128xf32, #tpu.memory_space<vmem>> -> memref<1x1x128xf32, #tpu.memory_space<vmem>>
      %265 = tpu.memref_squeeze %264 : memref<1x1x128xf32, #tpu.memory_space<vmem>> -> memref<1x128xf32, #tpu.memory_space<vmem>>
      %266 = tpu.memref_slice %arg6[%216] : memref<2x!tpu.dma_semaphore, #tpu.memory_space<semaphore_mem>> -> memref<1x!tpu.dma_semaphore, #tpu.memory_space<semaphore_mem>>
      %267 = tpu.memref_squeeze %266 : memref<1x!tpu.dma_semaphore, #tpu.memory_space<semaphore_mem>> -> memref<!tpu.dma_semaphore, #tpu.memory_space<semaphore_mem>>
      tpu.enqueue_dma source(%263 : memref<1x128xf32, #tpu.memory_space<any>>) target(%265 : memref<1x128xf32, #tpu.memory_space<vmem>>) target_semaphore(%267 : memref<!tpu.dma_semaphore, #tpu.memory_space<semaphore_mem>>)
      %c5_i32_133 = arith.constant 5 : i32
      %268 = arith.addi %217, %c5_i32_133 : i32
      %269 = arith.index_cast %arg0 : i32 to index
      %270 = arith.index_cast %268 : i32 to index
      %271 = memref.load %arg2[%269, %270] : memref<2x128xi32, #tpu.memory_space<smem>>
      %c0_i32_134 = arith.constant 0 : i32
      %272 = tpu.memref_slice %arg3[%arg0, %271, %c0_i32_134] : memref<2x256x128xf32, #tpu.memory_space<any>> -> memref<1x1x128xf32, #tpu.memory_space<any>>
      %273 = tpu.memref_squeeze %272 : memref<1x1x128xf32, #tpu.memory_space<any>> -> memref<1x128xf32, #tpu.memory_space<any>>
      %c5_i32_135 = arith.constant 5 : i32
      %c0_i32_136 = arith.constant 0 : i32
      %274 = tpu.memref_slice %arg5[%216, %c5_i32_135, %c0_i32_136] : memref<2x32x128xf32, #tpu.memory_space<vmem>> -> memref<1x1x128xf32, #tpu.memory_space<vmem>>
      %275 = tpu.memref_squeeze %274 : memref<1x1x128xf32, #tpu.memory_space<vmem>> -> memref<1x128xf32, #tpu.memory_space<vmem>>
      %276 = tpu.memref_slice %arg6[%216] : memref<2x!tpu.dma_semaphore, #tpu.memory_space<semaphore_mem>> -> memref<1x!tpu.dma_semaphore, #tpu.memory_space<semaphore_mem>>
      %277 = tpu.memref_squeeze %276 : memref<1x!tpu.dma_semaphore, #tpu.memory_space<semaphore_mem>> -> memref<!tpu.dma_semaphore, #tpu.memory_space<semaphore_mem>>
      tpu.enqueue_dma source(%273 : memref<1x128xf32, #tpu.memory_space<any>>) target(%275 : memref<1x128xf32, #tpu.memory_space<vmem>>) target_semaphore(%277 : memref<!tpu.dma_semaphore, #tpu.memory_space<semaphore_mem>>)
      %c6_i32_137 = arith.constant 6 : i32
      %278 = arith.addi %217, %c6_i32_137 : i32
      %279 = arith.index_cast %arg0 : i32 to index
      %280 = arith.index_cast %278 : i32 to index
      %281 = memref.load %arg2[%279, %280] : memref<2x128xi32, #tpu.memory_space<smem>>
      %c0_i32_138 = arith.constant 0 : i32
      %282 = tpu.memref_slice %arg3[%arg0, %281, %c0_i32_138] : memref<2x256x128xf32, #tpu.memory_space<any>> -> memref<1x1x128xf32, #tpu.memory_space<any>>
      %283 = tpu.memref_squeeze %282 : memref<1x1x128xf32, #tpu.memory_space<any>> -> memref<1x128xf32, #tpu.memory_space<any>>
      %c6_i32_139 = arith.constant 6 : i32
      %c0_i32_140 = arith.constant 0 : i32
      %284 = tpu.memref_slice %arg5[%216, %c6_i32_139, %c0_i32_140] : memref<2x32x128xf32, #tpu.memory_space<vmem>> -> memref<1x1x128xf32, #tpu.memory_space<vmem>>
      %285 = tpu.memref_squeeze %284 : memref<1x1x128xf32, #tpu.memory_space<vmem>> -> memref<1x128xf32, #tpu.memory_space<vmem>>
      %286 = tpu.memref_slice %arg6[%216] : memref<2x!tpu.dma_semaphore, #tpu.memory_space<semaphore_mem>> -> memref<1x!tpu.dma_semaphore, #tpu.memory_space<semaphore_mem>>
      %287 = tpu.memref_squeeze %286 : memref<1x!tpu.dma_semaphore, #tpu.memory_space<semaphore_mem>> -> memref<!tpu.dma_semaphore, #tpu.memory_space<semaphore_mem>>
      tpu.enqueue_dma source(%283 : memref<1x128xf32, #tpu.memory_space<any>>) target(%285 : memref<1x128xf32, #tpu.memory_space<vmem>>) target_semaphore(%287 : memref<!tpu.dma_semaphore, #tpu.memory_space<semaphore_mem>>)
      %c7_i32_141 = arith.constant 7 : i32
      %288 = arith.addi %217, %c7_i32_141 : i32
      %289 = arith.index_cast %arg0 : i32 to index
      %290 = arith.index_cast %288 : i32 to index
      %291 = memref.load %arg2[%289, %290] : memref<2x128xi32, #tpu.memory_space<smem>>
      %c0_i32_142 = arith.constant 0 : i32
      %292 = tpu.memref_slice %arg3[%arg0, %291, %c0_i32_142] : memref<2x256x128xf32, #tpu.memory_space<any>> -> memref<1x1x128xf32, #tpu.memory_space<any>>
      %293 = tpu.memref_squeeze %292 : memref<1x1x128xf32, #tpu.memory_space<any>> -> memref<1x128xf32, #tpu.memory_space<any>>
      %c7_i32_143 = arith.constant 7 : i32
      %c0_i32_144 = arith.constant 0 : i32
      %294 = tpu.memref_slice %arg5[%216, %c7_i32_143, %c0_i32_144] : memref<2x32x128xf32, #tpu.memory_space<vmem>> -> memref<1x1x128xf32, #tpu.memory_space<vmem>>
      %295 = tpu.memref_squeeze %294 : memref<1x1x128xf32, #tpu.memory_space<vmem>> -> memref<1x128xf32, #tpu.memory_space<vmem>>
      %296 = tpu.memref_slice %arg6[%216] : memref<2x!tpu.dma_semaphore, #tpu.memory_space<semaphore_mem>> -> memref<1x!tpu.dma_semaphore, #tpu.memory_space<semaphore_mem>>
      %297 = tpu.memref_squeeze %296 : memref<1x!tpu.dma_semaphore, #tpu.memory_space<semaphore_mem>> -> memref<!tpu.dma_semaphore, #tpu.memory_space<semaphore_mem>>
      tpu.enqueue_dma source(%293 : memref<1x128xf32, #tpu.memory_space<any>>) target(%295 : memref<1x128xf32, #tpu.memory_space<vmem>>) target_semaphore(%297 : memref<!tpu.dma_semaphore, #tpu.memory_space<semaphore_mem>>)
      %c8_i32_145 = arith.constant 8 : i32
      %298 = arith.addi %217, %c8_i32_145 : i32
      %299 = arith.index_cast %arg0 : i32 to index
      %300 = arith.index_cast %298 : i32 to index
      %301 = memref.load %arg2[%299, %300] : memref<2x128xi32, #tpu.memory_space<smem>>
      %c0_i32_146 = arith.constant 0 : i32
      %302 = tpu.memref_slice %arg3[%arg0, %301, %c0_i32_146] : memref<2x256x128xf32, #tpu.memory_space<any>> -> memref<1x1x128xf32, #tpu.memory_space<any>>
      %303 = tpu.memref_squeeze %302 : memref<1x1x128xf32, #tpu.memory_space<any>> -> memref<1x128xf32, #tpu.memory_space<any>>
      %c8_i32_147 = arith.constant 8 : i32
      %c0_i32_148 = arith.constant 0 : i32
      %304 = tpu.memref_slice %arg5[%216, %c8_i32_147, %c0_i32_148] : memref<2x32x128xf32, #tpu.memory_space<vmem>> -> memref<1x1x128xf32, #tpu.memory_space<vmem>>
      %305 = tpu.memref_squeeze %304 : memref<1x1x128xf32, #tpu.memory_space<vmem>> -> memref<1x128xf32, #tpu.memory_space<vmem>>
      %306 = tpu.memref_slice %arg6[%216] : memref<2x!tpu.dma_semaphore, #tpu.memory_space<semaphore_mem>> -> memref<1x!tpu.dma_semaphore, #tpu.memory_space<semaphore_mem>>
      %307 = tpu.memref_squeeze %306 : memref<1x!tpu.dma_semaphore, #tpu.memory_space<semaphore_mem>> -> memref<!tpu.dma_semaphore, #tpu.memory_space<semaphore_mem>>
      tpu.enqueue_dma source(%303 : memref<1x128xf32, #tpu.memory_space<any>>) target(%305 : memref<1x128xf32, #tpu.memory_space<vmem>>) target_semaphore(%307 : memref<!tpu.dma_semaphore, #tpu.memory_space<semaphore_mem>>)
      %c9_i32_149 = arith.constant 9 : i32
      %308 = arith.addi %217, %c9_i32_149 : i32
      %309 = arith.index_cast %arg0 : i32 to index
      %310 = arith.index_cast %308 : i32 to index
      %311 = memref.load %arg2[%309, %310] : memref<2x128xi32, #tpu.memory_space<smem>>
      %c0_i32_150 = arith.constant 0 : i32
      %312 = tpu.memref_slice %arg3[%arg0, %311, %c0_i32_150] : memref<2x256x128xf32, #tpu.memory_space<any>> -> memref<1x1x128xf32, #tpu.memory_space<any>>
      %313 = tpu.memref_squeeze %312 : memref<1x1x128xf32, #tpu.memory_space<any>> -> memref<1x128xf32, #tpu.memory_space<any>>
      %c9_i32_151 = arith.constant 9 : i32
      %c0_i32_152 = arith.constant 0 : i32
      %314 = tpu.memref_slice %arg5[%216, %c9_i32_151, %c0_i32_152] : memref<2x32x128xf32, #tpu.memory_space<vmem>> -> memref<1x1x128xf32, #tpu.memory_space<vmem>>
      %315 = tpu.memref_squeeze %314 : memref<1x1x128xf32, #tpu.memory_space<vmem>> -> memref<1x128xf32, #tpu.memory_space<vmem>>
      %316 = tpu.memref_slice %arg6[%216] : memref<2x!tpu.dma_semaphore, #tpu.memory_space<semaphore_mem>> -> memref<1x!tpu.dma_semaphore, #tpu.memory_space<semaphore_mem>>
      %317 = tpu.memref_squeeze %316 : memref<1x!tpu.dma_semaphore, #tpu.memory_space<semaphore_mem>> -> memref<!tpu.dma_semaphore, #tpu.memory_space<semaphore_mem>>
      tpu.enqueue_dma source(%313 : memref<1x128xf32, #tpu.memory_space<any>>) target(%315 : memref<1x128xf32, #tpu.memory_space<vmem>>) target_semaphore(%317 : memref<!tpu.dma_semaphore, #tpu.memory_space<semaphore_mem>>)
      %c10_i32_153 = arith.constant 10 : i32
      %318 = arith.addi %217, %c10_i32_153 : i32
      %319 = arith.index_cast %arg0 : i32 to index
      %320 = arith.index_cast %318 : i32 to index
      %321 = memref.load %arg2[%319, %320] : memref<2x128xi32, #tpu.memory_space<smem>>
      %c0_i32_154 = arith.constant 0 : i32
      %322 = tpu.memref_slice %arg3[%arg0, %321, %c0_i32_154] : memref<2x256x128xf32, #tpu.memory_space<any>> -> memref<1x1x128xf32, #tpu.memory_space<any>>
      %323 = tpu.memref_squeeze %322 : memref<1x1x128xf32, #tpu.memory_space<any>> -> memref<1x128xf32, #tpu.memory_space<any>>
      %c10_i32_155 = arith.constant 10 : i32
      %c0_i32_156 = arith.constant 0 : i32
      %324 = tpu.memref_slice %arg5[%216, %c10_i32_155, %c0_i32_156] : memref<2x32x128xf32, #tpu.memory_space<vmem>> -> memref<1x1x128xf32, #tpu.memory_space<vmem>>
      %325 = tpu.memref_squeeze %324 : memref<1x1x128xf32, #tpu.memory_space<vmem>> -> memref<1x128xf32, #tpu.memory_space<vmem>>
      %326 = tpu.memref_slice %arg6[%216] : memref<2x!tpu.dma_semaphore, #tpu.memory_space<semaphore_mem>> -> memref<1x!tpu.dma_semaphore, #tpu.memory_space<semaphore_mem>>
      %327 = tpu.memref_squeeze %326 : memref<1x!tpu.dma_semaphore, #tpu.memory_space<semaphore_mem>> -> memref<!tpu.dma_semaphore, #tpu.memory_space<semaphore_mem>>
      tpu.enqueue_dma source(%323 : memref<1x128xf32, #tpu.memory_space<any>>) target(%325 : memref<1x128xf32, #tpu.memory_space<vmem>>) target_semaphore(%327 : memref<!tpu.dma_semaphore, #tpu.memory_space<semaphore_mem>>)
      %c11_i32_157 = arith.constant 11 : i32
      %328 = arith.addi %217, %c11_i32_157 : i32
      %329 = arith.index_cast %arg0 : i32 to index
      %330 = arith.index_cast %328 : i32 to index
      %331 = memref.load %arg2[%329, %330] : memref<2x128xi32, #tpu.memory_space<smem>>
      %c0_i32_158 = arith.constant 0 : i32
      %332 = tpu.memref_slice %arg3[%arg0, %331, %c0_i32_158] : memref<2x256x128xf32, #tpu.memory_space<any>> -> memref<1x1x128xf32, #tpu.memory_space<any>>
      %333 = tpu.memref_squeeze %332 : memref<1x1x128xf32, #tpu.memory_space<any>> -> memref<1x128xf32, #tpu.memory_space<any>>
      %c11_i32_159 = arith.constant 11 : i32
      %c0_i32_160 = arith.constant 0 : i32
      %334 = tpu.memref_slice %arg5[%216, %c11_i32_159, %c0_i32_160] : memref<2x32x128xf32, #tpu.memory_space<vmem>> -> memref<1x1x128xf32, #tpu.memory_space<vmem>>
      %335 = tpu.memref_squeeze %334 : memref<1x1x128xf32, #tpu.memory_space<vmem>> -> memref<1x128xf32, #tpu.memory_space<vmem>>
      %336 = tpu.memref_slice %arg6[%216] : memref<2x!tpu.dma_semaphore, #tpu.memory_space<semaphore_mem>> -> memref<1x!tpu.dma_semaphore, #tpu.memory_space<semaphore_mem>>
      %337 = tpu.memref_squeeze %336 : memref<1x!tpu.dma_semaphore, #tpu.memory_space<semaphore_mem>> -> memref<!tpu.dma_semaphore, #tpu.memory_space<semaphore_mem>>
      tpu.enqueue_dma source(%333 : memref<1x128xf32, #tpu.memory_space<any>>) target(%335 : memref<1x128xf32, #tpu.memory_space<vmem>>) target_semaphore(%337 : memref<!tpu.dma_semaphore, #tpu.memory_space<semaphore_mem>>)
      %c12_i32_161 = arith.constant 12 : i32
      %338 = arith.addi %217, %c12_i32_161 : i32
      %339 = arith.index_cast %arg0 : i32 to index
      %340 = arith.index_cast %338 : i32 to index
      %341 = memref.load %arg2[%339, %340] : memref<2x128xi32, #tpu.memory_space<smem>>
      %c0_i32_162 = arith.constant 0 : i32
      %342 = tpu.memref_slice %arg3[%arg0, %341, %c0_i32_162] : memref<2x256x128xf32, #tpu.memory_space<any>> -> memref<1x1x128xf32, #tpu.memory_space<any>>
      %343 = tpu.memref_squeeze %342 : memref<1x1x128xf32, #tpu.memory_space<any>> -> memref<1x128xf32, #tpu.memory_space<any>>
      %c12_i32_163 = arith.constant 12 : i32
      %c0_i32_164 = arith.constant 0 : i32
      %344 = tpu.memref_slice %arg5[%216, %c12_i32_163, %c0_i32_164] : memref<2x32x128xf32, #tpu.memory_space<vmem>> -> memref<1x1x128xf32, #tpu.memory_space<vmem>>
      %345 = tpu.memref_squeeze %344 : memref<1x1x128xf32, #tpu.memory_space<vmem>> -> memref<1x128xf32, #tpu.memory_space<vmem>>
      %346 = tpu.memref_slice %arg6[%216] : memref<2x!tpu.dma_semaphore, #tpu.memory_space<semaphore_mem>> -> memref<1x!tpu.dma_semaphore, #tpu.memory_space<semaphore_mem>>
      %347 = tpu.memref_squeeze %346 : memref<1x!tpu.dma_semaphore, #tpu.memory_space<semaphore_mem>> -> memref<!tpu.dma_semaphore, #tpu.memory_space<semaphore_mem>>
      tpu.enqueue_dma source(%343 : memref<1x128xf32, #tpu.memory_space<any>>) target(%345 : memref<1x128xf32, #tpu.memory_space<vmem>>) target_semaphore(%347 : memref<!tpu.dma_semaphore, #tpu.memory_space<semaphore_mem>>)
      %c13_i32_165 = arith.constant 13 : i32
      %348 = arith.addi %217, %c13_i32_165 : i32
      %349 = arith.index_cast %arg0 : i32 to index
      %350 = arith.index_cast %348 : i32 to index
      %351 = memref.load %arg2[%349, %350] : memref<2x128xi32, #tpu.memory_space<smem>>
      %c0_i32_166 = arith.constant 0 : i32
      %352 = tpu.memref_slice %arg3[%arg0, %351, %c0_i32_166] : memref<2x256x128xf32, #tpu.memory_space<any>> -> memref<1x1x128xf32, #tpu.memory_space<any>>
      %353 = tpu.memref_squeeze %352 : memref<1x1x128xf32, #tpu.memory_space<any>> -> memref<1x128xf32, #tpu.memory_space<any>>
      %c13_i32_167 = arith.constant 13 : i32
      %c0_i32_168 = arith.constant 0 : i32
      %354 = tpu.memref_slice %arg5[%216, %c13_i32_167, %c0_i32_168] : memref<2x32x128xf32, #tpu.memory_space<vmem>> -> memref<1x1x128xf32, #tpu.memory_space<vmem>>
      %355 = tpu.memref_squeeze %354 : memref<1x1x128xf32, #tpu.memory_space<vmem>> -> memref<1x128xf32, #tpu.memory_space<vmem>>
      %356 = tpu.memref_slice %arg6[%216] : memref<2x!tpu.dma_semaphore, #tpu.memory_space<semaphore_mem>> -> memref<1x!tpu.dma_semaphore, #tpu.memory_space<semaphore_mem>>
      %357 = tpu.memref_squeeze %356 : memref<1x!tpu.dma_semaphore, #tpu.memory_space<semaphore_mem>> -> memref<!tpu.dma_semaphore, #tpu.memory_space<semaphore_mem>>
      tpu.enqueue_dma source(%353 : memref<1x128xf32, #tpu.memory_space<any>>) target(%355 : memref<1x128xf32, #tpu.memory_space<vmem>>) target_semaphore(%357 : memref<!tpu.dma_semaphore, #tpu.memory_space<semaphore_mem>>)
      %c14_i32_169 = arith.constant 14 : i32
      %358 = arith.addi %217, %c14_i32_169 : i32
      %359 = arith.index_cast %arg0 : i32 to index
      %360 = arith.index_cast %358 : i32 to index
      %361 = memref.load %arg2[%359, %360] : memref<2x128xi32, #tpu.memory_space<smem>>
      %c0_i32_170 = arith.constant 0 : i32
      %362 = tpu.memref_slice %arg3[%arg0, %361, %c0_i32_170] : memref<2x256x128xf32, #tpu.memory_space<any>> -> memref<1x1x128xf32, #tpu.memory_space<any>>
      %363 = tpu.memref_squeeze %362 : memref<1x1x128xf32, #tpu.memory_space<any>> -> memref<1x128xf32, #tpu.memory_space<any>>
      %c14_i32_171 = arith.constant 14 : i32
      %c0_i32_172 = arith.constant 0 : i32
      %364 = tpu.memref_slice %arg5[%216, %c14_i32_171, %c0_i32_172] : memref<2x32x128xf32, #tpu.memory_space<vmem>> -> memref<1x1x128xf32, #tpu.memory_space<vmem>>
      %365 = tpu.memref_squeeze %364 : memref<1x1x128xf32, #tpu.memory_space<vmem>> -> memref<1x128xf32, #tpu.memory_space<vmem>>
      %366 = tpu.memref_slice %arg6[%216] : memref<2x!tpu.dma_semaphore, #tpu.memory_space<semaphore_mem>> -> memref<1x!tpu.dma_semaphore, #tpu.memory_space<semaphore_mem>>
      %367 = tpu.memref_squeeze %366 : memref<1x!tpu.dma_semaphore, #tpu.memory_space<semaphore_mem>> -> memref<!tpu.dma_semaphore, #tpu.memory_space<semaphore_mem>>
      tpu.enqueue_dma source(%363 : memref<1x128xf32, #tpu.memory_space<any>>) target(%365 : memref<1x128xf32, #tpu.memory_space<vmem>>) target_semaphore(%367 : memref<!tpu.dma_semaphore, #tpu.memory_space<semaphore_mem>>)
      %c15_i32_173 = arith.constant 15 : i32
      %368 = arith.addi %217, %c15_i32_173 : i32
      %369 = arith.index_cast %arg0 : i32 to index
      %370 = arith.index_cast %368 : i32 to index
      %371 = memref.load %arg2[%369, %370] : memref<2x128xi32, #tpu.memory_space<smem>>
      %c0_i32_174 = arith.constant 0 : i32
      %372 = tpu.memref_slice %arg3[%arg0, %371, %c0_i32_174] : memref<2x256x128xf32, #tpu.memory_space<any>> -> memref<1x1x128xf32, #tpu.memory_space<any>>
      %373 = tpu.memref_squeeze %372 : memref<1x1x128xf32, #tpu.memory_space<any>> -> memref<1x128xf32, #tpu.memory_space<any>>
      %c15_i32_175 = arith.constant 15 : i32
      %c0_i32_176 = arith.constant 0 : i32
      %374 = tpu.memref_slice %arg5[%216, %c15_i32_175, %c0_i32_176] : memref<2x32x128xf32, #tpu.memory_space<vmem>> -> memref<1x1x128xf32, #tpu.memory_space<vmem>>
      %375 = tpu.memref_squeeze %374 : memref<1x1x128xf32, #tpu.memory_space<vmem>> -> memref<1x128xf32, #tpu.memory_space<vmem>>
      %376 = tpu.memref_slice %arg6[%216] : memref<2x!tpu.dma_semaphore, #tpu.memory_space<semaphore_mem>> -> memref<1x!tpu.dma_semaphore, #tpu.memory_space<semaphore_mem>>
      %377 = tpu.memref_squeeze %376 : memref<1x!tpu.dma_semaphore, #tpu.memory_space<semaphore_mem>> -> memref<!tpu.dma_semaphore, #tpu.memory_space<semaphore_mem>>
      tpu.enqueue_dma source(%373 : memref<1x128xf32, #tpu.memory_space<any>>) target(%375 : memref<1x128xf32, #tpu.memory_space<vmem>>) target_semaphore(%377 : memref<!tpu.dma_semaphore, #tpu.memory_space<semaphore_mem>>)
      %c16_i32_177 = arith.constant 16 : i32
      %378 = arith.addi %217, %c16_i32_177 : i32
      %379 = arith.index_cast %arg0 : i32 to index
      %380 = arith.index_cast %378 : i32 to index
      %381 = memref.load %arg2[%379, %380] : memref<2x128xi32, #tpu.memory_space<smem>>
      %c0_i32_178 = arith.constant 0 : i32
      %382 = tpu.memref_slice %arg3[%arg0, %381, %c0_i32_178] : memref<2x256x128xf32, #tpu.memory_space<any>> -> memref<1x1x128xf32, #tpu.memory_space<any>>
      %383 = tpu.memref_squeeze %382 : memref<1x1x128xf32, #tpu.memory_space<any>> -> memref<1x128xf32, #tpu.memory_space<any>>
      %c16_i32_179 = arith.constant 16 : i32
      %c0_i32_180 = arith.constant 0 : i32
      %384 = tpu.memref_slice %arg5[%216, %c16_i32_179, %c0_i32_180] : memref<2x32x128xf32, #tpu.memory_space<vmem>> -> memref<1x1x128xf32, #tpu.memory_space<vmem>>
      %385 = tpu.memref_squeeze %384 : memref<1x1x128xf32, #tpu.memory_space<vmem>> -> memref<1x128xf32, #tpu.memory_space<vmem>>
      %386 = tpu.memref_slice %arg6[%216] : memref<2x!tpu.dma_semaphore, #tpu.memory_space<semaphore_mem>> -> memref<1x!tpu.dma_semaphore, #tpu.memory_space<semaphore_mem>>
      %387 = tpu.memref_squeeze %386 : memref<1x!tpu.dma_semaphore, #tpu.memory_space<semaphore_mem>> -> memref<!tpu.dma_semaphore, #tpu.memory_space<semaphore_mem>>
      tpu.enqueue_dma source(%383 : memref<1x128xf32, #tpu.memory_space<any>>) target(%385 : memref<1x128xf32, #tpu.memory_space<vmem>>) target_semaphore(%387 : memref<!tpu.dma_semaphore, #tpu.memory_space<semaphore_mem>>)
      %c17_i32_181 = arith.constant 17 : i32
      %388 = arith.addi %217, %c17_i32_181 : i32
      %389 = arith.index_cast %arg0 : i32 to index
      %390 = arith.index_cast %388 : i32 to index
      %391 = memref.load %arg2[%389, %390] : memref<2x128xi32, #tpu.memory_space<smem>>
      %c0_i32_182 = arith.constant 0 : i32
      %392 = tpu.memref_slice %arg3[%arg0, %391, %c0_i32_182] : memref<2x256x128xf32, #tpu.memory_space<any>> -> memref<1x1x128xf32, #tpu.memory_space<any>>
      %393 = tpu.memref_squeeze %392 : memref<1x1x128xf32, #tpu.memory_space<any>> -> memref<1x128xf32, #tpu.memory_space<any>>
      %c17_i32_183 = arith.constant 17 : i32
      %c0_i32_184 = arith.constant 0 : i32
      %394 = tpu.memref_slice %arg5[%216, %c17_i32_183, %c0_i32_184] : memref<2x32x128xf32, #tpu.memory_space<vmem>> -> memref<1x1x128xf32, #tpu.memory_space<vmem>>
      %395 = tpu.memref_squeeze %394 : memref<1x1x128xf32, #tpu.memory_space<vmem>> -> memref<1x128xf32, #tpu.memory_space<vmem>>
      %396 = tpu.memref_slice %arg6[%216] : memref<2x!tpu.dma_semaphore, #tpu.memory_space<semaphore_mem>> -> memref<1x!tpu.dma_semaphore, #tpu.memory_space<semaphore_mem>>
      %397 = tpu.memref_squeeze %396 : memref<1x!tpu.dma_semaphore, #tpu.memory_space<semaphore_mem>> -> memref<!tpu.dma_semaphore, #tpu.memory_space<semaphore_mem>>
      tpu.enqueue_dma source(%393 : memref<1x128xf32, #tpu.memory_space<any>>) target(%395 : memref<1x128xf32, #tpu.memory_space<vmem>>) target_semaphore(%397 : memref<!tpu.dma_semaphore, #tpu.memory_space<semaphore_mem>>)
      %c18_i32_185 = arith.constant 18 : i32
      %398 = arith.addi %217, %c18_i32_185 : i32
      %399 = arith.index_cast %arg0 : i32 to index
      %400 = arith.index_cast %398 : i32 to index
      %401 = memref.load %arg2[%399, %400] : memref<2x128xi32, #tpu.memory_space<smem>>
      %c0_i32_186 = arith.constant 0 : i32
      %402 = tpu.memref_slice %arg3[%arg0, %401, %c0_i32_186] : memref<2x256x128xf32, #tpu.memory_space<any>> -> memref<1x1x128xf32, #tpu.memory_space<any>>
      %403 = tpu.memref_squeeze %402 : memref<1x1x128xf32, #tpu.memory_space<any>> -> memref<1x128xf32, #tpu.memory_space<any>>
      %c18_i32_187 = arith.constant 18 : i32
      %c0_i32_188 = arith.constant 0 : i32
      %404 = tpu.memref_slice %arg5[%216, %c18_i32_187, %c0_i32_188] : memref<2x32x128xf32, #tpu.memory_space<vmem>> -> memref<1x1x128xf32, #tpu.memory_space<vmem>>
      %405 = tpu.memref_squeeze %404 : memref<1x1x128xf32, #tpu.memory_space<vmem>> -> memref<1x128xf32, #tpu.memory_space<vmem>>
      %406 = tpu.memref_slice %arg6[%216] : memref<2x!tpu.dma_semaphore, #tpu.memory_space<semaphore_mem>> -> memref<1x!tpu.dma_semaphore, #tpu.memory_space<semaphore_mem>>
      %407 = tpu.memref_squeeze %406 : memref<1x!tpu.dma_semaphore, #tpu.memory_space<semaphore_mem>> -> memref<!tpu.dma_semaphore, #tpu.memory_space<semaphore_mem>>
      tpu.enqueue_dma source(%403 : memref<1x128xf32, #tpu.memory_space<any>>) target(%405 : memref<1x128xf32, #tpu.memory_space<vmem>>) target_semaphore(%407 : memref<!tpu.dma_semaphore, #tpu.memory_space<semaphore_mem>>)
      %c19_i32_189 = arith.constant 19 : i32
      %408 = arith.addi %217, %c19_i32_189 : i32
      %409 = arith.index_cast %arg0 : i32 to index
      %410 = arith.index_cast %408 : i32 to index
      %411 = memref.load %arg2[%409, %410] : memref<2x128xi32, #tpu.memory_space<smem>>
      %c0_i32_190 = arith.constant 0 : i32
      %412 = tpu.memref_slice %arg3[%arg0, %411, %c0_i32_190] : memref<2x256x128xf32, #tpu.memory_space<any>> -> memref<1x1x128xf32, #tpu.memory_space<any>>
      %413 = tpu.memref_squeeze %412 : memref<1x1x128xf32, #tpu.memory_space<any>> -> memref<1x128xf32, #tpu.memory_space<any>>
      %c19_i32_191 = arith.constant 19 : i32
      %c0_i32_192 = arith.constant 0 : i32
      %414 = tpu.memref_slice %arg5[%216, %c19_i32_191, %c0_i32_192] : memref<2x32x128xf32, #tpu.memory_space<vmem>> -> memref<1x1x128xf32, #tpu.memory_space<vmem>>
      %415 = tpu.memref_squeeze %414 : memref<1x1x128xf32, #tpu.memory_space<vmem>> -> memref<1x128xf32, #tpu.memory_space<vmem>>
      %416 = tpu.memref_slice %arg6[%216] : memref<2x!tpu.dma_semaphore, #tpu.memory_space<semaphore_mem>> -> memref<1x!tpu.dma_semaphore, #tpu.memory_space<semaphore_mem>>
      %417 = tpu.memref_squeeze %416 : memref<1x!tpu.dma_semaphore, #tpu.memory_space<semaphore_mem>> -> memref<!tpu.dma_semaphore, #tpu.memory_space<semaphore_mem>>
      tpu.enqueue_dma source(%413 : memref<1x128xf32, #tpu.memory_space<any>>) target(%415 : memref<1x128xf32, #tpu.memory_space<vmem>>) target_semaphore(%417 : memref<!tpu.dma_semaphore, #tpu.memory_space<semaphore_mem>>)
      %c20_i32_193 = arith.constant 20 : i32
      %418 = arith.addi %217, %c20_i32_193 : i32
      %419 = arith.index_cast %arg0 : i32 to index
      %420 = arith.index_cast %418 : i32 to index
      %421 = memref.load %arg2[%419, %420] : memref<2x128xi32, #tpu.memory_space<smem>>
      %c0_i32_194 = arith.constant 0 : i32
      %422 = tpu.memref_slice %arg3[%arg0, %421, %c0_i32_194] : memref<2x256x128xf32, #tpu.memory_space<any>> -> memref<1x1x128xf32, #tpu.memory_space<any>>
      %423 = tpu.memref_squeeze %422 : memref<1x1x128xf32, #tpu.memory_space<any>> -> memref<1x128xf32, #tpu.memory_space<any>>
      %c20_i32_195 = arith.constant 20 : i32
      %c0_i32_196 = arith.constant 0 : i32
      %424 = tpu.memref_slice %arg5[%216, %c20_i32_195, %c0_i32_196] : memref<2x32x128xf32, #tpu.memory_space<vmem>> -> memref<1x1x128xf32, #tpu.memory_space<vmem>>
      %425 = tpu.memref_squeeze %424 : memref<1x1x128xf32, #tpu.memory_space<vmem>> -> memref<1x128xf32, #tpu.memory_space<vmem>>
      %426 = tpu.memref_slice %arg6[%216] : memref<2x!tpu.dma_semaphore, #tpu.memory_space<semaphore_mem>> -> memref<1x!tpu.dma_semaphore, #tpu.memory_space<semaphore_mem>>
      %427 = tpu.memref_squeeze %426 : memref<1x!tpu.dma_semaphore, #tpu.memory_space<semaphore_mem>> -> memref<!tpu.dma_semaphore, #tpu.memory_space<semaphore_mem>>
      tpu.enqueue_dma source(%423 : memref<1x128xf32, #tpu.memory_space<any>>) target(%425 : memref<1x128xf32, #tpu.memory_space<vmem>>) target_semaphore(%427 : memref<!tpu.dma_semaphore, #tpu.memory_space<semaphore_mem>>)
      %c21_i32_197 = arith.constant 21 : i32
      %428 = arith.addi %217, %c21_i32_197 : i32
      %429 = arith.index_cast %arg0 : i32 to index
      %430 = arith.index_cast %428 : i32 to index
      %431 = memref.load %arg2[%429, %430] : memref<2x128xi32, #tpu.memory_space<smem>>
      %c0_i32_198 = arith.constant 0 : i32
      %432 = tpu.memref_slice %arg3[%arg0, %431, %c0_i32_198] : memref<2x256x128xf32, #tpu.memory_space<any>> -> memref<1x1x128xf32, #tpu.memory_space<any>>
      %433 = tpu.memref_squeeze %432 : memref<1x1x128xf32, #tpu.memory_space<any>> -> memref<1x128xf32, #tpu.memory_space<any>>
      %c21_i32_199 = arith.constant 21 : i32
      %c0_i32_200 = arith.constant 0 : i32
      %434 = tpu.memref_slice %arg5[%216, %c21_i32_199, %c0_i32_200] : memref<2x32x128xf32, #tpu.memory_space<vmem>> -> memref<1x1x128xf32, #tpu.memory_space<vmem>>
      %435 = tpu.memref_squeeze %434 : memref<1x1x128xf32, #tpu.memory_space<vmem>> -> memref<1x128xf32, #tpu.memory_space<vmem>>
      %436 = tpu.memref_slice %arg6[%216] : memref<2x!tpu.dma_semaphore, #tpu.memory_space<semaphore_mem>> -> memref<1x!tpu.dma_semaphore, #tpu.memory_space<semaphore_mem>>
      %437 = tpu.memref_squeeze %436 : memref<1x!tpu.dma_semaphore, #tpu.memory_space<semaphore_mem>> -> memref<!tpu.dma_semaphore, #tpu.memory_space<semaphore_mem>>
      tpu.enqueue_dma source(%433 : memref<1x128xf32, #tpu.memory_space<any>>) target(%435 : memref<1x128xf32, #tpu.memory_space<vmem>>) target_semaphore(%437 : memref<!tpu.dma_semaphore, #tpu.memory_space<semaphore_mem>>)
      %c22_i32_201 = arith.constant 22 : i32
      %438 = arith.addi %217, %c22_i32_201 : i32
      %439 = arith.index_cast %arg0 : i32 to index
      %440 = arith.index_cast %438 : i32 to index
      %441 = memref.load %arg2[%439, %440] : memref<2x128xi32, #tpu.memory_space<smem>>
      %c0_i32_202 = arith.constant 0 : i32
      %442 = tpu.memref_slice %arg3[%arg0, %441, %c0_i32_202] : memref<2x256x128xf32, #tpu.memory_space<any>> -> memref<1x1x128xf32, #tpu.memory_space<any>>
      %443 = tpu.memref_squeeze %442 : memref<1x1x128xf32, #tpu.memory_space<any>> -> memref<1x128xf32, #tpu.memory_space<any>>
      %c22_i32_203 = arith.constant 22 : i32
      %c0_i32_204 = arith.constant 0 : i32
      %444 = tpu.memref_slice %arg5[%216, %c22_i32_203, %c0_i32_204] : memref<2x32x128xf32, #tpu.memory_space<vmem>> -> memref<1x1x128xf32, #tpu.memory_space<vmem>>
      %445 = tpu.memref_squeeze %444 : memref<1x1x128xf32, #tpu.memory_space<vmem>> -> memref<1x128xf32, #tpu.memory_space<vmem>>
      %446 = tpu.memref_slice %arg6[%216] : memref<2x!tpu.dma_semaphore, #tpu.memory_space<semaphore_mem>> -> memref<1x!tpu.dma_semaphore, #tpu.memory_space<semaphore_mem>>
      %447 = tpu.memref_squeeze %446 : memref<1x!tpu.dma_semaphore, #tpu.memory_space<semaphore_mem>> -> memref<!tpu.dma_semaphore, #tpu.memory_space<semaphore_mem>>
      tpu.enqueue_dma source(%443 : memref<1x128xf32, #tpu.memory_space<any>>) target(%445 : memref<1x128xf32, #tpu.memory_space<vmem>>) target_semaphore(%447 : memref<!tpu.dma_semaphore, #tpu.memory_space<semaphore_mem>>)
      %c23_i32_205 = arith.constant 23 : i32
      %448 = arith.addi %217, %c23_i32_205 : i32
      %449 = arith.index_cast %arg0 : i32 to index
      %450 = arith.index_cast %448 : i32 to index
      %451 = memref.load %arg2[%449, %450] : memref<2x128xi32, #tpu.memory_space<smem>>
      %c0_i32_206 = arith.constant 0 : i32
      %452 = tpu.memref_slice %arg3[%arg0, %451, %c0_i32_206] : memref<2x256x128xf32, #tpu.memory_space<any>> -> memref<1x1x128xf32, #tpu.memory_space<any>>
      %453 = tpu.memref_squeeze %452 : memref<1x1x128xf32, #tpu.memory_space<any>> -> memref<1x128xf32, #tpu.memory_space<any>>
      %c23_i32_207 = arith.constant 23 : i32
      %c0_i32_208 = arith.constant 0 : i32
      %454 = tpu.memref_slice %arg5[%216, %c23_i32_207, %c0_i32_208] : memref<2x32x128xf32, #tpu.memory_space<vmem>> -> memref<1x1x128xf32, #tpu.memory_space<vmem>>
      %455 = tpu.memref_squeeze %454 : memref<1x1x128xf32, #tpu.memory_space<vmem>> -> memref<1x128xf32, #tpu.memory_space<vmem>>
      %456 = tpu.memref_slice %arg6[%216] : memref<2x!tpu.dma_semaphore, #tpu.memory_space<semaphore_mem>> -> memref<1x!tpu.dma_semaphore, #tpu.memory_space<semaphore_mem>>
      %457 = tpu.memref_squeeze %456 : memref<1x!tpu.dma_semaphore, #tpu.memory_space<semaphore_mem>> -> memref<!tpu.dma_semaphore, #tpu.memory_space<semaphore_mem>>
      tpu.enqueue_dma source(%453 : memref<1x128xf32, #tpu.memory_space<any>>) target(%455 : memref<1x128xf32, #tpu.memory_space<vmem>>) target_semaphore(%457 : memref<!tpu.dma_semaphore, #tpu.memory_space<semaphore_mem>>)
      %c24_i32_209 = arith.constant 24 : i32
      %458 = arith.addi %217, %c24_i32_209 : i32
      %459 = arith.index_cast %arg0 : i32 to index
      %460 = arith.index_cast %458 : i32 to index
      %461 = memref.load %arg2[%459, %460] : memref<2x128xi32, #tpu.memory_space<smem>>
      %c0_i32_210 = arith.constant 0 : i32
      %462 = tpu.memref_slice %arg3[%arg0, %461, %c0_i32_210] : memref<2x256x128xf32, #tpu.memory_space<any>> -> memref<1x1x128xf32, #tpu.memory_space<any>>
      %463 = tpu.memref_squeeze %462 : memref<1x1x128xf32, #tpu.memory_space<any>> -> memref<1x128xf32, #tpu.memory_space<any>>
      %c24_i32_211 = arith.constant 24 : i32
      %c0_i32_212 = arith.constant 0 : i32
      %464 = tpu.memref_slice %arg5[%216, %c24_i32_211, %c0_i32_212] : memref<2x32x128xf32, #tpu.memory_space<vmem>> -> memref<1x1x128xf32, #tpu.memory_space<vmem>>
      %465 = tpu.memref_squeeze %464 : memref<1x1x128xf32, #tpu.memory_space<vmem>> -> memref<1x128xf32, #tpu.memory_space<vmem>>
      %466 = tpu.memref_slice %arg6[%216] : memref<2x!tpu.dma_semaphore, #tpu.memory_space<semaphore_mem>> -> memref<1x!tpu.dma_semaphore, #tpu.memory_space<semaphore_mem>>
      %467 = tpu.memref_squeeze %466 : memref<1x!tpu.dma_semaphore, #tpu.memory_space<semaphore_mem>> -> memref<!tpu.dma_semaphore, #tpu.memory_space<semaphore_mem>>
      tpu.enqueue_dma source(%463 : memref<1x128xf32, #tpu.memory_space<any>>) target(%465 : memref<1x128xf32, #tpu.memory_space<vmem>>) target_semaphore(%467 : memref<!tpu.dma_semaphore, #tpu.memory_space<semaphore_mem>>)
      %c25_i32_213 = arith.constant 25 : i32
      %468 = arith.addi %217, %c25_i32_213 : i32
      %469 = arith.index_cast %arg0 : i32 to index
      %470 = arith.index_cast %468 : i32 to index
      %471 = memref.load %arg2[%469, %470] : memref<2x128xi32, #tpu.memory_space<smem>>
      %c0_i32_214 = arith.constant 0 : i32
      %472 = tpu.memref_slice %arg3[%arg0, %471, %c0_i32_214] : memref<2x256x128xf32, #tpu.memory_space<any>> -> memref<1x1x128xf32, #tpu.memory_space<any>>
      %473 = tpu.memref_squeeze %472 : memref<1x1x128xf32, #tpu.memory_space<any>> -> memref<1x128xf32, #tpu.memory_space<any>>
      %c25_i32_215 = arith.constant 25 : i32
      %c0_i32_216 = arith.constant 0 : i32
      %474 = tpu.memref_slice %arg5[%216, %c25_i32_215, %c0_i32_216] : memref<2x32x128xf32, #tpu.memory_space<vmem>> -> memref<1x1x128xf32, #tpu.memory_space<vmem>>
      %475 = tpu.memref_squeeze %474 : memref<1x1x128xf32, #tpu.memory_space<vmem>> -> memref<1x128xf32, #tpu.memory_space<vmem>>
      %476 = tpu.memref_slice %arg6[%216] : memref<2x!tpu.dma_semaphore, #tpu.memory_space<semaphore_mem>> -> memref<1x!tpu.dma_semaphore, #tpu.memory_space<semaphore_mem>>
      %477 = tpu.memref_squeeze %476 : memref<1x!tpu.dma_semaphore, #tpu.memory_space<semaphore_mem>> -> memref<!tpu.dma_semaphore, #tpu.memory_space<semaphore_mem>>
      tpu.enqueue_dma source(%473 : memref<1x128xf32, #tpu.memory_space<any>>) target(%475 : memref<1x128xf32, #tpu.memory_space<vmem>>) target_semaphore(%477 : memref<!tpu.dma_semaphore, #tpu.memory_space<semaphore_mem>>)
      %c26_i32_217 = arith.constant 26 : i32
      %478 = arith.addi %217, %c26_i32_217 : i32
      %479 = arith.index_cast %arg0 : i32 to index
      %480 = arith.index_cast %478 : i32 to index
      %481 = memref.load %arg2[%479, %480] : memref<2x128xi32, #tpu.memory_space<smem>>
      %c0_i32_218 = arith.constant 0 : i32
      %482 = tpu.memref_slice %arg3[%arg0, %481, %c0_i32_218] : memref<2x256x128xf32, #tpu.memory_space<any>> -> memref<1x1x128xf32, #tpu.memory_space<any>>
      %483 = tpu.memref_squeeze %482 : memref<1x1x128xf32, #tpu.memory_space<any>> -> memref<1x128xf32, #tpu.memory_space<any>>
      %c26_i32_219 = arith.constant 26 : i32
      %c0_i32_220 = arith.constant 0 : i32
      %484 = tpu.memref_slice %arg5[%216, %c26_i32_219, %c0_i32_220] : memref<2x32x128xf32, #tpu.memory_space<vmem>> -> memref<1x1x128xf32, #tpu.memory_space<vmem>>
      %485 = tpu.memref_squeeze %484 : memref<1x1x128xf32, #tpu.memory_space<vmem>> -> memref<1x128xf32, #tpu.memory_space<vmem>>
      %486 = tpu.memref_slice %arg6[%216] : memref<2x!tpu.dma_semaphore, #tpu.memory_space<semaphore_mem>> -> memref<1x!tpu.dma_semaphore, #tpu.memory_space<semaphore_mem>>
      %487 = tpu.memref_squeeze %486 : memref<1x!tpu.dma_semaphore, #tpu.memory_space<semaphore_mem>> -> memref<!tpu.dma_semaphore, #tpu.memory_space<semaphore_mem>>
      tpu.enqueue_dma source(%483 : memref<1x128xf32, #tpu.memory_space<any>>) target(%485 : memref<1x128xf32, #tpu.memory_space<vmem>>) target_semaphore(%487 : memref<!tpu.dma_semaphore, #tpu.memory_space<semaphore_mem>>)
      %c27_i32_221 = arith.constant 27 : i32
      %488 = arith.addi %217, %c27_i32_221 : i32
      %489 = arith.index_cast %arg0 : i32 to index
      %490 = arith.index_cast %488 : i32 to index
      %491 = memref.load %arg2[%489, %490] : memref<2x128xi32, #tpu.memory_space<smem>>
      %c0_i32_222 = arith.constant 0 : i32
      %492 = tpu.memref_slice %arg3[%arg0, %491, %c0_i32_222] : memref<2x256x128xf32, #tpu.memory_space<any>> -> memref<1x1x128xf32, #tpu.memory_space<any>>
      %493 = tpu.memref_squeeze %492 : memref<1x1x128xf32, #tpu.memory_space<any>> -> memref<1x128xf32, #tpu.memory_space<any>>
      %c27_i32_223 = arith.constant 27 : i32
      %c0_i32_224 = arith.constant 0 : i32
      %494 = tpu.memref_slice %arg5[%216, %c27_i32_223, %c0_i32_224] : memref<2x32x128xf32, #tpu.memory_space<vmem>> -> memref<1x1x128xf32, #tpu.memory_space<vmem>>
      %495 = tpu.memref_squeeze %494 : memref<1x1x128xf32, #tpu.memory_space<vmem>> -> memref<1x128xf32, #tpu.memory_space<vmem>>
      %496 = tpu.memref_slice %arg6[%216] : memref<2x!tpu.dma_semaphore, #tpu.memory_space<semaphore_mem>> -> memref<1x!tpu.dma_semaphore, #tpu.memory_space<semaphore_mem>>
      %497 = tpu.memref_squeeze %496 : memref<1x!tpu.dma_semaphore, #tpu.memory_space<semaphore_mem>> -> memref<!tpu.dma_semaphore, #tpu.memory_space<semaphore_mem>>
      tpu.enqueue_dma source(%493 : memref<1x128xf32, #tpu.memory_space<any>>) target(%495 : memref<1x128xf32, #tpu.memory_space<vmem>>) target_semaphore(%497 : memref<!tpu.dma_semaphore, #tpu.memory_space<semaphore_mem>>)
      %c28_i32_225 = arith.constant 28 : i32
      %498 = arith.addi %217, %c28_i32_225 : i32
      %499 = arith.index_cast %arg0 : i32 to index
      %500 = arith.index_cast %498 : i32 to index
      %501 = memref.load %arg2[%499, %500] : memref<2x128xi32, #tpu.memory_space<smem>>
      %c0_i32_226 = arith.constant 0 : i32
      %502 = tpu.memref_slice %arg3[%arg0, %501, %c0_i32_226] : memref<2x256x128xf32, #tpu.memory_space<any>> -> memref<1x1x128xf32, #tpu.memory_space<any>>
      %503 = tpu.memref_squeeze %502 : memref<1x1x128xf32, #tpu.memory_space<any>> -> memref<1x128xf32, #tpu.memory_space<any>>
      %c28_i32_227 = arith.constant 28 : i32
      %c0_i32_228 = arith.constant 0 : i32
      %504 = tpu.memref_slice %arg5[%216, %c28_i32_227, %c0_i32_228] : memref<2x32x128xf32, #tpu.memory_space<vmem>> -> memref<1x1x128xf32, #tpu.memory_space<vmem>>
      %505 = tpu.memref_squeeze %504 : memref<1x1x128xf32, #tpu.memory_space<vmem>> -> memref<1x128xf32, #tpu.memory_space<vmem>>
      %506 = tpu.memref_slice %arg6[%216] : memref<2x!tpu.dma_semaphore, #tpu.memory_space<semaphore_mem>> -> memref<1x!tpu.dma_semaphore, #tpu.memory_space<semaphore_mem>>
      %507 = tpu.memref_squeeze %506 : memref<1x!tpu.dma_semaphore, #tpu.memory_space<semaphore_mem>> -> memref<!tpu.dma_semaphore, #tpu.memory_space<semaphore_mem>>
      tpu.enqueue_dma source(%503 : memref<1x128xf32, #tpu.memory_space<any>>) target(%505 : memref<1x128xf32, #tpu.memory_space<vmem>>) target_semaphore(%507 : memref<!tpu.dma_semaphore, #tpu.memory_space<semaphore_mem>>)
      %c29_i32_229 = arith.constant 29 : i32
      %508 = arith.addi %217, %c29_i32_229 : i32
      %509 = arith.index_cast %arg0 : i32 to index
      %510 = arith.index_cast %508 : i32 to index
      %511 = memref.load %arg2[%509, %510] : memref<2x128xi32, #tpu.memory_space<smem>>
      %c0_i32_230 = arith.constant 0 : i32
      %512 = tpu.memref_slice %arg3[%arg0, %511, %c0_i32_230] : memref<2x256x128xf32, #tpu.memory_space<any>> -> memref<1x1x128xf32, #tpu.memory_space<any>>
      %513 = tpu.memref_squeeze %512 : memref<1x1x128xf32, #tpu.memory_space<any>> -> memref<1x128xf32, #tpu.memory_space<any>>
      %c29_i32_231 = arith.constant 29 : i32
      %c0_i32_232 = arith.constant 0 : i32
      %514 = tpu.memref_slice %arg5[%216, %c29_i32_231, %c0_i32_232] : memref<2x32x128xf32, #tpu.memory_space<vmem>> -> memref<1x1x128xf32, #tpu.memory_space<vmem>>
      %515 = tpu.memref_squeeze %514 : memref<1x1x128xf32, #tpu.memory_space<vmem>> -> memref<1x128xf32, #tpu.memory_space<vmem>>
      %516 = tpu.memref_slice %arg6[%216] : memref<2x!tpu.dma_semaphore, #tpu.memory_space<semaphore_mem>> -> memref<1x!tpu.dma_semaphore, #tpu.memory_space<semaphore_mem>>
      %517 = tpu.memref_squeeze %516 : memref<1x!tpu.dma_semaphore, #tpu.memory_space<semaphore_mem>> -> memref<!tpu.dma_semaphore, #tpu.memory_space<semaphore_mem>>
      tpu.enqueue_dma source(%513 : memref<1x128xf32, #tpu.memory_space<any>>) target(%515 : memref<1x128xf32, #tpu.memory_space<vmem>>) target_semaphore(%517 : memref<!tpu.dma_semaphore, #tpu.memory_space<semaphore_mem>>)
      %c30_i32_233 = arith.constant 30 : i32
      %518 = arith.addi %217, %c30_i32_233 : i32
      %519 = arith.index_cast %arg0 : i32 to index
      %520 = arith.index_cast %518 : i32 to index
      %521 = memref.load %arg2[%519, %520] : memref<2x128xi32, #tpu.memory_space<smem>>
      %c0_i32_234 = arith.constant 0 : i32
      %522 = tpu.memref_slice %arg3[%arg0, %521, %c0_i32_234] : memref<2x256x128xf32, #tpu.memory_space<any>> -> memref<1x1x128xf32, #tpu.memory_space<any>>
      %523 = tpu.memref_squeeze %522 : memref<1x1x128xf32, #tpu.memory_space<any>> -> memref<1x128xf32, #tpu.memory_space<any>>
      %c30_i32_235 = arith.constant 30 : i32
      %c0_i32_236 = arith.constant 0 : i32
      %524 = tpu.memref_slice %arg5[%216, %c30_i32_235, %c0_i32_236] : memref<2x32x128xf32, #tpu.memory_space<vmem>> -> memref<1x1x128xf32, #tpu.memory_space<vmem>>
      %525 = tpu.memref_squeeze %524 : memref<1x1x128xf32, #tpu.memory_space<vmem>> -> memref<1x128xf32, #tpu.memory_space<vmem>>
      %526 = tpu.memref_slice %arg6[%216] : memref<2x!tpu.dma_semaphore, #tpu.memory_space<semaphore_mem>> -> memref<1x!tpu.dma_semaphore, #tpu.memory_space<semaphore_mem>>
      %527 = tpu.memref_squeeze %526 : memref<1x!tpu.dma_semaphore, #tpu.memory_space<semaphore_mem>> -> memref<!tpu.dma_semaphore, #tpu.memory_space<semaphore_mem>>
      tpu.enqueue_dma source(%523 : memref<1x128xf32, #tpu.memory_space<any>>) target(%525 : memref<1x128xf32, #tpu.memory_space<vmem>>) target_semaphore(%527 : memref<!tpu.dma_semaphore, #tpu.memory_space<semaphore_mem>>)
      %c31_i32_237 = arith.constant 31 : i32
      %528 = arith.addi %217, %c31_i32_237 : i32
      %529 = arith.index_cast %arg0 : i32 to index
      %530 = arith.index_cast %528 : i32 to index
      %531 = memref.load %arg2[%529, %530] : memref<2x128xi32, #tpu.memory_space<smem>>
      %c0_i32_238 = arith.constant 0 : i32
      %532 = tpu.memref_slice %arg3[%arg0, %531, %c0_i32_238] : memref<2x256x128xf32, #tpu.memory_space<any>> -> memref<1x1x128xf32, #tpu.memory_space<any>>
      %533 = tpu.memref_squeeze %532 : memref<1x1x128xf32, #tpu.memory_space<any>> -> memref<1x128xf32, #tpu.memory_space<any>>
      %c31_i32_239 = arith.constant 31 : i32
      %c0_i32_240 = arith.constant 0 : i32
      %534 = tpu.memref_slice %arg5[%216, %c31_i32_239, %c0_i32_240] : memref<2x32x128xf32, #tpu.memory_space<vmem>> -> memref<1x1x128xf32, #tpu.memory_space<vmem>>
      %535 = tpu.memref_squeeze %534 : memref<1x1x128xf32, #tpu.memory_space<vmem>> -> memref<1x128xf32, #tpu.memory_space<vmem>>
      %536 = tpu.memref_slice %arg6[%216] : memref<2x!tpu.dma_semaphore, #tpu.memory_space<semaphore_mem>> -> memref<1x!tpu.dma_semaphore, #tpu.memory_space<semaphore_mem>>
      %537 = tpu.memref_squeeze %536 : memref<1x!tpu.dma_semaphore, #tpu.memory_space<semaphore_mem>> -> memref<!tpu.dma_semaphore, #tpu.memory_space<semaphore_mem>>
      tpu.enqueue_dma source(%533 : memref<1x128xf32, #tpu.memory_space<any>>) target(%535 : memref<1x128xf32, #tpu.memory_space<vmem>>) target_semaphore(%537 : memref<!tpu.dma_semaphore, #tpu.memory_space<semaphore_mem>>)
    } else {
    }
    %c0_i32_7 = arith.constant 0 : i32
    %c0_i32_8 = arith.constant 0 : i32
    %17 = tpu.memref_slice %arg3[%arg0, %c0_i32_7, %c0_i32_8] : memref<2x256x128xf32, #tpu.memory_space<any>> -> memref<1x1x128xf32, #tpu.memory_space<any>>
    %18 = tpu.memref_squeeze %17 : memref<1x1x128xf32, #tpu.memory_space<any>> -> memref<1x128xf32, #tpu.memory_space<any>>
    %c0_i32_9 = arith.constant 0 : i32
    %c0_i32_10 = arith.constant 0 : i32
    %19 = tpu.memref_slice %arg5[%9, %c0_i32_9, %c0_i32_10] : memref<2x32x128xf32, #tpu.memory_space<vmem>> -> memref<1x1x128xf32, #tpu.memory_space<vmem>>
    %20 = tpu.memref_squeeze %19 : memref<1x1x128xf32, #tpu.memory_space<vmem>> -> memref<1x128xf32, #tpu.memory_space<vmem>>
    %21 = tpu.memref_slice %arg6[%9] : memref<2x!tpu.dma_semaphore, #tpu.memory_space<semaphore_mem>> -> memref<1x!tpu.dma_semaphore, #tpu.memory_space<semaphore_mem>>
    %22 = tpu.memref_squeeze %21 : memref<1x!tpu.dma_semaphore, #tpu.memory_space<semaphore_mem>> -> memref<!tpu.dma_semaphore, #tpu.memory_space<semaphore_mem>>
    tpu.wait_dma2 semaphore(%22 : memref<!tpu.dma_semaphore, #tpu.memory_space<semaphore_mem>>) src(%18 : memref<1x128xf32, #tpu.memory_space<any>>) dst(%20 : memref<1x128xf32, #tpu.memory_space<vmem>>)
    %c0_i32_11 = arith.constant 0 : i32
    %c0_i32_12 = arith.constant 0 : i32
    %23 = tpu.memref_slice %arg3[%arg0, %c0_i32_11, %c0_i32_12] : memref<2x256x128xf32, #tpu.memory_space<any>> -> memref<1x1x128xf32, #tpu.memory_space<any>>
    %24 = tpu.memref_squeeze %23 : memref<1x1x128xf32, #tpu.memory_space<any>> -> memref<1x128xf32, #tpu.memory_space<any>>
    %c1_i32_13 = arith.constant 1 : i32
    %c0_i32_14 = arith.constant 0 : i32
    %25 = tpu.memref_slice %arg5[%9, %c1_i32_13, %c0_i32_14] : memref<2x32x128xf32, #tpu.memory_space<vmem>> -> memref<1x1x128xf32, #tpu.memory_space<vmem>>
    %26 = tpu.memref_squeeze %25 : memref<1x1x128xf32, #tpu.memory_space<vmem>> -> memref<1x128xf32, #tpu.memory_space<vmem>>
    %27 = tpu.memref_slice %arg6[%9] : memref<2x!tpu.dma_semaphore, #tpu.memory_space<semaphore_mem>> -> memref<1x!tpu.dma_semaphore, #tpu.memory_space<semaphore_mem>>
    %28 = tpu.memref_squeeze %27 : memref<1x!tpu.dma_semaphore, #tpu.memory_space<semaphore_mem>> -> memref<!tpu.dma_semaphore, #tpu.memory_space<semaphore_mem>>
    tpu.wait_dma2 semaphore(%28 : memref<!tpu.dma_semaphore, #tpu.memory_space<semaphore_mem>>) src(%24 : memref<1x128xf32, #tpu.memory_space<any>>) dst(%26 : memref<1x128xf32, #tpu.memory_space<vmem>>)
    %c0_i32_15 = arith.constant 0 : i32
    %c0_i32_16 = arith.constant 0 : i32
    %29 = tpu.memref_slice %arg3[%arg0, %c0_i32_15, %c0_i32_16] : memref<2x256x128xf32, #tpu.memory_space<any>> -> memref<1x1x128xf32, #tpu.memory_space<any>>
    %30 = tpu.memref_squeeze %29 : memref<1x1x128xf32, #tpu.memory_space<any>> -> memref<1x128xf32, #tpu.memory_space<any>>
    %c2_i32_17 = arith.constant 2 : i32
    %c0_i32_18 = arith.constant 0 : i32
    %31 = tpu.memref_slice %arg5[%9, %c2_i32_17, %c0_i32_18] : memref<2x32x128xf32, #tpu.memory_space<vmem>> -> memref<1x1x128xf32, #tpu.memory_space<vmem>>
    %32 = tpu.memref_squeeze %31 : memref<1x1x128xf32, #tpu.memory_space<vmem>> -> memref<1x128xf32, #tpu.memory_space<vmem>>
    %33 = tpu.memref_slice %arg6[%9] : memref<2x!tpu.dma_semaphore, #tpu.memory_space<semaphore_mem>> -> memref<1x!tpu.dma_semaphore, #tpu.memory_space<semaphore_mem>>
    %34 = tpu.memref_squeeze %33 : memref<1x!tpu.dma_semaphore, #tpu.memory_space<semaphore_mem>> -> memref<!tpu.dma_semaphore, #tpu.memory_space<semaphore_mem>>
    tpu.wait_dma2 semaphore(%34 : memref<!tpu.dma_semaphore, #tpu.memory_space<semaphore_mem>>) src(%30 : memref<1x128xf32, #tpu.memory_space<any>>) dst(%32 : memref<1x128xf32, #tpu.memory_space<vmem>>)
    %c0_i32_19 = arith.constant 0 : i32
    %c0_i32_20 = arith.constant 0 : i32
    %35 = tpu.memref_slice %arg3[%arg0, %c0_i32_19, %c0_i32_20] : memref<2x256x128xf32, #tpu.memory_space<any>> -> memref<1x1x128xf32, #tpu.memory_space<any>>
    %36 = tpu.memref_squeeze %35 : memref<1x1x128xf32, #tpu.memory_space<any>> -> memref<1x128xf32, #tpu.memory_space<any>>
    %c3_i32 = arith.constant 3 : i32
    %c0_i32_21 = arith.constant 0 : i32
    %37 = tpu.memref_slice %arg5[%9, %c3_i32, %c0_i32_21] : memref<2x32x128xf32, #tpu.memory_space<vmem>> -> memref<1x1x128xf32, #tpu.memory_space<vmem>>
    %38 = tpu.memref_squeeze %37 : memref<1x1x128xf32, #tpu.memory_space<vmem>> -> memref<1x128xf32, #tpu.memory_space<vmem>>
    %39 = tpu.memref_slice %arg6[%9] : memref<2x!tpu.dma_semaphore, #tpu.memory_space<semaphore_mem>> -> memref<1x!tpu.dma_semaphore, #tpu.memory_space<semaphore_mem>>
    %40 = tpu.memref_squeeze %39 : memref<1x!tpu.dma_semaphore, #tpu.memory_space<semaphore_mem>> -> memref<!tpu.dma_semaphore, #tpu.memory_space<semaphore_mem>>
    tpu.wait_dma2 semaphore(%40 : memref<!tpu.dma_semaphore, #tpu.memory_space<semaphore_mem>>) src(%36 : memref<1x128xf32, #tpu.memory_space<any>>) dst(%38 : memref<1x128xf32, #tpu.memory_space<vmem>>)
    %c0_i32_22 = arith.constant 0 : i32
    %c0_i32_23 = arith.constant 0 : i32
    %41 = tpu.memref_slice %arg3[%arg0, %c0_i32_22, %c0_i32_23] : memref<2x256x128xf32, #tpu.memory_space<any>> -> memref<1x1x128xf32, #tpu.memory_space<any>>
    %42 = tpu.memref_squeeze %41 : memref<1x1x128xf32, #tpu.memory_space<any>> -> memref<1x128xf32, #tpu.memory_space<any>>
    %c4_i32_24 = arith.constant 4 : i32
    %c0_i32_25 = arith.constant 0 : i32
    %43 = tpu.memref_slice %arg5[%9, %c4_i32_24, %c0_i32_25] : memref<2x32x128xf32, #tpu.memory_space<vmem>> -> memref<1x1x128xf32, #tpu.memory_space<vmem>>
    %44 = tpu.memref_squeeze %43 : memref<1x1x128xf32, #tpu.memory_space<vmem>> -> memref<1x128xf32, #tpu.memory_space<vmem>>
    %45 = tpu.memref_slice %arg6[%9] : memref<2x!tpu.dma_semaphore, #tpu.memory_space<semaphore_mem>> -> memref<1x!tpu.dma_semaphore, #tpu.memory_space<semaphore_mem>>
    %46 = tpu.memref_squeeze %45 : memref<1x!tpu.dma_semaphore, #tpu.memory_space<semaphore_mem>> -> memref<!tpu.dma_semaphore, #tpu.memory_space<semaphore_mem>>
    tpu.wait_dma2 semaphore(%46 : memref<!tpu.dma_semaphore, #tpu.memory_space<semaphore_mem>>) src(%42 : memref<1x128xf32, #tpu.memory_space<any>>) dst(%44 : memref<1x128xf32, #tpu.memory_space<vmem>>)
    %c0_i32_26 = arith.constant 0 : i32
    %c0_i32_27 = arith.constant 0 : i32
    %47 = tpu.memref_slice %arg3[%arg0, %c0_i32_26, %c0_i32_27] : memref<2x256x128xf32, #tpu.memory_space<any>> -> memref<1x1x128xf32, #tpu.memory_space<any>>
    %48 = tpu.memref_squeeze %47 : memref<1x1x128xf32, #tpu.memory_space<any>> -> memref<1x128xf32, #tpu.memory_space<any>>
    %c5_i32 = arith.constant 5 : i32
    %c0_i32_28 = arith.constant 0 : i32
    %49 = tpu.memref_slice %arg5[%9, %c5_i32, %c0_i32_28] : memref<2x32x128xf32, #tpu.memory_space<vmem>> -> memref<1x1x128xf32, #tpu.memory_space<vmem>>
    %50 = tpu.memref_squeeze %49 : memref<1x1x128xf32, #tpu.memory_space<vmem>> -> memref<1x128xf32, #tpu.memory_space<vmem>>
    %51 = tpu.memref_slice %arg6[%9] : memref<2x!tpu.dma_semaphore, #tpu.memory_space<semaphore_mem>> -> memref<1x!tpu.dma_semaphore, #tpu.memory_space<semaphore_mem>>
    %52 = tpu.memref_squeeze %51 : memref<1x!tpu.dma_semaphore, #tpu.memory_space<semaphore_mem>> -> memref<!tpu.dma_semaphore, #tpu.memory_space<semaphore_mem>>
    tpu.wait_dma2 semaphore(%52 : memref<!tpu.dma_semaphore, #tpu.memory_space<semaphore_mem>>) src(%48 : memref<1x128xf32, #tpu.memory_space<any>>) dst(%50 : memref<1x128xf32, #tpu.memory_space<vmem>>)
    %c0_i32_29 = arith.constant 0 : i32
    %c0_i32_30 = arith.constant 0 : i32
    %53 = tpu.memref_slice %arg3[%arg0, %c0_i32_29, %c0_i32_30] : memref<2x256x128xf32, #tpu.memory_space<any>> -> memref<1x1x128xf32, #tpu.memory_space<any>>
    %54 = tpu.memref_squeeze %53 : memref<1x1x128xf32, #tpu.memory_space<any>> -> memref<1x128xf32, #tpu.memory_space<any>>
    %c6_i32 = arith.constant 6 : i32
    %c0_i32_31 = arith.constant 0 : i32
    %55 = tpu.memref_slice %arg5[%9, %c6_i32, %c0_i32_31] : memref<2x32x128xf32, #tpu.memory_space<vmem>> -> memref<1x1x128xf32, #tpu.memory_space<vmem>>
    %56 = tpu.memref_squeeze %55 : memref<1x1x128xf32, #tpu.memory_space<vmem>> -> memref<1x128xf32, #tpu.memory_space<vmem>>
    %57 = tpu.memref_slice %arg6[%9] : memref<2x!tpu.dma_semaphore, #tpu.memory_space<semaphore_mem>> -> memref<1x!tpu.dma_semaphore, #tpu.memory_space<semaphore_mem>>
    %58 = tpu.memref_squeeze %57 : memref<1x!tpu.dma_semaphore, #tpu.memory_space<semaphore_mem>> -> memref<!tpu.dma_semaphore, #tpu.memory_space<semaphore_mem>>
    tpu.wait_dma2 semaphore(%58 : memref<!tpu.dma_semaphore, #tpu.memory_space<semaphore_mem>>) src(%54 : memref<1x128xf32, #tpu.memory_space<any>>) dst(%56 : memref<1x128xf32, #tpu.memory_space<vmem>>)
    %c0_i32_32 = arith.constant 0 : i32
    %c0_i32_33 = arith.constant 0 : i32
    %59 = tpu.memref_slice %arg3[%arg0, %c0_i32_32, %c0_i32_33] : memref<2x256x128xf32, #tpu.memory_space<any>> -> memref<1x1x128xf32, #tpu.memory_space<any>>
    %60 = tpu.memref_squeeze %59 : memref<1x1x128xf32, #tpu.memory_space<any>> -> memref<1x128xf32, #tpu.memory_space<any>>
    %c7_i32 = arith.constant 7 : i32
    %c0_i32_34 = arith.constant 0 : i32
    %61 = tpu.memref_slice %arg5[%9, %c7_i32, %c0_i32_34] : memref<2x32x128xf32, #tpu.memory_space<vmem>> -> memref<1x1x128xf32, #tpu.memory_space<vmem>>
    %62 = tpu.memref_squeeze %61 : memref<1x1x128xf32, #tpu.memory_space<vmem>> -> memref<1x128xf32, #tpu.memory_space<vmem>>
    %63 = tpu.memref_slice %arg6[%9] : memref<2x!tpu.dma_semaphore, #tpu.memory_space<semaphore_mem>> -> memref<1x!tpu.dma_semaphore, #tpu.memory_space<semaphore_mem>>
    %64 = tpu.memref_squeeze %63 : memref<1x!tpu.dma_semaphore, #tpu.memory_space<semaphore_mem>> -> memref<!tpu.dma_semaphore, #tpu.memory_space<semaphore_mem>>
    tpu.wait_dma2 semaphore(%64 : memref<!tpu.dma_semaphore, #tpu.memory_space<semaphore_mem>>) src(%60 : memref<1x128xf32, #tpu.memory_space<any>>) dst(%62 : memref<1x128xf32, #tpu.memory_space<vmem>>)
    %c0_i32_35 = arith.constant 0 : i32
    %c0_i32_36 = arith.constant 0 : i32
    %65 = tpu.memref_slice %arg3[%arg0, %c0_i32_35, %c0_i32_36] : memref<2x256x128xf32, #tpu.memory_space<any>> -> memref<1x1x128xf32, #tpu.memory_space<any>>
    %66 = tpu.memref_squeeze %65 : memref<1x1x128xf32, #tpu.memory_space<any>> -> memref<1x128xf32, #tpu.memory_space<any>>
    %c8_i32 = arith.constant 8 : i32
    %c0_i32_37 = arith.constant 0 : i32
    %67 = tpu.memref_slice %arg5[%9, %c8_i32, %c0_i32_37] : memref<2x32x128xf32, #tpu.memory_space<vmem>> -> memref<1x1x128xf32, #tpu.memory_space<vmem>>
    %68 = tpu.memref_squeeze %67 : memref<1x1x128xf32, #tpu.memory_space<vmem>> -> memref<1x128xf32, #tpu.memory_space<vmem>>
    %69 = tpu.memref_slice %arg6[%9] : memref<2x!tpu.dma_semaphore, #tpu.memory_space<semaphore_mem>> -> memref<1x!tpu.dma_semaphore, #tpu.memory_space<semaphore_mem>>
    %70 = tpu.memref_squeeze %69 : memref<1x!tpu.dma_semaphore, #tpu.memory_space<semaphore_mem>> -> memref<!tpu.dma_semaphore, #tpu.memory_space<semaphore_mem>>
    tpu.wait_dma2 semaphore(%70 : memref<!tpu.dma_semaphore, #tpu.memory_space<semaphore_mem>>) src(%66 : memref<1x128xf32, #tpu.memory_space<any>>) dst(%68 : memref<1x128xf32, #tpu.memory_space<vmem>>)
    %c0_i32_38 = arith.constant 0 : i32
    %c0_i32_39 = arith.constant 0 : i32
    %71 = tpu.memref_slice %arg3[%arg0, %c0_i32_38, %c0_i32_39] : memref<2x256x128xf32, #tpu.memory_space<any>> -> memref<1x1x128xf32, #tpu.memory_space<any>>
    %72 = tpu.memref_squeeze %71 : memref<1x1x128xf32, #tpu.memory_space<any>> -> memref<1x128xf32, #tpu.memory_space<any>>
    %c9_i32 = arith.constant 9 : i32
    %c0_i32_40 = arith.constant 0 : i32
    %73 = tpu.memref_slice %arg5[%9, %c9_i32, %c0_i32_40] : memref<2x32x128xf32, #tpu.memory_space<vmem>> -> memref<1x1x128xf32, #tpu.memory_space<vmem>>
    %74 = tpu.memref_squeeze %73 : memref<1x1x128xf32, #tpu.memory_space<vmem>> -> memref<1x128xf32, #tpu.memory_space<vmem>>
    %75 = tpu.memref_slice %arg6[%9] : memref<2x!tpu.dma_semaphore, #tpu.memory_space<semaphore_mem>> -> memref<1x!tpu.dma_semaphore, #tpu.memory_space<semaphore_mem>>
    %76 = tpu.memref_squeeze %75 : memref<1x!tpu.dma_semaphore, #tpu.memory_space<semaphore_mem>> -> memref<!tpu.dma_semaphore, #tpu.memory_space<semaphore_mem>>
    tpu.wait_dma2 semaphore(%76 : memref<!tpu.dma_semaphore, #tpu.memory_space<semaphore_mem>>) src(%72 : memref<1x128xf32, #tpu.memory_space<any>>) dst(%74 : memref<1x128xf32, #tpu.memory_space<vmem>>)
    %c0_i32_41 = arith.constant 0 : i32
    %c0_i32_42 = arith.constant 0 : i32
    %77 = tpu.memref_slice %arg3[%arg0, %c0_i32_41, %c0_i32_42] : memref<2x256x128xf32, #tpu.memory_space<any>> -> memref<1x1x128xf32, #tpu.memory_space<any>>
    %78 = tpu.memref_squeeze %77 : memref<1x1x128xf32, #tpu.memory_space<any>> -> memref<1x128xf32, #tpu.memory_space<any>>
    %c10_i32 = arith.constant 10 : i32
    %c0_i32_43 = arith.constant 0 : i32
    %79 = tpu.memref_slice %arg5[%9, %c10_i32, %c0_i32_43] : memref<2x32x128xf32, #tpu.memory_space<vmem>> -> memref<1x1x128xf32, #tpu.memory_space<vmem>>
    %80 = tpu.memref_squeeze %79 : memref<1x1x128xf32, #tpu.memory_space<vmem>> -> memref<1x128xf32, #tpu.memory_space<vmem>>
    %81 = tpu.memref_slice %arg6[%9] : memref<2x!tpu.dma_semaphore, #tpu.memory_space<semaphore_mem>> -> memref<1x!tpu.dma_semaphore, #tpu.memory_space<semaphore_mem>>
    %82 = tpu.memref_squeeze %81 : memref<1x!tpu.dma_semaphore, #tpu.memory_space<semaphore_mem>> -> memref<!tpu.dma_semaphore, #tpu.memory_space<semaphore_mem>>
    tpu.wait_dma2 semaphore(%82 : memref<!tpu.dma_semaphore, #tpu.memory_space<semaphore_mem>>) src(%78 : memref<1x128xf32, #tpu.memory_space<any>>) dst(%80 : memref<1x128xf32, #tpu.memory_space<vmem>>)
    %c0_i32_44 = arith.constant 0 : i32
    %c0_i32_45 = arith.constant 0 : i32
    %83 = tpu.memref_slice %arg3[%arg0, %c0_i32_44, %c0_i32_45] : memref<2x256x128xf32, #tpu.memory_space<any>> -> memref<1x1x128xf32, #tpu.memory_space<any>>
    %84 = tpu.memref_squeeze %83 : memref<1x1x128xf32, #tpu.memory_space<any>> -> memref<1x128xf32, #tpu.memory_space<any>>
    %c11_i32 = arith.constant 11 : i32
    %c0_i32_46 = arith.constant 0 : i32
    %85 = tpu.memref_slice %arg5[%9, %c11_i32, %c0_i32_46] : memref<2x32x128xf32, #tpu.memory_space<vmem>> -> memref<1x1x128xf32, #tpu.memory_space<vmem>>
    %86 = tpu.memref_squeeze %85 : memref<1x1x128xf32, #tpu.memory_space<vmem>> -> memref<1x128xf32, #tpu.memory_space<vmem>>
    %87 = tpu.memref_slice %arg6[%9] : memref<2x!tpu.dma_semaphore, #tpu.memory_space<semaphore_mem>> -> memref<1x!tpu.dma_semaphore, #tpu.memory_space<semaphore_mem>>
    %88 = tpu.memref_squeeze %87 : memref<1x!tpu.dma_semaphore, #tpu.memory_space<semaphore_mem>> -> memref<!tpu.dma_semaphore, #tpu.memory_space<semaphore_mem>>
    tpu.wait_dma2 semaphore(%88 : memref<!tpu.dma_semaphore, #tpu.memory_space<semaphore_mem>>) src(%84 : memref<1x128xf32, #tpu.memory_space<any>>) dst(%86 : memref<1x128xf32, #tpu.memory_space<vmem>>)
    %c0_i32_47 = arith.constant 0 : i32
    %c0_i32_48 = arith.constant 0 : i32
    %89 = tpu.memref_slice %arg3[%arg0, %c0_i32_47, %c0_i32_48] : memref<2x256x128xf32, #tpu.memory_space<any>> -> memref<1x1x128xf32, #tpu.memory_space<any>>
    %90 = tpu.memref_squeeze %89 : memref<1x1x128xf32, #tpu.memory_space<any>> -> memref<1x128xf32, #tpu.memory_space<any>>
    %c12_i32 = arith.constant 12 : i32
    %c0_i32_49 = arith.constant 0 : i32
    %91 = tpu.memref_slice %arg5[%9, %c12_i32, %c0_i32_49] : memref<2x32x128xf32, #tpu.memory_space<vmem>> -> memref<1x1x128xf32, #tpu.memory_space<vmem>>
    %92 = tpu.memref_squeeze %91 : memref<1x1x128xf32, #tpu.memory_space<vmem>> -> memref<1x128xf32, #tpu.memory_space<vmem>>
    %93 = tpu.memref_slice %arg6[%9] : memref<2x!tpu.dma_semaphore, #tpu.memory_space<semaphore_mem>> -> memref<1x!tpu.dma_semaphore, #tpu.memory_space<semaphore_mem>>
    %94 = tpu.memref_squeeze %93 : memref<1x!tpu.dma_semaphore, #tpu.memory_space<semaphore_mem>> -> memref<!tpu.dma_semaphore, #tpu.memory_space<semaphore_mem>>
    tpu.wait_dma2 semaphore(%94 : memref<!tpu.dma_semaphore, #tpu.memory_space<semaphore_mem>>) src(%90 : memref<1x128xf32, #tpu.memory_space<any>>) dst(%92 : memref<1x128xf32, #tpu.memory_space<vmem>>)
    %c0_i32_50 = arith.constant 0 : i32
    %c0_i32_51 = arith.constant 0 : i32
    %95 = tpu.memref_slice %arg3[%arg0, %c0_i32_50, %c0_i32_51] : memref<2x256x128xf32, #tpu.memory_space<any>> -> memref<1x1x128xf32, #tpu.memory_space<any>>
    %96 = tpu.memref_squeeze %95 : memref<1x1x128xf32, #tpu.memory_space<any>> -> memref<1x128xf32, #tpu.memory_space<any>>
    %c13_i32 = arith.constant 13 : i32
    %c0_i32_52 = arith.constant 0 : i32
    %97 = tpu.memref_slice %arg5[%9, %c13_i32, %c0_i32_52] : memref<2x32x128xf32, #tpu.memory_space<vmem>> -> memref<1x1x128xf32, #tpu.memory_space<vmem>>
    %98 = tpu.memref_squeeze %97 : memref<1x1x128xf32, #tpu.memory_space<vmem>> -> memref<1x128xf32, #tpu.memory_space<vmem>>
    %99 = tpu.memref_slice %arg6[%9] : memref<2x!tpu.dma_semaphore, #tpu.memory_space<semaphore_mem>> -> memref<1x!tpu.dma_semaphore, #tpu.memory_space<semaphore_mem>>
    %100 = tpu.memref_squeeze %99 : memref<1x!tpu.dma_semaphore, #tpu.memory_space<semaphore_mem>> -> memref<!tpu.dma_semaphore, #tpu.memory_space<semaphore_mem>>
    tpu.wait_dma2 semaphore(%100 : memref<!tpu.dma_semaphore, #tpu.memory_space<semaphore_mem>>) src(%96 : memref<1x128xf32, #tpu.memory_space<any>>) dst(%98 : memref<1x128xf32, #tpu.memory_space<vmem>>)
    %c0_i32_53 = arith.constant 0 : i32
    %c0_i32_54 = arith.constant 0 : i32
    %101 = tpu.memref_slice %arg3[%arg0, %c0_i32_53, %c0_i32_54] : memref<2x256x128xf32, #tpu.memory_space<any>> -> memref<1x1x128xf32, #tpu.memory_space<any>>
    %102 = tpu.memref_squeeze %101 : memref<1x1x128xf32, #tpu.memory_space<any>> -> memref<1x128xf32, #tpu.memory_space<any>>
    %c14_i32 = arith.constant 14 : i32
    %c0_i32_55 = arith.constant 0 : i32
    %103 = tpu.memref_slice %arg5[%9, %c14_i32, %c0_i32_55] : memref<2x32x128xf32, #tpu.memory_space<vmem>> -> memref<1x1x128xf32, #tpu.memory_space<vmem>>
    %104 = tpu.memref_squeeze %103 : memref<1x1x128xf32, #tpu.memory_space<vmem>> -> memref<1x128xf32, #tpu.memory_space<vmem>>
    %105 = tpu.memref_slice %arg6[%9] : memref<2x!tpu.dma_semaphore, #tpu.memory_space<semaphore_mem>> -> memref<1x!tpu.dma_semaphore, #tpu.memory_space<semaphore_mem>>
    %106 = tpu.memref_squeeze %105 : memref<1x!tpu.dma_semaphore, #tpu.memory_space<semaphore_mem>> -> memref<!tpu.dma_semaphore, #tpu.memory_space<semaphore_mem>>
    tpu.wait_dma2 semaphore(%106 : memref<!tpu.dma_semaphore, #tpu.memory_space<semaphore_mem>>) src(%102 : memref<1x128xf32, #tpu.memory_space<any>>) dst(%104 : memref<1x128xf32, #tpu.memory_space<vmem>>)
    %c0_i32_56 = arith.constant 0 : i32
    %c0_i32_57 = arith.constant 0 : i32
    %107 = tpu.memref_slice %arg3[%arg0, %c0_i32_56, %c0_i32_57] : memref<2x256x128xf32, #tpu.memory_space<any>> -> memref<1x1x128xf32, #tpu.memory_space<any>>
    %108 = tpu.memref_squeeze %107 : memref<1x1x128xf32, #tpu.memory_space<any>> -> memref<1x128xf32, #tpu.memory_space<any>>
    %c15_i32 = arith.constant 15 : i32
    %c0_i32_58 = arith.constant 0 : i32
    %109 = tpu.memref_slice %arg5[%9, %c15_i32, %c0_i32_58] : memref<2x32x128xf32, #tpu.memory_space<vmem>> -> memref<1x1x128xf32, #tpu.memory_space<vmem>>
    %110 = tpu.memref_squeeze %109 : memref<1x1x128xf32, #tpu.memory_space<vmem>> -> memref<1x128xf32, #tpu.memory_space<vmem>>
    %111 = tpu.memref_slice %arg6[%9] : memref<2x!tpu.dma_semaphore, #tpu.memory_space<semaphore_mem>> -> memref<1x!tpu.dma_semaphore, #tpu.memory_space<semaphore_mem>>
    %112 = tpu.memref_squeeze %111 : memref<1x!tpu.dma_semaphore, #tpu.memory_space<semaphore_mem>> -> memref<!tpu.dma_semaphore, #tpu.memory_space<semaphore_mem>>
    tpu.wait_dma2 semaphore(%112 : memref<!tpu.dma_semaphore, #tpu.memory_space<semaphore_mem>>) src(%108 : memref<1x128xf32, #tpu.memory_space<any>>) dst(%110 : memref<1x128xf32, #tpu.memory_space<vmem>>)
    %c0_i32_59 = arith.constant 0 : i32
    %c0_i32_60 = arith.constant 0 : i32
    %113 = tpu.memref_slice %arg3[%arg0, %c0_i32_59, %c0_i32_60] : memref<2x256x128xf32, #tpu.memory_space<any>> -> memref<1x1x128xf32, #tpu.memory_space<any>>
    %114 = tpu.memref_squeeze %113 : memref<1x1x128xf32, #tpu.memory_space<any>> -> memref<1x128xf32, #tpu.memory_space<any>>
    %c16_i32 = arith.constant 16 : i32
    %c0_i32_61 = arith.constant 0 : i32
    %115 = tpu.memref_slice %arg5[%9, %c16_i32, %c0_i32_61] : memref<2x32x128xf32, #tpu.memory_space<vmem>> -> memref<1x1x128xf32, #tpu.memory_space<vmem>>
    %116 = tpu.memref_squeeze %115 : memref<1x1x128xf32, #tpu.memory_space<vmem>> -> memref<1x128xf32, #tpu.memory_space<vmem>>
    %117 = tpu.memref_slice %arg6[%9] : memref<2x!tpu.dma_semaphore, #tpu.memory_space<semaphore_mem>> -> memref<1x!tpu.dma_semaphore, #tpu.memory_space<semaphore_mem>>
    %118 = tpu.memref_squeeze %117 : memref<1x!tpu.dma_semaphore, #tpu.memory_space<semaphore_mem>> -> memref<!tpu.dma_semaphore, #tpu.memory_space<semaphore_mem>>
    tpu.wait_dma2 semaphore(%118 : memref<!tpu.dma_semaphore, #tpu.memory_space<semaphore_mem>>) src(%114 : memref<1x128xf32, #tpu.memory_space<any>>) dst(%116 : memref<1x128xf32, #tpu.memory_space<vmem>>)
    %c0_i32_62 = arith.constant 0 : i32
    %c0_i32_63 = arith.constant 0 : i32
    %119 = tpu.memref_slice %arg3[%arg0, %c0_i32_62, %c0_i32_63] : memref<2x256x128xf32, #tpu.memory_space<any>> -> memref<1x1x128xf32, #tpu.memory_space<any>>
    %120 = tpu.memref_squeeze %119 : memref<1x1x128xf32, #tpu.memory_space<any>> -> memref<1x128xf32, #tpu.memory_space<any>>
    %c17_i32 = arith.constant 17 : i32
    %c0_i32_64 = arith.constant 0 : i32
    %121 = tpu.memref_slice %arg5[%9, %c17_i32, %c0_i32_64] : memref<2x32x128xf32, #tpu.memory_space<vmem>> -> memref<1x1x128xf32, #tpu.memory_space<vmem>>
    %122 = tpu.memref_squeeze %121 : memref<1x1x128xf32, #tpu.memory_space<vmem>> -> memref<1x128xf32, #tpu.memory_space<vmem>>
    %123 = tpu.memref_slice %arg6[%9] : memref<2x!tpu.dma_semaphore, #tpu.memory_space<semaphore_mem>> -> memref<1x!tpu.dma_semaphore, #tpu.memory_space<semaphore_mem>>
    %124 = tpu.memref_squeeze %123 : memref<1x!tpu.dma_semaphore, #tpu.memory_space<semaphore_mem>> -> memref<!tpu.dma_semaphore, #tpu.memory_space<semaphore_mem>>
    tpu.wait_dma2 semaphore(%124 : memref<!tpu.dma_semaphore, #tpu.memory_space<semaphore_mem>>) src(%120 : memref<1x128xf32, #tpu.memory_space<any>>) dst(%122 : memref<1x128xf32, #tpu.memory_space<vmem>>)
    %c0_i32_65 = arith.constant 0 : i32
    %c0_i32_66 = arith.constant 0 : i32
    %125 = tpu.memref_slice %arg3[%arg0, %c0_i32_65, %c0_i32_66] : memref<2x256x128xf32, #tpu.memory_space<any>> -> memref<1x1x128xf32, #tpu.memory_space<any>>
    %126 = tpu.memref_squeeze %125 : memref<1x1x128xf32, #tpu.memory_space<any>> -> memref<1x128xf32, #tpu.memory_space<any>>
    %c18_i32 = arith.constant 18 : i32
    %c0_i32_67 = arith.constant 0 : i32
    %127 = tpu.memref_slice %arg5[%9, %c18_i32, %c0_i32_67] : memref<2x32x128xf32, #tpu.memory_space<vmem>> -> memref<1x1x128xf32, #tpu.memory_space<vmem>>
    %128 = tpu.memref_squeeze %127 : memref<1x1x128xf32, #tpu.memory_space<vmem>> -> memref<1x128xf32, #tpu.memory_space<vmem>>
    %129 = tpu.memref_slice %arg6[%9] : memref<2x!tpu.dma_semaphore, #tpu.memory_space<semaphore_mem>> -> memref<1x!tpu.dma_semaphore, #tpu.memory_space<semaphore_mem>>
    %130 = tpu.memref_squeeze %129 : memref<1x!tpu.dma_semaphore, #tpu.memory_space<semaphore_mem>> -> memref<!tpu.dma_semaphore, #tpu.memory_space<semaphore_mem>>
    tpu.wait_dma2 semaphore(%130 : memref<!tpu.dma_semaphore, #tpu.memory_space<semaphore_mem>>) src(%126 : memref<1x128xf32, #tpu.memory_space<any>>) dst(%128 : memref<1x128xf32, #tpu.memory_space<vmem>>)
    %c0_i32_68 = arith.constant 0 : i32
    %c0_i32_69 = arith.constant 0 : i32
    %131 = tpu.memref_slice %arg3[%arg0, %c0_i32_68, %c0_i32_69] : memref<2x256x128xf32, #tpu.memory_space<any>> -> memref<1x1x128xf32, #tpu.memory_space<any>>
    %132 = tpu.memref_squeeze %131 : memref<1x1x128xf32, #tpu.memory_space<any>> -> memref<1x128xf32, #tpu.memory_space<any>>
    %c19_i32 = arith.constant 19 : i32
    %c0_i32_70 = arith.constant 0 : i32
    %133 = tpu.memref_slice %arg5[%9, %c19_i32, %c0_i32_70] : memref<2x32x128xf32, #tpu.memory_space<vmem>> -> memref<1x1x128xf32, #tpu.memory_space<vmem>>
    %134 = tpu.memref_squeeze %133 : memref<1x1x128xf32, #tpu.memory_space<vmem>> -> memref<1x128xf32, #tpu.memory_space<vmem>>
    %135 = tpu.memref_slice %arg6[%9] : memref<2x!tpu.dma_semaphore, #tpu.memory_space<semaphore_mem>> -> memref<1x!tpu.dma_semaphore, #tpu.memory_space<semaphore_mem>>
    %136 = tpu.memref_squeeze %135 : memref<1x!tpu.dma_semaphore, #tpu.memory_space<semaphore_mem>> -> memref<!tpu.dma_semaphore, #tpu.memory_space<semaphore_mem>>
    tpu.wait_dma2 semaphore(%136 : memref<!tpu.dma_semaphore, #tpu.memory_space<semaphore_mem>>) src(%132 : memref<1x128xf32, #tpu.memory_space<any>>) dst(%134 : memref<1x128xf32, #tpu.memory_space<vmem>>)
    %c0_i32_71 = arith.constant 0 : i32
    %c0_i32_72 = arith.constant 0 : i32
    %137 = tpu.memref_slice %arg3[%arg0, %c0_i32_71, %c0_i32_72] : memref<2x256x128xf32, #tpu.memory_space<any>> -> memref<1x1x128xf32, #tpu.memory_space<any>>
    %138 = tpu.memref_squeeze %137 : memref<1x1x128xf32, #tpu.memory_space<any>> -> memref<1x128xf32, #tpu.memory_space<any>>
    %c20_i32 = arith.constant 20 : i32
    %c0_i32_73 = arith.constant 0 : i32
    %139 = tpu.memref_slice %arg5[%9, %c20_i32, %c0_i32_73] : memref<2x32x128xf32, #tpu.memory_space<vmem>> -> memref<1x1x128xf32, #tpu.memory_space<vmem>>
    %140 = tpu.memref_squeeze %139 : memref<1x1x128xf32, #tpu.memory_space<vmem>> -> memref<1x128xf32, #tpu.memory_space<vmem>>
    %141 = tpu.memref_slice %arg6[%9] : memref<2x!tpu.dma_semaphore, #tpu.memory_space<semaphore_mem>> -> memref<1x!tpu.dma_semaphore, #tpu.memory_space<semaphore_mem>>
    %142 = tpu.memref_squeeze %141 : memref<1x!tpu.dma_semaphore, #tpu.memory_space<semaphore_mem>> -> memref<!tpu.dma_semaphore, #tpu.memory_space<semaphore_mem>>
    tpu.wait_dma2 semaphore(%142 : memref<!tpu.dma_semaphore, #tpu.memory_space<semaphore_mem>>) src(%138 : memref<1x128xf32, #tpu.memory_space<any>>) dst(%140 : memref<1x128xf32, #tpu.memory_space<vmem>>)
    %c0_i32_74 = arith.constant 0 : i32
    %c0_i32_75 = arith.constant 0 : i32
    %143 = tpu.memref_slice %arg3[%arg0, %c0_i32_74, %c0_i32_75] : memref<2x256x128xf32, #tpu.memory_space<any>> -> memref<1x1x128xf32, #tpu.memory_space<any>>
    %144 = tpu.memref_squeeze %143 : memref<1x1x128xf32, #tpu.memory_space<any>> -> memref<1x128xf32, #tpu.memory_space<any>>
    %c21_i32 = arith.constant 21 : i32
    %c0_i32_76 = arith.constant 0 : i32
    %145 = tpu.memref_slice %arg5[%9, %c21_i32, %c0_i32_76] : memref<2x32x128xf32, #tpu.memory_space<vmem>> -> memref<1x1x128xf32, #tpu.memory_space<vmem>>
    %146 = tpu.memref_squeeze %145 : memref<1x1x128xf32, #tpu.memory_space<vmem>> -> memref<1x128xf32, #tpu.memory_space<vmem>>
    %147 = tpu.memref_slice %arg6[%9] : memref<2x!tpu.dma_semaphore, #tpu.memory_space<semaphore_mem>> -> memref<1x!tpu.dma_semaphore, #tpu.memory_space<semaphore_mem>>
    %148 = tpu.memref_squeeze %147 : memref<1x!tpu.dma_semaphore, #tpu.memory_space<semaphore_mem>> -> memref<!tpu.dma_semaphore, #tpu.memory_space<semaphore_mem>>
    tpu.wait_dma2 semaphore(%148 : memref<!tpu.dma_semaphore, #tpu.memory_space<semaphore_mem>>) src(%144 : memref<1x128xf32, #tpu.memory_space<any>>) dst(%146 : memref<1x128xf32, #tpu.memory_space<vmem>>)
    %c0_i32_77 = arith.constant 0 : i32
    %c0_i32_78 = arith.constant 0 : i32
    %149 = tpu.memref_slice %arg3[%arg0, %c0_i32_77, %c0_i32_78] : memref<2x256x128xf32, #tpu.memory_space<any>> -> memref<1x1x128xf32, #tpu.memory_space<any>>
    %150 = tpu.memref_squeeze %149 : memref<1x1x128xf32, #tpu.memory_space<any>> -> memref<1x128xf32, #tpu.memory_space<any>>
    %c22_i32 = arith.constant 22 : i32
    %c0_i32_79 = arith.constant 0 : i32
    %151 = tpu.memref_slice %arg5[%9, %c22_i32, %c0_i32_79] : memref<2x32x128xf32, #tpu.memory_space<vmem>> -> memref<1x1x128xf32, #tpu.memory_space<vmem>>
    %152 = tpu.memref_squeeze %151 : memref<1x1x128xf32, #tpu.memory_space<vmem>> -> memref<1x128xf32, #tpu.memory_space<vmem>>
    %153 = tpu.memref_slice %arg6[%9] : memref<2x!tpu.dma_semaphore, #tpu.memory_space<semaphore_mem>> -> memref<1x!tpu.dma_semaphore, #tpu.memory_space<semaphore_mem>>
    %154 = tpu.memref_squeeze %153 : memref<1x!tpu.dma_semaphore, #tpu.memory_space<semaphore_mem>> -> memref<!tpu.dma_semaphore, #tpu.memory_space<semaphore_mem>>
    tpu.wait_dma2 semaphore(%154 : memref<!tpu.dma_semaphore, #tpu.memory_space<semaphore_mem>>) src(%150 : memref<1x128xf32, #tpu.memory_space<any>>) dst(%152 : memref<1x128xf32, #tpu.memory_space<vmem>>)
    %c0_i32_80 = arith.constant 0 : i32
    %c0_i32_81 = arith.constant 0 : i32
    %155 = tpu.memref_slice %arg3[%arg0, %c0_i32_80, %c0_i32_81] : memref<2x256x128xf32, #tpu.memory_space<any>> -> memref<1x1x128xf32, #tpu.memory_space<any>>
    %156 = tpu.memref_squeeze %155 : memref<1x1x128xf32, #tpu.memory_space<any>> -> memref<1x128xf32, #tpu.memory_space<any>>
    %c23_i32 = arith.constant 23 : i32
    %c0_i32_82 = arith.constant 0 : i32
    %157 = tpu.memref_slice %arg5[%9, %c23_i32, %c0_i32_82] : memref<2x32x128xf32, #tpu.memory_space<vmem>> -> memref<1x1x128xf32, #tpu.memory_space<vmem>>
    %158 = tpu.memref_squeeze %157 : memref<1x1x128xf32, #tpu.memory_space<vmem>> -> memref<1x128xf32, #tpu.memory_space<vmem>>
    %159 = tpu.memref_slice %arg6[%9] : memref<2x!tpu.dma_semaphore, #tpu.memory_space<semaphore_mem>> -> memref<1x!tpu.dma_semaphore, #tpu.memory_space<semaphore_mem>>
    %160 = tpu.memref_squeeze %159 : memref<1x!tpu.dma_semaphore, #tpu.memory_space<semaphore_mem>> -> memref<!tpu.dma_semaphore, #tpu.memory_space<semaphore_mem>>
    tpu.wait_dma2 semaphore(%160 : memref<!tpu.dma_semaphore, #tpu.memory_space<semaphore_mem>>) src(%156 : memref<1x128xf32, #tpu.memory_space<any>>) dst(%158 : memref<1x128xf32, #tpu.memory_space<vmem>>)
    %c0_i32_83 = arith.constant 0 : i32
    %c0_i32_84 = arith.constant 0 : i32
    %161 = tpu.memref_slice %arg3[%arg0, %c0_i32_83, %c0_i32_84] : memref<2x256x128xf32, #tpu.memory_space<any>> -> memref<1x1x128xf32, #tpu.memory_space<any>>
    %162 = tpu.memref_squeeze %161 : memref<1x1x128xf32, #tpu.memory_space<any>> -> memref<1x128xf32, #tpu.memory_space<any>>
    %c24_i32 = arith.constant 24 : i32
    %c0_i32_85 = arith.constant 0 : i32
    %163 = tpu.memref_slice %arg5[%9, %c24_i32, %c0_i32_85] : memref<2x32x128xf32, #tpu.memory_space<vmem>> -> memref<1x1x128xf32, #tpu.memory_space<vmem>>
    %164 = tpu.memref_squeeze %163 : memref<1x1x128xf32, #tpu.memory_space<vmem>> -> memref<1x128xf32, #tpu.memory_space<vmem>>
    %165 = tpu.memref_slice %arg6[%9] : memref<2x!tpu.dma_semaphore, #tpu.memory_space<semaphore_mem>> -> memref<1x!tpu.dma_semaphore, #tpu.memory_space<semaphore_mem>>
    %166 = tpu.memref_squeeze %165 : memref<1x!tpu.dma_semaphore, #tpu.memory_space<semaphore_mem>> -> memref<!tpu.dma_semaphore, #tpu.memory_space<semaphore_mem>>
    tpu.wait_dma2 semaphore(%166 : memref<!tpu.dma_semaphore, #tpu.memory_space<semaphore_mem>>) src(%162 : memref<1x128xf32, #tpu.memory_space<any>>) dst(%164 : memref<1x128xf32, #tpu.memory_space<vmem>>)
    %c0_i32_86 = arith.constant 0 : i32
    %c0_i32_87 = arith.constant 0 : i32
    %167 = tpu.memref_slice %arg3[%arg0, %c0_i32_86, %c0_i32_87] : memref<2x256x128xf32, #tpu.memory_space<any>> -> memref<1x1x128xf32, #tpu.memory_space<any>>
    %168 = tpu.memref_squeeze %167 : memref<1x1x128xf32, #tpu.memory_space<any>> -> memref<1x128xf32, #tpu.memory_space<any>>
    %c25_i32 = arith.constant 25 : i32
    %c0_i32_88 = arith.constant 0 : i32
    %169 = tpu.memref_slice %arg5[%9, %c25_i32, %c0_i32_88] : memref<2x32x128xf32, #tpu.memory_space<vmem>> -> memref<1x1x128xf32, #tpu.memory_space<vmem>>
    %170 = tpu.memref_squeeze %169 : memref<1x1x128xf32, #tpu.memory_space<vmem>> -> memref<1x128xf32, #tpu.memory_space<vmem>>
    %171 = tpu.memref_slice %arg6[%9] : memref<2x!tpu.dma_semaphore, #tpu.memory_space<semaphore_mem>> -> memref<1x!tpu.dma_semaphore, #tpu.memory_space<semaphore_mem>>
    %172 = tpu.memref_squeeze %171 : memref<1x!tpu.dma_semaphore, #tpu.memory_space<semaphore_mem>> -> memref<!tpu.dma_semaphore, #tpu.memory_space<semaphore_mem>>
    tpu.wait_dma2 semaphore(%172 : memref<!tpu.dma_semaphore, #tpu.memory_space<semaphore_mem>>) src(%168 : memref<1x128xf32, #tpu.memory_space<any>>) dst(%170 : memref<1x128xf32, #tpu.memory_space<vmem>>)
    %c0_i32_89 = arith.constant 0 : i32
    %c0_i32_90 = arith.constant 0 : i32
    %173 = tpu.memref_slice %arg3[%arg0, %c0_i32_89, %c0_i32_90] : memref<2x256x128xf32, #tpu.memory_space<any>> -> memref<1x1x128xf32, #tpu.memory_space<any>>
    %174 = tpu.memref_squeeze %173 : memref<1x1x128xf32, #tpu.memory_space<any>> -> memref<1x128xf32, #tpu.memory_space<any>>
    %c26_i32 = arith.constant 26 : i32
    %c0_i32_91 = arith.constant 0 : i32
    %175 = tpu.memref_slice %arg5[%9, %c26_i32, %c0_i32_91] : memref<2x32x128xf32, #tpu.memory_space<vmem>> -> memref<1x1x128xf32, #tpu.memory_space<vmem>>
    %176 = tpu.memref_squeeze %175 : memref<1x1x128xf32, #tpu.memory_space<vmem>> -> memref<1x128xf32, #tpu.memory_space<vmem>>
    %177 = tpu.memref_slice %arg6[%9] : memref<2x!tpu.dma_semaphore, #tpu.memory_space<semaphore_mem>> -> memref<1x!tpu.dma_semaphore, #tpu.memory_space<semaphore_mem>>
    %178 = tpu.memref_squeeze %177 : memref<1x!tpu.dma_semaphore, #tpu.memory_space<semaphore_mem>> -> memref<!tpu.dma_semaphore, #tpu.memory_space<semaphore_mem>>
    tpu.wait_dma2 semaphore(%178 : memref<!tpu.dma_semaphore, #tpu.memory_space<semaphore_mem>>) src(%174 : memref<1x128xf32, #tpu.memory_space<any>>) dst(%176 : memref<1x128xf32, #tpu.memory_space<vmem>>)
    %c0_i32_92 = arith.constant 0 : i32
    %c0_i32_93 = arith.constant 0 : i32
    %179 = tpu.memref_slice %arg3[%arg0, %c0_i32_92, %c0_i32_93] : memref<2x256x128xf32, #tpu.memory_space<any>> -> memref<1x1x128xf32, #tpu.memory_space<any>>
    %180 = tpu.memref_squeeze %179 : memref<1x1x128xf32, #tpu.memory_space<any>> -> memref<1x128xf32, #tpu.memory_space<any>>
    %c27_i32 = arith.constant 27 : i32
    %c0_i32_94 = arith.constant 0 : i32
    %181 = tpu.memref_slice %arg5[%9, %c27_i32, %c0_i32_94] : memref<2x32x128xf32, #tpu.memory_space<vmem>> -> memref<1x1x128xf32, #tpu.memory_space<vmem>>
    %182 = tpu.memref_squeeze %181 : memref<1x1x128xf32, #tpu.memory_space<vmem>> -> memref<1x128xf32, #tpu.memory_space<vmem>>
    %183 = tpu.memref_slice %arg6[%9] : memref<2x!tpu.dma_semaphore, #tpu.memory_space<semaphore_mem>> -> memref<1x!tpu.dma_semaphore, #tpu.memory_space<semaphore_mem>>
    %184 = tpu.memref_squeeze %183 : memref<1x!tpu.dma_semaphore, #tpu.memory_space<semaphore_mem>> -> memref<!tpu.dma_semaphore, #tpu.memory_space<semaphore_mem>>
    tpu.wait_dma2 semaphore(%184 : memref<!tpu.dma_semaphore, #tpu.memory_space<semaphore_mem>>) src(%180 : memref<1x128xf32, #tpu.memory_space<any>>) dst(%182 : memref<1x128xf32, #tpu.memory_space<vmem>>)
    %c0_i32_95 = arith.constant 0 : i32
    %c0_i32_96 = arith.constant 0 : i32
    %185 = tpu.memref_slice %arg3[%arg0, %c0_i32_95, %c0_i32_96] : memref<2x256x128xf32, #tpu.memory_space<any>> -> memref<1x1x128xf32, #tpu.memory_space<any>>
    %186 = tpu.memref_squeeze %185 : memref<1x1x128xf32, #tpu.memory_space<any>> -> memref<1x128xf32, #tpu.memory_space<any>>
    %c28_i32 = arith.constant 28 : i32
    %c0_i32_97 = arith.constant 0 : i32
    %187 = tpu.memref_slice %arg5[%9, %c28_i32, %c0_i32_97] : memref<2x32x128xf32, #tpu.memory_space<vmem>> -> memref<1x1x128xf32, #tpu.memory_space<vmem>>
    %188 = tpu.memref_squeeze %187 : memref<1x1x128xf32, #tpu.memory_space<vmem>> -> memref<1x128xf32, #tpu.memory_space<vmem>>
    %189 = tpu.memref_slice %arg6[%9] : memref<2x!tpu.dma_semaphore, #tpu.memory_space<semaphore_mem>> -> memref<1x!tpu.dma_semaphore, #tpu.memory_space<semaphore_mem>>
    %190 = tpu.memref_squeeze %189 : memref<1x!tpu.dma_semaphore, #tpu.memory_space<semaphore_mem>> -> memref<!tpu.dma_semaphore, #tpu.memory_space<semaphore_mem>>
    tpu.wait_dma2 semaphore(%190 : memref<!tpu.dma_semaphore, #tpu.memory_space<semaphore_mem>>) src(%186 : memref<1x128xf32, #tpu.memory_space<any>>) dst(%188 : memref<1x128xf32, #tpu.memory_space<vmem>>)
    %c0_i32_98 = arith.constant 0 : i32
    %c0_i32_99 = arith.constant 0 : i32
    %191 = tpu.memref_slice %arg3[%arg0, %c0_i32_98, %c0_i32_99] : memref<2x256x128xf32, #tpu.memory_space<any>> -> memref<1x1x128xf32, #tpu.memory_space<any>>
    %192 = tpu.memref_squeeze %191 : memref<1x1x128xf32, #tpu.memory_space<any>> -> memref<1x128xf32, #tpu.memory_space<any>>
    %c29_i32 = arith.constant 29 : i32
    %c0_i32_100 = arith.constant 0 : i32
    %193 = tpu.memref_slice %arg5[%9, %c29_i32, %c0_i32_100] : memref<2x32x128xf32, #tpu.memory_space<vmem>> -> memref<1x1x128xf32, #tpu.memory_space<vmem>>
    %194 = tpu.memref_squeeze %193 : memref<1x1x128xf32, #tpu.memory_space<vmem>> -> memref<1x128xf32, #tpu.memory_space<vmem>>
    %195 = tpu.memref_slice %arg6[%9] : memref<2x!tpu.dma_semaphore, #tpu.memory_space<semaphore_mem>> -> memref<1x!tpu.dma_semaphore, #tpu.memory_space<semaphore_mem>>
    %196 = tpu.memref_squeeze %195 : memref<1x!tpu.dma_semaphore, #tpu.memory_space<semaphore_mem>> -> memref<!tpu.dma_semaphore, #tpu.memory_space<semaphore_mem>>
    tpu.wait_dma2 semaphore(%196 : memref<!tpu.dma_semaphore, #tpu.memory_space<semaphore_mem>>) src(%192 : memref<1x128xf32, #tpu.memory_space<any>>) dst(%194 : memref<1x128xf32, #tpu.memory_space<vmem>>)
    %c0_i32_101 = arith.constant 0 : i32
    %c0_i32_102 = arith.constant 0 : i32
    %197 = tpu.memref_slice %arg3[%arg0, %c0_i32_101, %c0_i32_102] : memref<2x256x128xf32, #tpu.memory_space<any>> -> memref<1x1x128xf32, #tpu.memory_space<any>>
    %198 = tpu.memref_squeeze %197 : memref<1x1x128xf32, #tpu.memory_space<any>> -> memref<1x128xf32, #tpu.memory_space<any>>
    %c30_i32 = arith.constant 30 : i32
    %c0_i32_103 = arith.constant 0 : i32
    %199 = tpu.memref_slice %arg5[%9, %c30_i32, %c0_i32_103] : memref<2x32x128xf32, #tpu.memory_space<vmem>> -> memref<1x1x128xf32, #tpu.memory_space<vmem>>
    %200 = tpu.memref_squeeze %199 : memref<1x1x128xf32, #tpu.memory_space<vmem>> -> memref<1x128xf32, #tpu.memory_space<vmem>>
    %201 = tpu.memref_slice %arg6[%9] : memref<2x!tpu.dma_semaphore, #tpu.memory_space<semaphore_mem>> -> memref<1x!tpu.dma_semaphore, #tpu.memory_space<semaphore_mem>>
    %202 = tpu.memref_squeeze %201 : memref<1x!tpu.dma_semaphore, #tpu.memory_space<semaphore_mem>> -> memref<!tpu.dma_semaphore, #tpu.memory_space<semaphore_mem>>
    tpu.wait_dma2 semaphore(%202 : memref<!tpu.dma_semaphore, #tpu.memory_space<semaphore_mem>>) src(%198 : memref<1x128xf32, #tpu.memory_space<any>>) dst(%200 : memref<1x128xf32, #tpu.memory_space<vmem>>)
    %c0_i32_104 = arith.constant 0 : i32
    %c0_i32_105 = arith.constant 0 : i32
    %203 = tpu.memref_slice %arg3[%arg0, %c0_i32_104, %c0_i32_105] : memref<2x256x128xf32, #tpu.memory_space<any>> -> memref<1x1x128xf32, #tpu.memory_space<any>>
    %204 = tpu.memref_squeeze %203 : memref<1x1x128xf32, #tpu.memory_space<any>> -> memref<1x128xf32, #tpu.memory_space<any>>
    %c31_i32 = arith.constant 31 : i32
    %c0_i32_106 = arith.constant 0 : i32
    %205 = tpu.memref_slice %arg5[%9, %c31_i32, %c0_i32_106] : memref<2x32x128xf32, #tpu.memory_space<vmem>> -> memref<1x1x128xf32, #tpu.memory_space<vmem>>
    %206 = tpu.memref_squeeze %205 : memref<1x1x128xf32, #tpu.memory_space<vmem>> -> memref<1x128xf32, #tpu.memory_space<vmem>>
    %207 = tpu.memref_slice %arg6[%9] : memref<2x!tpu.dma_semaphore, #tpu.memory_space<semaphore_mem>> -> memref<1x!tpu.dma_semaphore, #tpu.memory_space<semaphore_mem>>
    %208 = tpu.memref_squeeze %207 : memref<1x!tpu.dma_semaphore, #tpu.memory_space<semaphore_mem>> -> memref<!tpu.dma_semaphore, #tpu.memory_space<semaphore_mem>>
    tpu.wait_dma2 semaphore(%208 : memref<!tpu.dma_semaphore, #tpu.memory_space<semaphore_mem>>) src(%204 : memref<1x128xf32, #tpu.memory_space<any>>) dst(%206 : memref<1x128xf32, #tpu.memory_space<vmem>>)
    %209 = arith.index_cast %9 : i32 to index
    %c0 = arith.constant 0 : index
    %c0_107 = arith.constant 0 : index
    %210 = vector.load %arg5[%209, %c0, %c0_107] : memref<2x32x128xf32, #tpu.memory_space<vmem>>, vector<1x32x128xf32>
    %211 = vector.shape_cast %210 : vector<1x32x128xf32> to vector<32x128xf32>
    %c0_108 = arith.constant 0 : index
    %c0_109 = arith.constant 0 : index
    %c0_110 = arith.constant 0 : index
    %212 = vector.load %arg4[%c0_108, %c0_109, %c0_110] : memref<1x32x128xf32, #tpu.memory_space<vmem>>, vector<1x32x128xf32>
    %213 = vector.shape_cast %212 : vector<1x32x128xf32> to vector<32x128xf32>
    %214 = vector.shape_cast %211 : vector<32x128xf32> to vector<1x32x128xf32>
    tpu.vector_store %arg4[%c0_108, %c0_109, %c0_110], %214 {strides = array<i32>} : memref<1x32x128xf32, #tpu.memory_space<vmem>>, vector<1x32x128xf32>,
    return
  }
  func.func @transform_1(%arg0: i32, %arg1: i32, %arg2: memref<2x128xi32, #tpu.memory_space<smem>>) -> (i32, i32, i32) {
    %c0_i32 = arith.constant 0 : i32
    %c0_i32_0 = arith.constant 0 : i32
    return %arg0, %arg1, %c0_i32 : i32, i32, i32
  }
}

</mosaic_0001>

<bundles_post_ra>
// kernel: tpu_custom_call.1
= control target key start
LH: loop header
LB: loop body
LE: loop exit
PB: predicated region body
PF: predicated region fallthrough
CT: control target
= control target key end

     0   :  { %s5273_s0 = inlined_call_operand.hbm [shape: s32[2,128], index: 0, kind: input, shape index: {}]   ;;  %s5274_s1 = inlined_call_operand.hbm [shape: f32[2,256,128], index: 1, kind: input, shape index: {}]   ;;  %s5275_s2 = inlined_call_operand.hbm [shape: f32[2,128,128], index: 2, kind: output, shape index: {}]  }
   0x1   :  { %5289 = sst [smem:[#allocation151_spill]] %s5275_s2  ;;  %s2182_s11 = scalar_lea.hbm %s5273_s0, 32 }
   0x2   :  { %p2183_p0 = scmp.ne.s32.totalorder %s5273_s0, %s2182_s11  ;;  %p2186_p1 = scmp.lt.u32.totalorder %s2182_s11, %s5273_s0 }
   0x4   :  { %p2188_p2 = pnand %p2186_p1, %p2183_p0 }
   0x6   :  { %2191 = shalt.err (!%p2188_p2)  }
   0x7   :  { %s3804_s16 = smov [#allocation5]  }
   0x8   :  { %8 = dma.hbm_to_smem %s5273_s0, 32, %s3804_s16, [#allocation4] }
   0x9   :  { %3776 = dma.done.wait [#allocation4], 32 }
   0xa   :  { %3777 = vsyncadd [#allocation4], 4294967264 }
   0xb   :  { %10 = sfence }
   0xc   :  { %11 = vsyncpa [#allocation7], 0 }
   0xd   :  { %13 = vsyncpa [#allocation7 + $0x1], 0  ;;  %s3868_s19 = smov 0   ;;  %s3870_s20 = smov 0  }
   0xe   :  { %s3872_s21 = smov 0   ;;  %s3874_s22 = smov 0  }
   0xf   :  { %s3876_s23 = smov 0  }
  0x10 LB: > { %5290 = sst [smem:[#allocation141_spill]] %s3786_s19  ;;  %s25_s0 = sadd.s32 1, %s3794_s21  ;;  %s3802_s23 = sphi %s3876_s23, %s19_s23   ;;  %s3798_s22 = sphi %s3874_s22, %s5317_s22   ;;  %s3794_s21 = sphi %s3872_s21, %s5316_s21   ;;  %s3790_s20 = sphi %s3870_s20, %s5315_s20   ;;  %s3786_s19 = sphi %s3868_s19, %s5314_s19  }
  0x11   : > { %5291 = sst [smem:[#allocation142_spill]] %s3790_s20  ;;  %p3894_p3 = scmp.ge.s32.totalorder %s25_s0, 4 }
  0x12   : > { %5292 = sst [smem:[#allocation143_spill]] %s3794_s21  ;;  %s28_s25 = sadd.s32 1, %s3798_s22 }
  0x13   : > { %5293 = sst [smem:[#allocation144_spill]] %s3802_s23  ;;  %s1948_s26 = sadd.s32 4294967295, %s3802_s23  }
  0x14   : > { %s5319_s0 = smov (%p3894_p3, %s25_s0), 0  ;;  %s5321_s25 = smov (!%p3894_p3, %s28_s25), %s3798_s22 }
  0x15   : > { %5295 = sst [smem:[#allocation145_spill]] %s5319_s0  ;;  %p46_p4 = scmp.ne.s32.totalorder %s3790_s20, %s3786_s19 }
  0x16   : > { %p30_p5 = scmp.ge.s32.totalorder %s5321_s25, 2  ;;  %p47_p6 = scmp.eq.s32.totalorder %s1948_s26, 7 }
  0x17   : > { %s33_s27 = ssub.s32 %s3794_s21, %s5319_s0  ;;  %s37_s30 = sadd.s32 1, %s3790_s20 }
  0x18   : > { %s5323_s25 = smov (%p30_p5, %s5321_s25), 0  ;;  %p3913_p7 = por %p47_p6, %p46_p4 }
  0x19   : > { %5296 = sst [smem:[#allocation146_spill]] %s5323_s25  ;;  %s32_s29 = ssub.s32 %s3798_s22, %s5323_s25 }
  0x1a   : > { %s5297_s28 = scalar_select %p3913_p7, 1, 0 }
  0x1b   : > { %s34_s3 = sor.u32 %s33_s27, %s32_s29  ;;  %p41_p8 = scmp.eq.s32.totalorder %s3802_s23, 7 }
  0x1c   : > { %5298 = sst [smem:[#allocation147_spill]] %s5297_s28  ;;  %p35_p9 = scmp.eq.s32.totalorder %s34_s3, 0 }
  0x1d   : > { %p1949_p10 = scmp.ne.s32.totalorder %s34_s3, 0  ;;  %p1950_p12 = scmp.ge.s32.totalorder %s3802_s23, 8 }
  0x1e   : > { %s3922_s4 = scalar_select %p35_p9, %s3790_s20, %s37_s30  }
  0x1f   : > { %p3924_p11 = por %p1949_p10, %p41_p8  ;;  %56 = sbr.rel (%p1950_p12) target bundleno = 1642 (0x66a), region = 12 }
  0x20   : > { %5299 = sst [smem:[#allocation148_spill]] %s3922_s4 }
  0x21   : > { %s5300_s5 = scalar_select %p3924_p11, 1, 0 }
  0x23   : > { %5301 = sst [smem:[#allocation149_spill]] %s5300_s5 }
  0x26   : > { %s5276_s6 = sand.u32 1, %s3790_s20   ;;  %s66_s8 = ssub.s32 0, %s3794_s21 }
  0x27   : > { %s1951_s7 = sshll.u32 %s5276_s6, 5  ;;  %s1952_s9 = smin.u32 %s3794_s21, %s66_s8 }
  0x28   : > { %s68_s10 = sand.u32 1, %s1952_s9   ;;  %s3936_s12 = scalar_lea.vmem [#allocation6], %s1951_s7 }
  0x29   : > { %p1954_p13 = scmp.lt.s32.totalorder %s68_s10, 0  ;;  %s75_s11 = sadd.s32 2, %s68_s10 }
  0x2a   : > { %5302 = sst [smem:[#allocation150_spill]] %s3936_s12  ;;  %p1955_p0 = scmp.ne.s32.totalorder %s3794_s21, 0 }
  0x2b   : > { %s5325_s11 = smov (!%p1954_p13, %s75_s11), %s68_s10  ;;  %s3940_s13 = sshll.u32 (!%p1955_p0), %s3798_s22, 7 }
  0x2c   : > { %80 = sbr.rel (%p1955_p0) target bundleno = 785 (0x311), region = 16  ;;  %s3943_s14 = sshll.u32 (!%p1955_p0), %s3798_s22, 8 }
  0x2d   : > { %s82_s15 = sld [smem:[#allocation5 + %s3940_s13]] (!%p1955_p0)  ;;  %s3805_s16 = smov (!%p1955_p0), [#allocation2]  }
  0x2e   : > { %s94_s17 = sshll.u32 (!%p1955_p0), %s3805_s16, 4  ;;  %s98_s18 = sadd.s32 (!%p1955_p0), 1, %s3940_s13  ;;  %s3947_s17 = int_to_ptr.vmem [resolvable:$true] %s94_s17 }
  0x2f   : > { %s3949_s26 = sld [smem:[#allocation5 + %s98_s18]] (!%p1955_p0)  ;;  %s115_s27 = sadd.s32 (!%p1955_p0), 2, %s3940_s13 }
  0x30   : > { %s3806_s29 = smov (!%p1955_p0), [#allocation2 + $0x1]   ;;  %s3952_s3 = sld [smem:[#allocation5 + %s115_s27]] (!%p1955_p0) }
  0x31   : > { %s111_s30 = sshll.u32 (!%p1955_p0), %s3806_s29, 4  ;;  %s3807_s8 = smov (!%p1955_p0), [#allocation2 + $0x2]   ;;  %s3954_s30 = int_to_ptr.vmem [resolvable:$true] %s111_s30 }
  0x32   : > { %s128_s9 = sshll.u32 (!%p1955_p0), %s3807_s8, 4  ;;  %s3967_s27 = scalar_lea.hbm (!%p1955_p0), %s5274_s1, 8192  ;;  %s3957_s9 = int_to_ptr.vmem [resolvable:$true] %s128_s9 }
  0x33   : > { %s84_s7 = sadd.s32 %s3943_s14, %s82_s15 }
  0x34   : > { %s1958_s10 = sshll.u32 %s84_s7, 4 }
  0x35   : > { %s86_s25 = scalar_lea.hbm %s5274_s1, %s1958_s10  ;;  %s100_s18 = sadd.s32 %s3943_s14, %s3949_s26 }
  0x36   : > { %s2192_s0 = scalar_lea.hbm %s86_s25, 16  ;;  %p2195_p2 = scmp.lt.u32.totalorder %s86_s25, %s5274_s1 }
  0x37   : > { %p2193_p1 = scmp.ne.s32.totalorder %s86_s25, %s2192_s0  ;;  %p2196_p4 = scmp.lt.u32.totalorder %s3967_s27, %s2192_s0 }
  0x38   : > { %p2198_p6 = scmp.lt.u32.totalorder %s2192_s0, %s86_s25 }
  0x39   : > { %p2197_p5 = por %p2196_p4, %p2195_p2 }
  0x3b   : > { %p2199_p8 = por %p2198_p6, %p2197_p5 }
  0x3d   : > { %p2200_p9 = pnand %p2199_p8, %p2193_p1 }
  0x3f   : > { %2203 = shalt.err (!%p2200_p9)  }
  0x40   : > { %s2204_s6 = scalar_lea.vmem %s3947_s17, 16  ;;  %s3976_s28 = scalar_lea.vmem %s3947_s17, 1024 }
  0x41   : > { %p2205_p10 = scmp.ne.s32.totalorder %s3947_s17, %s2204_s6  ;;  %p2209_p12 = scmp.lt.s32.totalorder %s3947_s17, %s3947_s17 }
  0x42   : > { %p2210_p13 = scmp.lt.s32.totalorder %s3976_s28, %s2204_s6 }
  0x44   : > { %p2211_p0 = por %p2210_p13, %p2209_p12 }
  0x46   : > { %p2212_p7 = pnand %p2211_p0, %p2205_p10 }
  0x48   : > { %2215 = shalt.err (!%p2212_p7)  }
  0x49   : > { %97 = dma.hbm_to_vmem [thread:$0]  %s86_s25, 16, %s3947_s17, [#allocation3] }
  0x4a   : > { %s1959_s19 = sshll.u32 %s100_s18, 4  ;;  %s117_s0 = sadd.s32 %s3943_s14, %s3952_s3 }
  0x4b   : > { %s102_s26 = scalar_lea.hbm %s5274_s1, %s1959_s19  ;;  %s1960_s7 = sshll.u32 %s117_s0, 4 }
  0x4c   : > { %s2216_s8 = scalar_lea.hbm %s102_s26, 16  ;;  %p2219_p2 = scmp.lt.u32.totalorder %s102_s26, %s5274_s1 }
  0x4d   : > { %p2217_p1 = scmp.ne.s32.totalorder %s102_s26, %s2216_s8  ;;  %p2220_p4 = scmp.lt.u32.totalorder %s3967_s27, %s2216_s8 }
  0x4e   : > { %p2222_p5 = scmp.lt.u32.totalorder %s2216_s8, %s102_s26 }
  0x4f   : > { %p2221_p7 = por %p2220_p4, %p2219_p2 }
  0x51   : > { %p2223_p6 = por %p2222_p5, %p2221_p7 }
  0x53   : > { %p2224_p8 = pnand %p2223_p6, %p2217_p1 }
  0x55   : > { %2227 = shalt.err (!%p2224_p8)  }
  0x56   : > { %s2228_s25 = scalar_lea.vmem %s3954_s30, 16  ;;  %p2233_p10 = scmp.lt.s32.totalorder %s3954_s30, %s3947_s17 }
  0x57   : > { %p2229_p9 = scmp.ne.s32.totalorder %s3954_s30, %s2228_s25  ;;  %p2234_p12 = scmp.lt.s32.totalorder %s3976_s28, %s2228_s25 }
  0x59   : > { %p2235_p13 = por %p2234_p12, %p2233_p10 }
  0x5b   : > { %p2236_p0 = pnand %p2235_p13, %p2229_p9 }
  0x5d   : > { %2239 = shalt.err (!%p2236_p0)  }
  0x5e   : > { %114 = dma.hbm_to_vmem [thread:$0]  %s102_s26, 16, %s3954_s30, [#allocation3] }
  0x5f   : > { %s119_s29 = scalar_lea.hbm %s5274_s1, %s1960_s7  ;;  %s132_s6 = sadd.s32 3, %s3940_s13 }
  0x60   : > { %s2240_s19 = scalar_lea.hbm %s119_s29, 16  ;;  %p2243_p2 = scmp.lt.u32.totalorder %s119_s29, %s5274_s1 }
  0x61   : > { %p2241_p1 = scmp.ne.s32.totalorder %s119_s29, %s2240_s19  ;;  %p2244_p4 = scmp.lt.u32.totalorder %s3967_s27, %s2240_s19 }
  0x62   : > { %p2246_p5 = scmp.lt.u32.totalorder %s2240_s19, %s119_s29 }
  0x63   : > { %p2245_p7 = por %p2244_p4, %p2243_p2 }
  0x65   : > { %p2247_p6 = por %p2246_p5, %p2245_p7 }
  0x67   : > { %p2248_p8 = pnand %p2247_p6, %p2241_p1 }
  0x69   : > { %2251 = shalt.err (!%p2248_p8)  }
  0x6a   : > { %s2252_s30 = scalar_lea.vmem %s3957_s9, 16  ;;  %p2257_p10 = scmp.lt.s32.totalorder %s3957_s9, %s3947_s17 }
  0x6b   : > { %p2253_p9 = scmp.ne.s32.totalorder %s3957_s9, %s2252_s30  ;;  %p2258_p12 = scmp.lt.s32.totalorder %s3976_s28, %s2252_s30 }
  0x6d   : > { %p2259_p13 = por %p2258_p12, %p2257_p10 }
  0x6f   : > { %p2260_p0 = pnand %p2259_p13, %p2253_p9 }
  0x71   : > { %2263 = shalt.err (!%p2260_p0)  }
  0x72   : > { %131 = dma.hbm_to_vmem [thread:$0]  %s119_s29, 16, %s3957_s9, [#allocation3] }
  0x73   : > { %s133_s15 = sld [smem:[#allocation5 + %s132_s6]]  ;;  %s3808_s26 = smov [#allocation2 + $0x3]  }
  0x74   : > { %s145_s7 = sshll.u32 %s3808_s26, 4  ;;  %s149_s8 = sadd.s32 4, %s3940_s13  ;;  %s4012_s7 = int_to_ptr.vmem [resolvable:$true] %s145_s7 }
  0x75   : > { %s4014_s10 = sld [smem:[#allocation5 + %s149_s8]]  ;;  %s166_s16 = sadd.s32 5, %s3940_s13 }
  0x76   : > { %s3809_s25 = smov [#allocation2 + $0x4]   ;;  %s4017_s18 = sld [smem:[#allocation5 + %s166_s16]] }
  0x77   : > { %s162_s3 = sshll.u32 %s3809_s25, 4  ;;  %s3810_s9 = smov [#allocation2 + $0x5]   ;;  %s4019_s3 = int_to_ptr.vmem [resolvable:$true] %s162_s3 }
  0x78   : > { %s179_s29 = sshll.u32 %s3810_s9, 4  ;;  %s4022_s29 = int_to_ptr.vmem [resolvable:$true] %s179_s29 }
  0x79   : > { %s134_s19 = sadd.s32 %s3943_s14, %s133_s15 }
  0x7a   : > { %s1961_s6 = sshll.u32 %s134_s19, 4 }
  0x7b   : > { %s136_s30 = scalar_lea.hbm %s5274_s1, %s1961_s6  ;;  %s151_s26 = sadd.s32 %s3943_s14, %s4014_s10 }
  0x7c   : > { %s2264_s8 = scalar_lea.hbm %s136_s30, 16  ;;  %p2267_p2 = scmp.lt.u32.totalorder %s136_s30, %s5274_s1 }
  0x7d   : > { %p2265_p1 = scmp.ne.s32.totalorder %s136_s30, %s2264_s8  ;;  %p2268_p4 = scmp.lt.u32.totalorder %s3967_s27, %s2264_s8 }
  0x7e   : > { %p2270_p5 = scmp.lt.u32.totalorder %s2264_s8, %s136_s30 }
  0x7f   : > { %p2269_p7 = por %p2268_p4, %p2267_p2 }
  0x81   : > { %p2271_p6 = por %p2270_p5, %p2269_p7 }
  0x83   : > { %p2272_p8 = pnand %p2271_p6, %p2265_p1 }
  0x85   : > { %2275 = shalt.err (!%p2272_p8)  }
  0x86   : > { %s2276_s15 = scalar_lea.vmem %s4012_s7, 16  ;;  %p2281_p10 = scmp.lt.s32.totalorder %s4012_s7, %s3947_s17 }
  0x87   : > { %p2277_p9 = scmp.ne.s32.totalorder %s4012_s7, %s2276_s15  ;;  %p2282_p12 = scmp.lt.s32.totalorder %s3976_s28, %s2276_s15 }
  0x89   : > { %p2283_p13 = por %p2282_p12, %p2281_p10 }
  0x8b   : > { %p2284_p0 = pnand %p2283_p13, %p2277_p9 }
  0x8d   : > { %2287 = shalt.err (!%p2284_p0)  }
  0x8e   : > { %148 = dma.hbm_to_vmem [thread:$0]  %s136_s30, 16, %s4012_s7, [#allocation3] }
  0x8f   : > { %s1962_s2 = sshll.u32 %s151_s26, 4  ;;  %s168_s23 = sadd.s32 %s3943_s14, %s4017_s18 }
  0x90   : > { %s153_s25 = scalar_lea.hbm %s5274_s1, %s1962_s2  ;;  %s1963_s19 = sshll.u32 %s168_s23, 4 }
  0x91   : > { %s2288_s9 = scalar_lea.hbm %s153_s25, 16  ;;  %p2291_p2 = scmp.lt.u32.totalorder %s153_s25, %s5274_s1 }
  0x92   : > { %p2289_p1 = scmp.ne.s32.totalorder %s153_s25, %s2288_s9  ;;  %p2292_p4 = scmp.lt.u32.totalorder %s3967_s27, %s2288_s9 }
  0x93   : > { %p2294_p5 = scmp.lt.u32.totalorder %s2288_s9, %s153_s25 }
  0x94   : > { %p2293_p7 = por %p2292_p4, %p2291_p2 }
  0x96   : > { %p2295_p6 = por %p2294_p5, %p2293_p7 }
  0x98   : > { %p2296_p8 = pnand %p2295_p6, %p2289_p1 }
  0x9a   : > { %2299 = shalt.err (!%p2296_p8)  }
  0x9b   : > { %s2300_s7 = scalar_lea.vmem %s4019_s3, 16  ;;  %p2305_p10 = scmp.lt.s32.totalorder %s4019_s3, %s3947_s17 }
  0x9c   : > { %p2301_p9 = scmp.ne.s32.totalorder %s4019_s3, %s2300_s7  ;;  %p2306_p12 = scmp.lt.s32.totalorder %s3976_s28, %s2300_s7 }
  0x9e   : > { %p2307_p13 = por %p2306_p12, %p2305_p10 }
  0xa0   : > { %p2308_p0 = pnand %p2307_p13, %p2301_p9 }
  0xa2   : > { %2311 = shalt.err (!%p2308_p0)  }
  0xa3   : > { %165 = dma.hbm_to_vmem [thread:$0]  %s153_s25, 16, %s4019_s3, [#allocation3] }
  0xa4   : > { %s170_s30 = scalar_lea.hbm %s5274_s1, %s1963_s19  ;;  %s183_s26 = sadd.s32 6, %s3940_s13 }
  0xa5   : > { %s2312_s8 = scalar_lea.hbm %s170_s30, 16  ;;  %p2315_p2 = scmp.lt.u32.totalorder %s170_s30, %s5274_s1 }
  0xa6   : > { %p2313_p1 = scmp.ne.s32.totalorder %s170_s30, %s2312_s8  ;;  %p2316_p4 = scmp.lt.u32.totalorder %s3967_s27, %s2312_s8 }
  0xa7   : > { %p2318_p5 = scmp.lt.u32.totalorder %s2312_s8, %s170_s30 }
  0xa8   : > { %p2317_p7 = por %p2316_p4, %p2315_p2 }
  0xaa   : > { %p2319_p6 = por %p2318_p5, %p2317_p7 }
  0xac   : > { %p2320_p8 = pnand %p2319_p6, %p2313_p1 }
  0xae   : > { %2323 = shalt.err (!%p2320_p8)  }
  0xaf   : > { %s2324_s3 = scalar_lea.vmem %s4022_s29, 16  ;;  %p2329_p10 = scmp.lt.s32.totalorder %s4022_s29, %s3947_s17 }
  0xb0   : > { %p2325_p9 = scmp.ne.s32.totalorder %s4022_s29, %s2324_s3  ;;  %p2330_p12 = scmp.lt.s32.totalorder %s3976_s28, %s2324_s3 }
  0xb2   : > { %p2331_p13 = por %p2330_p12, %p2329_p10 }
  0xb4   : > { %p2332_p0 = pnand %p2331_p13, %p2325_p9 }
  0xb6   : > { %2335 = shalt.err (!%p2332_p0)  }
  0xb7   : > { %182 = dma.hbm_to_vmem [thread:$0]  %s170_s30, 16, %s4022_s29, [#allocation3] }
  0xb8   : > { %s184_s23 = sld [smem:[#allocation5 + %s183_s26]]  ;;  %s3811_s10 = smov [#allocation2 + $0x6]  }
  0xb9   : > { %s196_s16 = sshll.u32 %s3811_s10, 4  ;;  %s200_s25 = sadd.s32 7, %s3940_s13  ;;  %s4069_s16 = int_to_ptr.vmem [resolvable:$true] %s196_s16 }
  0xba   : > { %s4071_s19 = sld [smem:[#allocation5 + %s200_s25]]  ;;  %s217_s9 = sadd.s32 8, %s3940_s13 }
  0xbb   : > { %s3812_s6 = smov [#allocation2 + $0x7]   ;;  %s4074_s7 = sld [smem:[#allocation5 + %s217_s9]] }
  0xbc   : > { %s213_s0 = sshll.u32 %s3812_s6, 4  ;;  %s3813_s29 = smov [#allocation2 + $0x8]   ;;  %s4076_s0 = int_to_ptr.vmem [resolvable:$true] %s213_s0 }
  0xbd   : > { %s230_s4 = sshll.u32 %s3813_s29, 4  ;;  %s4079_s4 = int_to_ptr.vmem [resolvable:$true] %s230_s4 }
  0xbe   : > { %s185_s18 = sadd.s32 %s3943_s14, %s184_s23 }
  0xbf   : > { %s1964_s30 = sshll.u32 %s185_s18, 4 }
  0xc0   : > { %s187_s15 = scalar_lea.hbm %s5274_s1, %s1964_s30  ;;  %s202_s2 = sadd.s32 %s3943_s14, %s4071_s19 }
  0xc1   : > { %s2336_s3 = scalar_lea.hbm %s187_s15, 16  ;;  %p2339_p2 = scmp.lt.u32.totalorder %s187_s15, %s5274_s1 }
  0xc2   : > { %p2337_p1 = scmp.ne.s32.totalorder %s187_s15, %s2336_s3  ;;  %p2340_p4 = scmp.lt.u32.totalorder %s3967_s27, %s2336_s3 }
  0xc3   : > { %p2342_p5 = scmp.lt.u32.totalorder %s2336_s3, %s187_s15 }
  0xc4   : > { %p2341_p7 = por %p2340_p4, %p2339_p2 }
  0xc6   : > { %p2343_p6 = por %p2342_p5, %p2341_p7 }
  0xc8   : > { %p2344_p8 = pnand %p2343_p6, %p2337_p1 }
  0xca   : > { %2347 = shalt.err (!%p2344_p8)  }
  0xcb   : > { %s2348_s23 = scalar_lea.vmem %s4069_s16, 16  ;;  %p2353_p10 = scmp.lt.s32.totalorder %s4069_s16, %s3947_s17 }
  0xcc   : > { %p2349_p9 = scmp.ne.s32.totalorder %s4069_s16, %s2348_s23  ;;  %p2354_p12 = scmp.lt.s32.totalorder %s3976_s28, %s2348_s23 }
  0xce   : > { %p2355_p13 = por %p2354_p12, %p2353_p10 }
  0xd0   : > { %p2356_p0 = pnand %p2355_p13, %p2349_p9 }
  0xd2   : > { %2359 = shalt.err (!%p2356_p0)  }
  0xd3   : > { %199 = dma.hbm_to_vmem [thread:$0]  %s187_s15, 16, %s4069_s16, [#allocation3] }
  0xd4   : > { %s1965_s19 = sshll.u32 %s202_s2, 4  ;;  %s219_s9 = sadd.s32 %s3943_s14, %s4074_s7 }
  0xd5   : > { %s204_s29 = scalar_lea.hbm %s5274_s1, %s1965_s19  ;;  %s1966_s30 = sshll.u32 %s219_s9, 4 }
  0xd6   : > { %s2360_s26 = scalar_lea.hbm %s204_s29, 16  ;;  %p2363_p2 = scmp.lt.u32.totalorder %s204_s29, %s5274_s1 }
  0xd7   : > { %p2361_p1 = scmp.ne.s32.totalorder %s204_s29, %s2360_s26  ;;  %p2364_p4 = scmp.lt.u32.totalorder %s3967_s27, %s2360_s26 }
  0xd8   : > { %p2366_p5 = scmp.lt.u32.totalorder %s2360_s26, %s204_s29 }
  0xd9   : > { %p2365_p7 = por %p2364_p4, %p2363_p2 }
  0xdb   : > { %p2367_p6 = por %p2366_p5, %p2365_p7 }
  0xdd   : > { %p2368_p8 = pnand %p2367_p6, %p2361_p1 }
  0xdf   : > { %2371 = shalt.err (!%p2368_p8)  }
  0xe0   : > { %s2372_s16 = scalar_lea.vmem %s4076_s0, 16  ;;  %p2377_p10 = scmp.lt.s32.totalorder %s4076_s0, %s3947_s17 }
  0xe1   : > { %p2373_p9 = scmp.ne.s32.totalorder %s4076_s0, %s2372_s16  ;;  %p2378_p12 = scmp.lt.s32.totalorder %s3976_s28, %s2372_s16 }
  0xe3   : > { %p2379_p13 = por %p2378_p12, %p2377_p10 }
  0xe5   : > { %p2380_p0 = pnand %p2379_p13, %p2373_p9 }
  0xe7   : > { %2383 = shalt.err (!%p2380_p0)  }
  0xe8   : > { %216 = dma.hbm_to_vmem [thread:$0]  %s204_s29, 16, %s4076_s0, [#allocation3] }
  0xe9   : > { %s221_s2 = scalar_lea.hbm %s5274_s1, %s1966_s30  ;;  %s234_s10 = sadd.s32 9, %s3940_s13 }
  0xea   : > { %s2384_s25 = scalar_lea.hbm %s221_s2, 16  ;;  %p2387_p2 = scmp.lt.u32.totalorder %s221_s2, %s5274_s1 }
  0xeb   : > { %p2385_p1 = scmp.ne.s32.totalorder %s221_s2, %s2384_s25  ;;  %p2388_p4 = scmp.lt.u32.totalorder %s3967_s27, %s2384_s25 }
  0xec   : > { %p2390_p5 = scmp.lt.u32.totalorder %s2384_s25, %s221_s2 }
  0xed   : > { %p2389_p7 = por %p2388_p4, %p2387_p2 }
  0xef   : > { %p2391_p6 = por %p2390_p5, %p2389_p7 }
  0xf1   : > { %p2392_p8 = pnand %p2391_p6, %p2385_p1 }
  0xf3   : > { %2395 = shalt.err (!%p2392_p8)  }
  0xf4   : > { %s2396_s0 = scalar_lea.vmem %s4079_s4, 16  ;;  %p2401_p10 = scmp.lt.s32.totalorder %s4079_s4, %s3947_s17 }
  0xf5   : > { %p2397_p9 = scmp.ne.s32.totalorder %s4079_s4, %s2396_s0  ;;  %p2402_p12 = scmp.lt.s32.totalorder %s3976_s28, %s2396_s0 }
  0xf7   : > { %p2403_p13 = por %p2402_p12, %p2401_p10 }
  0xf9   : > { %p2404_p0 = pnand %p2403_p13, %p2397_p9 }
  0xfb   : > { %2407 = shalt.err (!%p2404_p0)  }
  0xfc   : > { %233 = dma.hbm_to_vmem [thread:$0]  %s221_s2, 16, %s4079_s4, [#allocation3] }
  0xfd   : > { %s235_s9 = sld [smem:[#allocation5 + %s234_s10]]  ;;  %s3814_s6 = smov [#allocation2 + $0x9]  }
  0xfe   : > { %s247_s18 = sshll.u32 %s3814_s6, 4  ;;  %s251_s29 = sadd.s32 10, %s3940_s13  ;;  %s4126_s18 = int_to_ptr.vmem [resolvable:$true] %s247_s18 }
  0xff   : > { %s4128_s30 = sld [smem:[#allocation5 + %s251_s29]]  ;;  %s268_s26 = sadd.s32 11, %s3940_s13 }
 0x100   : > { %s3815_s8 = smov [#allocation2 + $0xa]   ;;  %s4131_s16 = sld [smem:[#allocation5 + %s268_s26]] }
 0x101   : > { %s264_s3 = sshll.u32 %s3815_s8, 4  ;;  %s3816_s4 = smov [#allocation2 + $0xb]   ;;  %s4133_s3 = int_to_ptr.vmem [resolvable:$true] %s264_s3 }
 0x102   : > { %s281_s15 = sshll.u32 %s3816_s4, 4  ;;  %s4136_s15 = int_to_ptr.vmem [resolvable:$true] %s281_s15 }
 0x103   : > { %s236_s7 = sadd.s32 %s3943_s14, %s235_s9 }
 0x104   : > { %s1967_s2 = sshll.u32 %s236_s7, 4 }
 0x105   : > { %s238_s23 = scalar_lea.hbm %s5274_s1, %s1967_s2  ;;  %s253_s19 = sadd.s32 %s3943_s14, %s4128_s30 }
 0x106   : > { %s2408_s0 = scalar_lea.hbm %s238_s23, 16  ;;  %p2411_p2 = scmp.lt.u32.totalorder %s238_s23, %s5274_s1 }
 0x107   : > { %p2409_p1 = scmp.ne.s32.totalorder %s238_s23, %s2408_s0  ;;  %p2412_p4 = scmp.lt.u32.totalorder %s3967_s27, %s2408_s0 }
 0x108   : > { %p2414_p5 = scmp.lt.u32.totalorder %s2408_s0, %s238_s23 }
 0x109   : > { %p2413_p7 = por %p2412_p4, %p2411_p2 }
 0x10b   : > { %p2415_p6 = por %p2414_p5, %p2413_p7 }
 0x10d   : > { %p2416_p8 = pnand %p2415_p6, %p2409_p1 }
 0x10f   : > { %2419 = shalt.err (!%p2416_p8)  }
 0x110   : > { %s2420_s9 = scalar_lea.vmem %s4126_s18, 16  ;;  %p2425_p10 = scmp.lt.s32.totalorder %s4126_s18, %s3947_s17 }
 0x111   : > { %p2421_p9 = scmp.ne.s32.totalorder %s4126_s18, %s2420_s9  ;;  %p2426_p12 = scmp.lt.s32.totalorder %s3976_s28, %s2420_s9 }
 0x113   : > { %p2427_p13 = por %p2426_p12, %p2425_p10 }
 0x115   : > { %p2428_p0 = pnand %p2427_p13, %p2421_p9 }
 0x117   : > { %2431 = shalt.err (!%p2428_p0)  }
 0x118   : > { %250 = dma.hbm_to_vmem [thread:$0]  %s238_s23, 16, %s4126_s18, [#allocation3] }
 0x119   : > { %s1968_s30 = sshll.u32 %s253_s19, 4  ;;  %s270_s26 = sadd.s32 %s3943_s14, %s4131_s16 }
 0x11a   : > { %s255_s4 = scalar_lea.hbm %s5274_s1, %s1968_s30  ;;  %s1969_s2 = sshll.u32 %s270_s26, 4 }
 0x11b   : > { %s2432_s10 = scalar_lea.hbm %s255_s4, 16  ;;  %p2435_p2 = scmp.lt.u32.totalorder %s255_s4, %s5274_s1 }
 0x11c   : > { %p2433_p1 = scmp.ne.s32.totalorder %s255_s4, %s2432_s10  ;;  %p2436_p4 = scmp.lt.u32.totalorder %s3967_s27, %s2432_s10 }
 0x11d   : > { %p2438_p5 = scmp.lt.u32.totalorder %s2432_s10, %s255_s4 }
 0x11e   : > { %p2437_p7 = por %p2436_p4, %p2435_p2 }
 0x120   : > { %p2439_p6 = por %p2438_p5, %p2437_p7 }
 0x122   : > { %p2440_p8 = pnand %p2439_p6, %p2433_p1 }
 0x124   : > { %2443 = shalt.err (!%p2440_p8)  }
 0x125   : > { %s2444_s18 = scalar_lea.vmem %s4133_s3, 16  ;;  %p2449_p10 = scmp.lt.s32.totalorder %s4133_s3, %s3947_s17 }
 0x126   : > { %p2445_p9 = scmp.ne.s32.totalorder %s4133_s3, %s2444_s18  ;;  %p2450_p12 = scmp.lt.s32.totalorder %s3976_s28, %s2444_s18 }
 0x128   : > { %p2451_p13 = por %p2450_p12, %p2449_p10 }
 0x12a   : > { %p2452_p0 = pnand %p2451_p13, %p2445_p9 }
 0x12c   : > { %2455 = shalt.err (!%p2452_p0)  }
 0x12d   : > { %267 = dma.hbm_to_vmem [thread:$0]  %s255_s4, 16, %s4133_s3, [#allocation3] }
 0x12e   : > { %s272_s19 = scalar_lea.hbm %s5274_s1, %s1969_s2  ;;  %s285_s6 = sadd.s32 12, %s3940_s13 }
 0x12f   : > { %s2456_s29 = scalar_lea.hbm %s272_s19, 16  ;;  %p2459_p2 = scmp.lt.u32.totalorder %s272_s19, %s5274_s1 }
 0x130   : > { %p2457_p1 = scmp.ne.s32.totalorder %s272_s19, %s2456_s29  ;;  %p2460_p4 = scmp.lt.u32.totalorder %s3967_s27, %s2456_s29 }
 0x131   : > { %p2462_p5 = scmp.lt.u32.totalorder %s2456_s29, %s272_s19 }
 0x132   : > { %p2461_p7 = por %p2460_p4, %p2459_p2 }
 0x134   : > { %p2463_p6 = por %p2462_p5, %p2461_p7 }
 0x136   : > { %p2464_p8 = pnand %p2463_p6, %p2457_p1 }
 0x138   : > { %2467 = shalt.err (!%p2464_p8)  }
 0x139   : > { %s2468_s3 = scalar_lea.vmem %s4136_s15, 16  ;;  %p2473_p10 = scmp.lt.s32.totalorder %s4136_s15, %s3947_s17 }
 0x13a   : > { %p2469_p9 = scmp.ne.s32.totalorder %s4136_s15, %s2468_s3  ;;  %p2474_p12 = scmp.lt.s32.totalorder %s3976_s28, %s2468_s3 }
 0x13c   : > { %p2475_p13 = por %p2474_p12, %p2473_p10 }
 0x13e   : > { %p2476_p0 = pnand %p2475_p13, %p2469_p9 }
 0x140   : > { %2479 = shalt.err (!%p2476_p0)  }
 0x141   : > { %284 = dma.hbm_to_vmem [thread:$0]  %s272_s19, 16, %s4136_s15, [#allocation3] }
 0x142   : > { %s286_s26 = sld [smem:[#allocation5 + %s285_s6]]  ;;  %s3817_s8 = smov [#allocation2 + $0xc]  }
 0x143   : > { %s298_s7 = sshll.u32 %s3817_s8, 4  ;;  %s302_s4 = sadd.s32 13, %s3940_s13  ;;  %s4183_s7 = int_to_ptr.vmem [resolvable:$true] %s298_s7 }
 0x144   : > { %s4185_s2 = sld [smem:[#allocation5 + %s302_s4]]  ;;  %s319_s10 = sadd.s32 14, %s3940_s13 }
 0x145   : > { %s3818_s25 = smov [#allocation2 + $0xd]   ;;  %s4188_s18 = sld [smem:[#allocation5 + %s319_s10]] }
 0x146   : > { %s315_s0 = sshll.u32 %s3818_s25, 4  ;;  %s3819_s15 = smov [#allocation2 + $0xe]   ;;  %s4190_s0 = int_to_ptr.vmem [resolvable:$true] %s315_s0 }
 0x147   : > { %s332_s23 = sshll.u32 %s3819_s15, 4  ;;  %s4193_s23 = int_to_ptr.vmem [resolvable:$true] %s332_s23 }
 0x148   : > { %s287_s16 = sadd.s32 %s3943_s14, %s286_s26 }
 0x149   : > { %s1970_s19 = sshll.u32 %s287_s16, 4 }
 0x14a   : > { %s289_s9 = scalar_lea.hbm %s5274_s1, %s1970_s19  ;;  %s304_s30 = sadd.s32 %s3943_s14, %s4185_s2 }
 0x14b   : > { %s2480_s3 = scalar_lea.hbm %s289_s9, 16  ;;  %p2483_p2 = scmp.lt.u32.totalorder %s289_s9, %s5274_s1 }
 0x14c   : > { %p2481_p1 = scmp.ne.s32.totalorder %s289_s9, %s2480_s3  ;;  %p2484_p4 = scmp.lt.u32.totalorder %s3967_s27, %s2480_s3 }
 0x14d   : > { %p2486_p5 = scmp.lt.u32.totalorder %s2480_s3, %s289_s9 }
 0x14e   : > { %p2485_p7 = por %p2484_p4, %p2483_p2 }
 0x150   : > { %p2487_p6 = por %p2486_p5, %p2485_p7 }
 0x152   : > { %p2488_p8 = pnand %p2487_p6, %p2481_p1 }
 0x154   : > { %2491 = shalt.err (!%p2488_p8)  }
 0x155   : > { %s2492_s26 = scalar_lea.vmem %s4183_s7, 16  ;;  %p2497_p10 = scmp.lt.s32.totalorder %s4183_s7, %s3947_s17 }
 0x156   : > { %p2493_p9 = scmp.ne.s32.totalorder %s4183_s7, %s2492_s26  ;;  %p2498_p12 = scmp.lt.s32.totalorder %s3976_s28, %s2492_s26 }
 0x158   : > { %p2499_p13 = por %p2498_p12, %p2497_p10 }
 0x15a   : > { %p2500_p0 = pnand %p2499_p13, %p2493_p9 }
 0x15c   : > { %2503 = shalt.err (!%p2500_p0)  }
 0x15d   : > { %301 = dma.hbm_to_vmem [thread:$0]  %s289_s9, 16, %s4183_s7, [#allocation3] }
 0x15e   : > { %s1971_s2 = sshll.u32 %s304_s30, 4  ;;  %s321_s10 = sadd.s32 %s3943_s14, %s4188_s18 }
 0x15f   : > { %s306_s15 = scalar_lea.hbm %s5274_s1, %s1971_s2  ;;  %s1972_s19 = sshll.u32 %s321_s10, 4 }
 0x160   : > { %s2504_s6 = scalar_lea.hbm %s306_s15, 16  ;;  %p2507_p2 = scmp.lt.u32.totalorder %s306_s15, %s5274_s1 }
 0x161   : > { %p2505_p1 = scmp.ne.s32.totalorder %s306_s15, %s2504_s6  ;;  %p2508_p4 = scmp.lt.u32.totalorder %s3967_s27, %s2504_s6 }
 0x162   : > { %p2510_p5 = scmp.lt.u32.totalorder %s2504_s6, %s306_s15 }
 0x163   : > { %p2509_p7 = por %p2508_p4, %p2507_p2 }
 0x165   : > { %p2511_p6 = por %p2510_p5, %p2509_p7 }
 0x167   : > { %p2512_p8 = pnand %p2511_p6, %p2505_p1 }
 0x169   : > { %2515 = shalt.err (!%p2512_p8)  }
 0x16a   : > { %s2516_s7 = scalar_lea.vmem %s4190_s0, 16  ;;  %p2521_p10 = scmp.lt.s32.totalorder %s4190_s0, %s3947_s17 }
 0x16b   : > { %p2517_p9 = scmp.ne.s32.totalorder %s4190_s0, %s2516_s7  ;;  %p2522_p12 = scmp.lt.s32.totalorder %s3976_s28, %s2516_s7 }
 0x16d   : > { %p2523_p13 = por %p2522_p12, %p2521_p10 }
 0x16f   : > { %p2524_p0 = pnand %p2523_p13, %p2517_p9 }
 0x171   : > { %2527 = shalt.err (!%p2524_p0)  }
 0x172   : > { %318 = dma.hbm_to_vmem [thread:$0]  %s306_s15, 16, %s4190_s0, [#allocation3] }
 0x173   : > { %s323_s30 = scalar_lea.hbm %s5274_s1, %s1972_s19  ;;  %s336_s8 = sadd.s32 15, %s3940_s13 }
 0x174   : > { %s2528_s4 = scalar_lea.hbm %s323_s30, 16  ;;  %p2531_p2 = scmp.lt.u32.totalorder %s323_s30, %s5274_s1 }
 0x175   : > { %p2529_p1 = scmp.ne.s32.totalorder %s323_s30, %s2528_s4  ;;  %p2532_p4 = scmp.lt.u32.totalorder %s3967_s27, %s2528_s4 }
 0x176   : > { %p2534_p5 = scmp.lt.u32.totalorder %s2528_s4, %s323_s30 }
 0x177   : > { %p2533_p7 = por %p2532_p4, %p2531_p2 }
 0x179   : > { %p2535_p6 = por %p2534_p5, %p2533_p7 }
 0x17b   : > { %p2536_p8 = pnand %p2535_p6, %p2529_p1 }
 0x17d   : > { %2539 = shalt.err (!%p2536_p8)  }
 0x17e   : > { %s2540_s0 = scalar_lea.vmem %s4193_s23, 16  ;;  %p2545_p10 = scmp.lt.s32.totalorder %s4193_s23, %s3947_s17 }
 0x17f   : > { %p2541_p9 = scmp.ne.s32.totalorder %s4193_s23, %s2540_s0  ;;  %p2546_p12 = scmp.lt.s32.totalorder %s3976_s28, %s2540_s0 }
 0x181   : > { %p2547_p13 = por %p2546_p12, %p2545_p10 }
 0x183   : > { %p2548_p0 = pnand %p2547_p13, %p2541_p9 }
 0x185   : > { %2551 = shalt.err (!%p2548_p0)  }
 0x186   : > { %335 = dma.hbm_to_vmem [thread:$0]  %s323_s30, 16, %s4193_s23, [#allocation3] }
 0x187   : > { %s337_s10 = sld [smem:[#allocation5 + %s336_s8]]  ;;  %s3820_s25 = smov [#allocation2 + $0xf]  }
 0x188   : > { %s349_s16 = sshll.u32 %s3820_s25, 4  ;;  %s353_s15 = sadd.s32 16, %s3940_s13  ;;  %s4240_s16 = int_to_ptr.vmem [resolvable:$true] %s349_s16 }
 0x189   : > { %s4242_s19 = sld [smem:[#allocation5 + %s353_s15]]  ;;  %s370_s6 = sadd.s32 17, %s3940_s13 }
 0x18a   : > { %s3821_s29 = smov [#allocation2 + $0x10]   ;;  %s4245_s7 = sld [smem:[#allocation5 + %s370_s6]] }
 0x18b   : > { %s366_s3 = sshll.u32 %s3821_s29, 4  ;;  %s3822_s23 = smov [#allocation2 + $0x11]   ;;  %s4247_s3 = int_to_ptr.vmem [resolvable:$true] %s366_s3 }
 0x18c   : > { %s383_s9 = sshll.u32 %s3822_s23, 4  ;;  %s4250_s9 = int_to_ptr.vmem [resolvable:$true] %s383_s9 }
 0x18d   : > { %s338_s18 = sadd.s32 %s3943_s14, %s337_s10 }
 0x18e   : > { %s1973_s30 = sshll.u32 %s338_s18, 4 }
 0x18f   : > { %s340_s26 = scalar_lea.hbm %s5274_s1, %s1973_s30  ;;  %s355_s2 = sadd.s32 %s3943_s14, %s4242_s19 }
 0x190   : > { %s2552_s0 = scalar_lea.hbm %s340_s26, 16  ;;  %p2555_p2 = scmp.lt.u32.totalorder %s340_s26, %s5274_s1 }
 0x191   : > { %p2553_p1 = scmp.ne.s32.totalorder %s340_s26, %s2552_s0  ;;  %p2556_p4 = scmp.lt.u32.totalorder %s3967_s27, %s2552_s0 }
 0x192   : > { %p2558_p5 = scmp.lt.u32.totalorder %s2552_s0, %s340_s26 }
 0x193   : > { %p2557_p7 = por %p2556_p4, %p2555_p2 }
 0x195   : > { %p2559_p6 = por %p2558_p5, %p2557_p7 }
 0x197   : > { %p2560_p8 = pnand %p2559_p6, %p2553_p1 }
 0x199   : > { %2563 = shalt.err (!%p2560_p8)  }
 0x19a   : > { %s2564_s10 = scalar_lea.vmem %s4240_s16, 16  ;;  %p2569_p10 = scmp.lt.s32.totalorder %s4240_s16, %s3947_s17 }
 0x19b   : > { %p2565_p9 = scmp.ne.s32.totalorder %s4240_s16, %s2564_s10  ;;  %p2570_p12 = scmp.lt.s32.totalorder %s3976_s28, %s2564_s10 }
 0x19d   : > { %p2571_p13 = por %p2570_p12, %p2569_p10 }
 0x19f   : > { %p2572_p0 = pnand %p2571_p13, %p2565_p9 }
 0x1a1   : > { %2575 = shalt.err (!%p2572_p0)  }
 0x1a2   : > { %352 = dma.hbm_to_vmem [thread:$0]  %s340_s26, 16, %s4240_s16, [#allocation3] }
 0x1a3   : > { %s1974_s19 = sshll.u32 %s355_s2, 4  ;;  %s372_s6 = sadd.s32 %s3943_s14, %s4245_s7 }
 0x1a4   : > { %s357_s23 = scalar_lea.hbm %s5274_s1, %s1974_s19  ;;  %s1975_s30 = sshll.u32 %s372_s6, 4 }
 0x1a5   : > { %s2576_s8 = scalar_lea.hbm %s357_s23, 16  ;;  %p2579_p2 = scmp.lt.u32.totalorder %s357_s23, %s5274_s1 }
 0x1a6   : > { %p2577_p1 = scmp.ne.s32.totalorder %s357_s23, %s2576_s8  ;;  %p2580_p4 = scmp.lt.u32.totalorder %s3967_s27, %s2576_s8 }
 0x1a7   : > { %p2582_p5 = scmp.lt.u32.totalorder %s2576_s8, %s357_s23 }
 0x1a8   : > { %p2581_p7 = por %p2580_p4, %p2579_p2 }
 0x1aa   : > { %p2583_p6 = por %p2582_p5, %p2581_p7 }
 0x1ac   : > { %p2584_p8 = pnand %p2583_p6, %p2577_p1 }
 0x1ae   : > { %2587 = shalt.err (!%p2584_p8)  }
 0x1af   : > { %s2588_s16 = scalar_lea.vmem %s4247_s3, 16  ;;  %p2593_p10 = scmp.lt.s32.totalorder %s4247_s3, %s3947_s17 }
 0x1b0   : > { %p2589_p9 = scmp.ne.s32.totalorder %s4247_s3, %s2588_s16  ;;  %p2594_p12 = scmp.lt.s32.totalorder %s3976_s28, %s2588_s16 }
 0x1b2   : > { %p2595_p13 = por %p2594_p12, %p2593_p10 }
 0x1b4   : > { %p2596_p0 = pnand %p2595_p13, %p2589_p9 }
 0x1b6   : > { %2599 = shalt.err (!%p2596_p0)  }
 0x1b7   : > { %369 = dma.hbm_to_vmem [thread:$0]  %s357_s23, 16, %s4247_s3, [#allocation3] }
 0x1b8   : > { %s374_s2 = scalar_lea.hbm %s5274_s1, %s1975_s30  ;;  %s387_s25 = sadd.s32 18, %s3940_s13 }
 0x1b9   : > { %s2600_s15 = scalar_lea.hbm %s374_s2, 16  ;;  %p2603_p2 = scmp.lt.u32.totalorder %s374_s2, %s5274_s1 }
 0x1ba   : > { %p2601_p1 = scmp.ne.s32.totalorder %s374_s2, %s2600_s15  ;;  %p2604_p4 = scmp.lt.u32.totalorder %s3967_s27, %s2600_s15 }
 0x1bb   : > { %p2606_p5 = scmp.lt.u32.totalorder %s2600_s15, %s374_s2 }
 0x1bc   : > { %p2605_p7 = por %p2604_p4, %p2603_p2 }
 0x1be   : > { %p2607_p6 = por %p2606_p5, %p2605_p7 }
 0x1c0   : > { %p2608_p8 = pnand %p2607_p6, %p2601_p1 }
 0x1c2   : > { %2611 = shalt.err (!%p2608_p8)  }
 0x1c3   : > { %s2612_s3 = scalar_lea.vmem %s4250_s9, 16  ;;  %p2617_p10 = scmp.lt.s32.totalorder %s4250_s9, %s3947_s17 }
 0x1c4   : > { %p2613_p9 = scmp.ne.s32.totalorder %s4250_s9, %s2612_s3  ;;  %p2618_p12 = scmp.lt.s32.totalorder %s3976_s28, %s2612_s3 }
 0x1c6   : > { %p2619_p13 = por %p2618_p12, %p2617_p10 }
 0x1c8   : > { %p2620_p0 = pnand %p2619_p13, %p2613_p9 }
 0x1ca   : > { %2623 = shalt.err (!%p2620_p0)  }
 0x1cb   : > { %386 = dma.hbm_to_vmem [thread:$0]  %s374_s2, 16, %s4250_s9, [#allocation3] }
 0x1cc   : > { %s388_s6 = sld [smem:[#allocation5 + %s387_s25]]  ;;  %s3823_s29 = smov [#allocation2 + $0x12]  }
 0x1cd   : > { %s400_s18 = sshll.u32 %s3823_s29, 4  ;;  %s404_s23 = sadd.s32 19, %s3940_s13  ;;  %s4297_s18 = int_to_ptr.vmem [resolvable:$true] %s400_s18 }
 0x1ce   : > { %s4299_s30 = sld [smem:[#allocation5 + %s404_s23]]  ;;  %s421_s8 = sadd.s32 20, %s3940_s13 }
 0x1cf   : > { %s3824_s4 = smov [#allocation2 + $0x13]   ;;  %s4302_s16 = sld [smem:[#allocation5 + %s421_s8]] }
 0x1d0   : > { %s417_s0 = sshll.u32 %s3824_s4, 4  ;;  %s3825_s9 = smov [#allocation2 + $0x14]   ;;  %s4304_s0 = int_to_ptr.vmem [resolvable:$true] %s417_s0 }
 0x1d1   : > { %s434_s26 = sshll.u32 %s3825_s9, 4  ;;  %s4307_s26 = int_to_ptr.vmem [resolvable:$true] %s434_s26 }
 0x1d2   : > { %s389_s7 = sadd.s32 %s3943_s14, %s388_s6 }
 0x1d3   : > { %s1976_s2 = sshll.u32 %s389_s7, 4 }
 0x1d4   : > { %s391_s10 = scalar_lea.hbm %s5274_s1, %s1976_s2  ;;  %s406_s19 = sadd.s32 %s3943_s14, %s4299_s30 }
 0x1d5   : > { %s2624_s3 = scalar_lea.hbm %s391_s10, 16  ;;  %p2627_p2 = scmp.lt.u32.totalorder %s391_s10, %s5274_s1 }
 0x1d6   : > { %p2625_p1 = scmp.ne.s32.totalorder %s391_s10, %s2624_s3  ;;  %p2628_p4 = scmp.lt.u32.totalorder %s3967_s27, %s2624_s3 }
 0x1d7   : > { %p2630_p5 = scmp.lt.u32.totalorder %s2624_s3, %s391_s10 }
 0x1d8   : > { %p2629_p7 = por %p2628_p4, %p2627_p2 }
 0x1da   : > { %p2631_p6 = por %p2630_p5, %p2629_p7 }
 0x1dc   : > { %p2632_p8 = pnand %p2631_p6, %p2625_p1 }
 0x1de   : > { %2635 = shalt.err (!%p2632_p8)  }
 0x1df   : > { %s2636_s6 = scalar_lea.vmem %s4297_s18, 16  ;;  %p2641_p10 = scmp.lt.s32.totalorder %s4297_s18, %s3947_s17 }
 0x1e0   : > { %p2637_p9 = scmp.ne.s32.totalorder %s4297_s18, %s2636_s6  ;;  %p2642_p12 = scmp.lt.s32.totalorder %s3976_s28, %s2636_s6 }
 0x1e2   : > { %p2643_p13 = por %p2642_p12, %p2641_p10 }
 0x1e4   : > { %p2644_p0 = pnand %p2643_p13, %p2637_p9 }
 0x1e6   : > { %2647 = shalt.err (!%p2644_p0)  }
 0x1e7   : > { %403 = dma.hbm_to_vmem [thread:$0]  %s391_s10, 16, %s4297_s18, [#allocation3] }
 0x1e8   : > { %s1977_s30 = sshll.u32 %s406_s19, 4  ;;  %s423_s8 = sadd.s32 %s3943_s14, %s4302_s16 }
 0x1e9   : > { %s408_s9 = scalar_lea.hbm %s5274_s1, %s1977_s30  ;;  %s1978_s2 = sshll.u32 %s423_s8, 4 }
 0x1ea   : > { %s2648_s25 = scalar_lea.hbm %s408_s9, 16  ;;  %p2651_p2 = scmp.lt.u32.totalorder %s408_s9, %s5274_s1 }
 0x1eb   : > { %p2649_p1 = scmp.ne.s32.totalorder %s408_s9, %s2648_s25  ;;  %p2652_p4 = scmp.lt.u32.totalorder %s3967_s27, %s2648_s25 }
 0x1ec   : > { %p2654_p5 = scmp.lt.u32.totalorder %s2648_s25, %s408_s9 }
 0x1ed   : > { %p2653_p7 = por %p2652_p4, %p2651_p2 }
 0x1ef   : > { %p2655_p6 = por %p2654_p5, %p2653_p7 }
 0x1f1   : > { %p2656_p8 = pnand %p2655_p6, %p2649_p1 }
 0x1f3   : > { %2659 = shalt.err (!%p2656_p8)  }
 0x1f4   : > { %s2660_s18 = scalar_lea.vmem %s4304_s0, 16  ;;  %p2665_p10 = scmp.lt.s32.totalorder %s4304_s0, %s3947_s17 }
 0x1f5   : > { %p2661_p9 = scmp.ne.s32.totalorder %s4304_s0, %s2660_s18  ;;  %p2666_p12 = scmp.lt.s32.totalorder %s3976_s28, %s2660_s18 }
 0x1f7   : > { %p2667_p13 = por %p2666_p12, %p2665_p10 }
 0x1f9   : > { %p2668_p0 = pnand %p2667_p13, %p2661_p9 }
 0x1fb   : > { %2671 = shalt.err (!%p2668_p0)  }
 0x1fc   : > { %420 = dma.hbm_to_vmem [thread:$0]  %s408_s9, 16, %s4304_s0, [#allocation3] }
 0x1fd   : > { %s425_s19 = scalar_lea.hbm %s5274_s1, %s1978_s2  ;;  %s438_s29 = sadd.s32 21, %s3940_s13 }
 0x1fe   : > { %s2672_s23 = scalar_lea.hbm %s425_s19, 16  ;;  %p2675_p2 = scmp.lt.u32.totalorder %s425_s19, %s5274_s1 }
 0x1ff   : > { %p2673_p1 = scmp.ne.s32.totalorder %s425_s19, %s2672_s23  ;;  %p2676_p4 = scmp.lt.u32.totalorder %s3967_s27, %s2672_s23 }
 0x200   : > { %p2678_p5 = scmp.lt.u32.totalorder %s2672_s23, %s425_s19 }
 0x201   : > { %p2677_p7 = por %p2676_p4, %p2675_p2 }
 0x203   : > { %p2679_p6 = por %p2678_p5, %p2677_p7 }
 0x205   : > { %p2680_p8 = pnand %p2679_p6, %p2673_p1 }
 0x207   : > { %2683 = shalt.err (!%p2680_p8)  }
 0x208   : > { %s2684_s0 = scalar_lea.vmem %s4307_s26, 16  ;;  %p2689_p10 = scmp.lt.s32.totalorder %s4307_s26, %s3947_s17 }
 0x209   : > { %p2685_p9 = scmp.ne.s32.totalorder %s4307_s26, %s2684_s0  ;;  %p2690_p12 = scmp.lt.s32.totalorder %s3976_s28, %s2684_s0 }
 0x20b   : > { %p2691_p13 = por %p2690_p12, %p2689_p10 }
 0x20d   : > { %p2692_p0 = pnand %p2691_p13, %p2685_p9 }
 0x20f   : > { %2695 = shalt.err (!%p2692_p0)  }
 0x210   : > { %437 = dma.hbm_to_vmem [thread:$0]  %s425_s19, 16, %s4307_s26, [#allocation3] }
 0x211   : > { %s439_s8 = sld [smem:[#allocation5 + %s438_s29]]  ;;  %s3826_s4 = smov [#allocation2 + $0x15]  }
 0x212   : > { %s451_s7 = sshll.u32 %s3826_s4, 4  ;;  %s455_s9 = sadd.s32 22, %s3940_s13  ;;  %s4354_s7 = int_to_ptr.vmem [resolvable:$true] %s451_s7 }
 0x213   : > { %s4356_s2 = sld [smem:[#allocation5 + %s455_s9]]  ;;  %s472_s25 = sadd.s32 23, %s3940_s13 }
 0x214   : > { %s3827_s15 = smov [#allocation2 + $0x16]   ;;  %s4359_s18 = sld [smem:[#allocation5 + %s472_s25]] }
 0x215   : > { %s468_s3 = sshll.u32 %s3827_s15, 4  ;;  %s3828_s26 = smov [#allocation2 + $0x17]   ;;  %s4361_s3 = int_to_ptr.vmem [resolvable:$true] %s468_s3 }
 0x216   : > { %s485_s10 = sshll.u32 %s3828_s26, 4  ;;  %s4364_s10 = int_to_ptr.vmem [resolvable:$true] %s485_s10 }
 0x217   : > { %s440_s16 = sadd.s32 %s3943_s14, %s439_s8 }
 0x218   : > { %s1979_s19 = sshll.u32 %s440_s16, 4 }
 0x219   : > { %s442_s6 = scalar_lea.hbm %s5274_s1, %s1979_s19  ;;  %s457_s30 = sadd.s32 %s3943_s14, %s4356_s2 }
 0x21a   : > { %s2696_s0 = scalar_lea.hbm %s442_s6, 16  ;;  %p2699_p2 = scmp.lt.u32.totalorder %s442_s6, %s5274_s1 }
 0x21b   : > { %p2697_p1 = scmp.ne.s32.totalorder %s442_s6, %s2696_s0  ;;  %p2700_p4 = scmp.lt.u32.totalorder %s3967_s27, %s2696_s0 }
 0x21c   : > { %p2702_p5 = scmp.lt.u32.totalorder %s2696_s0, %s442_s6 }
 0x21d   : > { %p2701_p7 = por %p2700_p4, %p2699_p2 }
 0x21f   : > { %p2703_p6 = por %p2702_p5, %p2701_p7 }
 0x221   : > { %p2704_p8 = pnand %p2703_p6, %p2697_p1 }
 0x223   : > { %2707 = shalt.err (!%p2704_p8)  }
 0x224   : > { %s2708_s8 = scalar_lea.vmem %s4354_s7, 16  ;;  %p2713_p10 = scmp.lt.s32.totalorder %s4354_s7, %s3947_s17 }
 0x225   : > { %p2709_p9 = scmp.ne.s32.totalorder %s4354_s7, %s2708_s8  ;;  %p2714_p12 = scmp.lt.s32.totalorder %s3976_s28, %s2708_s8 }
 0x227   : > { %p2715_p13 = por %p2714_p12, %p2713_p10 }
 0x229   : > { %p2716_p0 = pnand %p2715_p13, %p2709_p9 }
 0x22b   : > { %2719 = shalt.err (!%p2716_p0)  }
 0x22c   : > { %454 = dma.hbm_to_vmem [thread:$0]  %s442_s6, 16, %s4354_s7, [#allocation3] }
 0x22d   : > { %s1980_s2 = sshll.u32 %s457_s30, 4  ;;  %s474_s25 = sadd.s32 %s3943_s14, %s4359_s18 }
 0x22e   : > { %s459_s26 = scalar_lea.hbm %s5274_s1, %s1980_s2  ;;  %s1981_s19 = sshll.u32 %s474_s25, 4 }
 0x22f   : > { %s2720_s29 = scalar_lea.hbm %s459_s26, 16  ;;  %p2723_p2 = scmp.lt.u32.totalorder %s459_s26, %s5274_s1 }
 0x230   : > { %p2721_p1 = scmp.ne.s32.totalorder %s459_s26, %s2720_s29  ;;  %p2724_p4 = scmp.lt.u32.totalorder %s3967_s27, %s2720_s29 }
 0x231   : > { %p2726_p5 = scmp.lt.u32.totalorder %s2720_s29, %s459_s26 }
 0x232   : > { %p2725_p7 = por %p2724_p4, %p2723_p2 }
 0x234   : > { %p2727_p6 = por %p2726_p5, %p2725_p7 }
 0x236   : > { %p2728_p8 = pnand %p2727_p6, %p2721_p1 }
 0x238   : > { %2731 = shalt.err (!%p2728_p8)  }
 0x239   : > { %s2732_s7 = scalar_lea.vmem %s4361_s3, 16  ;;  %p2737_p10 = scmp.lt.s32.totalorder %s4361_s3, %s3947_s17 }
 0x23a   : > { %p2733_p9 = scmp.ne.s32.totalorder %s4361_s3, %s2732_s7  ;;  %p2738_p12 = scmp.lt.s32.totalorder %s3976_s28, %s2732_s7 }
 0x23c   : > { %p2739_p13 = por %p2738_p12, %p2737_p10 }
 0x23e   : > { %p2740_p0 = pnand %p2739_p13, %p2733_p9 }
 0x240   : > { %2743 = shalt.err (!%p2740_p0)  }
 0x241   : > { %471 = dma.hbm_to_vmem [thread:$0]  %s459_s26, 16, %s4361_s3, [#allocation3] }
 0x242   : > { %s476_s30 = scalar_lea.hbm %s5274_s1, %s1981_s19  ;;  %s489_s4 = sadd.s32 24, %s3940_s13 }
 0x243   : > { %s2744_s9 = scalar_lea.hbm %s476_s30, 16  ;;  %p2747_p2 = scmp.lt.u32.totalorder %s476_s30, %s5274_s1 }
 0x244   : > { %p2745_p1 = scmp.ne.s32.totalorder %s476_s30, %s2744_s9  ;;  %p2748_p4 = scmp.lt.u32.totalorder %s3967_s27, %s2744_s9 }
 0x245   : > { %p2750_p5 = scmp.lt.u32.totalorder %s2744_s9, %s476_s30 }
 0x246   : > { %p2749_p7 = por %p2748_p4, %p2747_p2 }
 0x248   : > { %p2751_p6 = por %p2750_p5, %p2749_p7 }
 0x24a   : > { %p2752_p8 = pnand %p2751_p6, %p2745_p1 }
 0x24c   : > { %2755 = shalt.err (!%p2752_p8)  }
 0x24d   : > { %s2756_s3 = scalar_lea.vmem %s4364_s10, 16  ;;  %p2761_p10 = scmp.lt.s32.totalorder %s4364_s10, %s3947_s17 }
 0x24e   : > { %p2757_p9 = scmp.ne.s32.totalorder %s4364_s10, %s2756_s3  ;;  %p2762_p12 = scmp.lt.s32.totalorder %s3976_s28, %s2756_s3 }
 0x250   : > { %p2763_p13 = por %p2762_p12, %p2761_p10 }
 0x252   : > { %p2764_p0 = pnand %p2763_p13, %p2757_p9 }
 0x254   : > { %2767 = shalt.err (!%p2764_p0)  }
 0x255   : > { %488 = dma.hbm_to_vmem [thread:$0]  %s476_s30, 16, %s4364_s10, [#allocation3] }
 0x256   : > { %s490_s25 = sld [smem:[#allocation5 + %s489_s4]]  ;;  %s3829_s15 = smov [#allocation2 + $0x18]  }
 0x257   : > { %s502_s16 = sshll.u32 %s3829_s15, 4  ;;  %s506_s26 = sadd.s32 25, %s3940_s13  ;;  %s4411_s16 = int_to_ptr.vmem [resolvable:$true] %s502_s16 }
 0x258   : > { %s4413_s19 = sld [smem:[#allocation5 + %s506_s26]]  ;;  %s523_s29 = sadd.s32 26, %s3940_s13 }
 0x259   : > { %s3830_s23 = smov [#allocation2 + $0x19]   ;;  %s4416_s7 = sld [smem:[#allocation5 + %s523_s29]] }
 0x25a   : > { %s519_s0 = sshll.u32 %s3830_s23, 4  ;;  %s3831_s10 = smov [#allocation2 + $0x1a]   ;;  %s4418_s0 = int_to_ptr.vmem [resolvable:$true] %s519_s0 }
 0x25b   : > { %s536_s6 = sshll.u32 %s3831_s10, 4  ;;  %s4421_s6 = int_to_ptr.vmem [resolvable:$true] %s536_s6 }
 0x25c   : > { %s491_s18 = sadd.s32 %s3943_s14, %s490_s25 }
 0x25d   : > { %s1982_s30 = sshll.u32 %s491_s18, 4 }
 0x25e   : > { %s493_s8 = scalar_lea.hbm %s5274_s1, %s1982_s30  ;;  %s508_s2 = sadd.s32 %s3943_s14, %s4413_s19 }
 0x25f   : > { %s2768_s3 = scalar_lea.hbm %s493_s8, 16  ;;  %p2771_p2 = scmp.lt.u32.totalorder %s493_s8, %s5274_s1 }
 0x260   : > { %p2769_p1 = scmp.ne.s32.totalorder %s493_s8, %s2768_s3  ;;  %p2772_p4 = scmp.lt.u32.totalorder %s3967_s27, %s2768_s3 }
 0x261   : > { %p2774_p5 = scmp.lt.u32.totalorder %s2768_s3, %s493_s8 }
 0x262   : > { %p2773_p7 = por %p2772_p4, %p2771_p2 }
 0x264   : > { %p2775_p6 = por %p2774_p5, %p2773_p7 }
 0x266   : > { %p2776_p8 = pnand %p2775_p6, %p2769_p1 }
 0x268   : > { %2779 = shalt.err (!%p2776_p8)  }
 0x269   : > { %s2780_s25 = scalar_lea.vmem %s4411_s16, 16  ;;  %p2785_p10 = scmp.lt.s32.totalorder %s4411_s16, %s3947_s17 }
 0x26a   : > { %p2781_p9 = scmp.ne.s32.totalorder %s4411_s16, %s2780_s25  ;;  %p2786_p12 = scmp.lt.s32.totalorder %s3976_s28, %s2780_s25 }
 0x26c   : > { %p2787_p13 = por %p2786_p12, %p2785_p10 }
 0x26e   : > { %p2788_p0 = pnand %p2787_p13, %p2781_p9 }
 0x270   : > { %2791 = shalt.err (!%p2788_p0)  }
 0x271   : > { %505 = dma.hbm_to_vmem [thread:$0]  %s493_s8, 16, %s4411_s16, [#allocation3] }
 0x272   : > { %s1983_s19 = sshll.u32 %s508_s2, 4  ;;  %s525_s29 = sadd.s32 %s3943_s14, %s4416_s7 }
 0x273   : > { %s510_s10 = scalar_lea.hbm %s5274_s1, %s1983_s19  ;;  %s1984_s30 = sshll.u32 %s525_s29, 4 }
 0x274   : > { %s2792_s4 = scalar_lea.hbm %s510_s10, 16  ;;  %p2795_p2 = scmp.lt.u32.totalorder %s510_s10, %s5274_s1 }
 0x275   : > { %p2793_p1 = scmp.ne.s32.totalorder %s510_s10, %s2792_s4  ;;  %p2796_p4 = scmp.lt.u32.totalorder %s3967_s27, %s2792_s4 }
 0x276   : > { %p2798_p5 = scmp.lt.u32.totalorder %s2792_s4, %s510_s10 }
 0x277   : > { %p2797_p7 = por %p2796_p4, %p2795_p2 }
 0x279   : > { %p2799_p6 = por %p2798_p5, %p2797_p7 }
 0x27b   : > { %p2800_p8 = pnand %p2799_p6, %p2793_p1 }
 0x27d   : > { %2803 = shalt.err (!%p2800_p8)  }
 0x27e   : > { %s2804_s16 = scalar_lea.vmem %s4418_s0, 16  ;;  %p2809_p10 = scmp.lt.s32.totalorder %s4418_s0, %s3947_s17 }
 0x27f   : > { %p2805_p9 = scmp.ne.s32.totalorder %s4418_s0, %s2804_s16  ;;  %p2810_p12 = scmp.lt.s32.totalorder %s3976_s28, %s2804_s16 }
 0x281   : > { %p2811_p13 = por %p2810_p12, %p2809_p10 }
 0x283   : > { %p2812_p0 = pnand %p2811_p13, %p2805_p9 }
 0x285   : > { %2815 = shalt.err (!%p2812_p0)  }
 0x286   : > { %522 = dma.hbm_to_vmem [thread:$0]  %s510_s10, 16, %s4418_s0, [#allocation3] }
 0x287   : > { %s527_s2 = scalar_lea.hbm %s5274_s1, %s1984_s30  ;;  %s540_s15 = sadd.s32 27, %s3940_s13 }
 0x288   : > { %s2816_s26 = scalar_lea.hbm %s527_s2, 16  ;;  %p2819_p2 = scmp.lt.u32.totalorder %s527_s2, %s5274_s1 }
 0x289   : > { %p2817_p1 = scmp.ne.s32.totalorder %s527_s2, %s2816_s26  ;;  %p2820_p4 = scmp.lt.u32.totalorder %s3967_s27, %s2816_s26 }
 0x28a   : > { %p2822_p5 = scmp.lt.u32.totalorder %s2816_s26, %s527_s2 }
 0x28b   : > { %p2821_p7 = por %p2820_p4, %p2819_p2 }
 0x28d   : > { %p2823_p6 = por %p2822_p5, %p2821_p7 }
 0x28f   : > { %p2824_p8 = pnand %p2823_p6, %p2817_p1 }
 0x291   : > { %2827 = shalt.err (!%p2824_p8)  }
 0x292   : > { %s2828_s0 = scalar_lea.vmem %s4421_s6, 16  ;;  %p2833_p10 = scmp.lt.s32.totalorder %s4421_s6, %s3947_s17 }
 0x293   : > { %p2829_p9 = scmp.ne.s32.totalorder %s4421_s6, %s2828_s0  ;;  %p2834_p12 = scmp.lt.s32.totalorder %s3976_s28, %s2828_s0 }
 0x295   : > { %p2835_p13 = por %p2834_p12, %p2833_p10 }
 0x297   : > { %p2836_p0 = pnand %p2835_p13, %p2829_p9 }
 0x299   : > { %2839 = shalt.err (!%p2836_p0)  }
 0x29a   : > { %539 = dma.hbm_to_vmem [thread:$0]  %s527_s2, 16, %s4421_s6, [#allocation3] }
 0x29b   : > { %s541_s29 = sld [smem:[#allocation5 + %s540_s15]]  ;;  %s3832_s23 = smov [#allocation2 + $0x1b]  }
 0x29c   : > { %s553_s18 = sshll.u32 %s3832_s23, 4  ;;  %s557_s10 = sadd.s32 28, %s3940_s13  ;;  %s4468_s18 = int_to_ptr.vmem [resolvable:$true] %s553_s18 }
 0x29d   : > { %s4470_s30 = sld [smem:[#allocation5 + %s557_s10]]  ;;  %s574_s4 = sadd.s32 29, %s3940_s13 }
 0x29e   : > { %s3833_s9 = smov [#allocation2 + $0x1c]   ;;  %s4473_s16 = sld [smem:[#allocation5 + %s574_s4]] }
 0x29f   : > { %s570_s3 = sshll.u32 %s3833_s9, 4  ;;  %s3834_s6 = smov [#allocation2 + $0x1d]   ;;  %s4475_s3 = int_to_ptr.vmem [resolvable:$true] %s570_s3 }
 0x2a0   : > { %s587_s8 = sshll.u32 %s3834_s6, 4  ;;  %s4478_s8 = int_to_ptr.vmem [resolvable:$true] %s587_s8 }
 0x2a1   : > { %s542_s7 = sadd.s32 %s3943_s14, %s541_s29 }
 0x2a2   : > { %s1985_s2 = sshll.u32 %s542_s7, 4 }
 0x2a3   : > { %s544_s25 = scalar_lea.hbm %s5274_s1, %s1985_s2  ;;  %s559_s19 = sadd.s32 %s3943_s14, %s4470_s30 }
 0x2a4   : > { %s2840_s0 = scalar_lea.hbm %s544_s25, 16  ;;  %p2843_p2 = scmp.lt.u32.totalorder %s544_s25, %s5274_s1 }
 0x2a5   : > { %p2841_p1 = scmp.ne.s32.totalorder %s544_s25, %s2840_s0  ;;  %p2844_p4 = scmp.lt.u32.totalorder %s3967_s27, %s2840_s0 }
 0x2a6   : > { %p2846_p5 = scmp.lt.u32.totalorder %s2840_s0, %s544_s25 }
 0x2a7   : > { %p2845_p7 = por %p2844_p4, %p2843_p2 }
 0x2a9   : > { %p2847_p6 = por %p2846_p5, %p2845_p7 }
 0x2ab   : > { %p2848_p8 = pnand %p2847_p6, %p2841_p1 }
 0x2ad   : > { %2851 = shalt.err (!%p2848_p8)  }
 0x2ae   : > { %s2852_s29 = scalar_lea.vmem %s4468_s18, 16  ;;  %p2857_p10 = scmp.lt.s32.totalorder %s4468_s18, %s3947_s17 }
 0x2af   : > { %p2853_p9 = scmp.ne.s32.totalorder %s4468_s18, %s2852_s29  ;;  %p2858_p12 = scmp.lt.s32.totalorder %s3976_s28, %s2852_s29 }
 0x2b1   : > { %p2859_p13 = por %p2858_p12, %p2857_p10 }
 0x2b3   : > { %p2860_p0 = pnand %p2859_p13, %p2853_p9 }
 0x2b5   : > { %2863 = shalt.err (!%p2860_p0)  }
 0x2b6   : > { %556 = dma.hbm_to_vmem [thread:$0]  %s544_s25, 16, %s4468_s18, [#allocation3] }
 0x2b7   : > { %s1986_s30 = sshll.u32 %s559_s19, 4  ;;  %s576_s4 = sadd.s32 %s3943_s14, %s4473_s16 }
 0x2b8   : > { %s561_s6 = scalar_lea.hbm %s5274_s1, %s1986_s30  ;;  %s1987_s2 = sshll.u32 %s576_s4, 4 }
 0x2b9   : > { %s2864_s15 = scalar_lea.hbm %s561_s6, 16  ;;  %p2867_p2 = scmp.lt.u32.totalorder %s561_s6, %s5274_s1 }
 0x2ba   : > { %p2865_p1 = scmp.ne.s32.totalorder %s561_s6, %s2864_s15  ;;  %p2868_p4 = scmp.lt.u32.totalorder %s3967_s27, %s2864_s15 }
 0x2bb   : > { %p2870_p5 = scmp.lt.u32.totalorder %s2864_s15, %s561_s6 }
 0x2bc   : > { %p2869_p7 = por %p2868_p4, %p2867_p2 }
 0x2be   : > { %p2871_p6 = por %p2870_p5, %p2869_p7 }
 0x2c0   : > { %p2872_p8 = pnand %p2871_p6, %p2865_p1 }
 0x2c2   : > { %2875 = shalt.err (!%p2872_p8)  }
 0x2c3   : > { %s2876_s18 = scalar_lea.vmem %s4475_s3, 16  ;;  %p2881_p10 = scmp.lt.s32.totalorder %s4475_s3, %s3947_s17 }
 0x2c4   : > { %p2877_p9 = scmp.ne.s32.totalorder %s4475_s3, %s2876_s18  ;;  %p2882_p12 = scmp.lt.s32.totalorder %s3976_s28, %s2876_s18 }
 0x2c6   : > { %p2883_p13 = por %p2882_p12, %p2881_p10 }
 0x2c8   : > { %p2884_p0 = pnand %p2883_p13, %p2877_p9 }
 0x2ca   : > { %2887 = shalt.err (!%p2884_p0)  }
 0x2cb   : > { %573 = dma.hbm_to_vmem [thread:$0]  %s561_s6, 16, %s4475_s3, [#allocation3] }
 0x2cc   : > { %s578_s19 = scalar_lea.hbm %s5274_s1, %s1987_s2  ;;  %s591_s23 = sadd.s32 30, %s3940_s13 }
 0x2cd   : > { %s2888_s10 = scalar_lea.hbm %s578_s19, 16  ;;  %p2891_p2 = scmp.lt.u32.totalorder %s578_s19, %s5274_s1 }
 0x2ce   : > { %p2889_p1 = scmp.ne.s32.totalorder %s578_s19, %s2888_s10  ;;  %p2892_p4 = scmp.lt.u32.totalorder %s3967_s27, %s2888_s10 }
 0x2cf   : > { %p2894_p5 = scmp.lt.u32.totalorder %s2888_s10, %s578_s19 }
 0x2d0   : > { %p2893_p7 = por %p2892_p4, %p2891_p2 }
 0x2d2   : > { %p2895_p6 = por %p2894_p5, %p2893_p7 }
 0x2d4   : > { %p2896_p8 = pnand %p2895_p6, %p2889_p1 }
 0x2d6   : > { %2899 = shalt.err (!%p2896_p8)  }
 0x2d7   : > { %s2900_s3 = scalar_lea.vmem %s4478_s8, 16  ;;  %p2905_p10 = scmp.lt.s32.totalorder %s4478_s8, %s3947_s17 }
 0x2d8   : > { %p2901_p9 = scmp.ne.s32.totalorder %s4478_s8, %s2900_s3  ;;  %p2906_p12 = scmp.lt.s32.totalorder %s3976_s28, %s2900_s3 }
 0x2da   : > { %p2907_p13 = por %p2906_p12, %p2905_p10 }
 0x2dc   : > { %p2908_p0 = pnand %p2907_p13, %p2901_p9 }
 0x2de   : > { %2911 = shalt.err (!%p2908_p0)  }
 0x2df   : > { %590 = dma.hbm_to_vmem [thread:$0]  %s578_s19, 16, %s4478_s8, [#allocation3] }
 0x2e0   : > { %s592_s4 = sld [smem:[#allocation5 + %s591_s23]]  ;;  %s608_s9 = sadd.s32 31, %s3940_s13 }
 0x2e1   : > { %s609_s7 = sld [smem:[#allocation5 + %s608_s9]]  ;;  %s3835_s6 = smov [#allocation2 + $0x1e]  }
 0x2e2   : > { %s604_s2 = sshll.u32 %s3835_s6, 4  ;;  %s3836_s15 = smov [#allocation2 + $0x1f]   ;;  %s605_s2 = int_to_ptr.vmem [resolvable:$true] %s604_s2 }
 0x2e3   : > { %s621_s26 = sshll.u32 %s3836_s15, 4  ;;  %s4526_s26 = int_to_ptr.vmem [resolvable:$true] %s621_s26 }
 0x2e6   : > { %s593_s0 = sadd.s32 %s3943_s14, %s592_s4 }
 0x2e7   : > { %s1988_s18 = sshll.u32 %s593_s0, 4  ;;  %s610_s29 = sadd.s32 %s3943_s14, %s609_s7 }
 0x2e8   : > { %s595_s10 = scalar_lea.hbm %s5274_s1, %s1988_s18 }
 0x2e9   : > { %s2912_s30 = scalar_lea.hbm %s595_s10, 16  ;;  %p2915_p2 = scmp.lt.u32.totalorder %s595_s10, %s5274_s1 }
 0x2ea   : > { %p2913_p1 = scmp.ne.s32.totalorder %s595_s10, %s2912_s30  ;;  %p2916_p4 = scmp.lt.u32.totalorder %s3967_s27, %s2912_s30 }
 0x2eb   : > { %p2918_p5 = scmp.lt.u32.totalorder %s2912_s30, %s595_s10 }
 0x2ec   : > { %p2917_p7 = por %p2916_p4, %p2915_p2 }
 0x2ee   : > { %p2919_p6 = por %p2918_p5, %p2917_p7 }
 0x2f0   : > { %p2920_p8 = pnand %p2919_p6, %p2913_p1 }
 0x2f2   : > { %2923 = shalt.err (!%p2920_p8)  }
 0x2f3   : > { %s2924_s13 = scalar_lea.vmem %s605_s2, 16  ;;  %p2929_p10 = scmp.lt.s32.totalorder %s605_s2, %s3947_s17 }
 0x2f4   : > { %p2925_p9 = scmp.ne.s32.totalorder %s605_s2, %s2924_s13  ;;  %p2930_p12 = scmp.lt.s32.totalorder %s3976_s28, %s2924_s13 }
 0x2f6   : > { %p2931_p13 = por %p2930_p12, %p2929_p10 }
 0x2f8   : > { %p2932_p0 = pnand %p2931_p13, %p2925_p9 }
 0x2fa   : > { %2935 = shalt.err (!%p2932_p0)  }
 0x2fb   : > { %607 = dma.hbm_to_vmem [thread:$0]  %s595_s10, 16, %s605_s2, [#allocation3] }
 0x2fc   : > { %s1989_s14 = sshll.u32 %s610_s29, 4 }
 0x2fd   : > { %s612_s4 = scalar_lea.hbm %s5274_s1, %s1989_s14 }
 0x2fe   : > { %s2936_s9 = scalar_lea.hbm %s612_s4, 16  ;;  %p2939_p1 = scmp.lt.u32.totalorder %s612_s4, %s5274_s1 }
 0x2ff   : > { %p2937_p2 = scmp.ne.s32.totalorder %s612_s4, %s2936_s9  ;;  %p2940_p4 = scmp.lt.u32.totalorder %s3967_s27, %s2936_s9 }
 0x300   : > { %p2942_p5 = scmp.lt.u32.totalorder %s2936_s9, %s612_s4 }
 0x301   : > { %p2941_p7 = por %p2940_p4, %p2939_p1 }
 0x303   : > { %p2943_p6 = por %p2942_p5, %p2941_p7 }
 0x305   : > { %p2944_p8 = pnand %p2943_p6, %p2937_p2 }
 0x307   : > { %2947 = shalt.err (!%p2944_p8)  }
 0x308   : > { %s2948_s2 = scalar_lea.vmem %s4526_s26, 16  ;;  %p2953_p10 = scmp.lt.s32.totalorder %s4526_s26, %s3947_s17 }
 0x309   : > { %p2949_p9 = scmp.ne.s32.totalorder %s4526_s26, %s2948_s2  ;;  %p2954_p12 = scmp.lt.s32.totalorder %s3976_s28, %s2948_s2 }
 0x30b   : > { %p2955_p13 = por %p2954_p12, %p2953_p10 }
 0x30d   : > { %p2956_p0 = pnand %p2955_p13, %p2949_p9 }
 0x30f   : > { %2959 = shalt.err (!%p2956_p0)  }
 0x310   : > { %624 = dma.hbm_to_vmem [thread:$0]  %s612_s4, 16, %s4526_s26, [#allocation3] }
 0x311 PF: > { %629 = sbr.rel (%p3894_p3) target bundleno = 1607 (0x647), region = 148  ;;  %s630_s27 = ssub.s32 (!%p3894_p3), 1, %s5325_s11 }
 0x312   : > { %s2098_s15 = sshll.u32 (!%p3894_p3), %s3794_s21, 5  ;;  %s4558_s17 = sshll.u32 (!%p3894_p3), %s3798_s22, 8 }
 0x313   : > { %s4555_s0 = sadd.s32 (!%p3894_p3), 32, %s2098_s15  ;;  %s1995_s16 = sshll.u32 (!%p3894_p3), %s630_s27, 5 }
 0x314   : > { %s632_s28 = sshra.s32 (!%p3894_p3), %s4555_s0, 7  ;;  %s637_s26 = sand.u32 (!%p3894_p3), 127, %s4555_s0 }
 0x315   : > { %s634_s18 = sadd.s32 (!%p3894_p3), %s3798_s22, %s632_s28  ;;  %s4563_s29 = scalar_lea.vmem (!%p3894_p3), [#allocation2], %s1995_s16 }
 0x316   : > { %s1992_s24 = sshll.u32 (!%p3894_p3), %s634_s18, 7  ;;  %s654_s30 = sshll.u32 (!%p3894_p3), %s4563_s29, 4  ;;  %s4566_s30 = int_to_ptr.vmem [resolvable:$true] %s654_s30 }
 0x317   : > { %s638_s25 = sadd.s32 (!%p3894_p3), %s1992_s24, %s637_s26  ;;  %s658_s8 = sadd.s32 (!%p3894_p3), 1, %s4555_s0 }
 0x318   : > { %s639_s10 = sld [smem:[#allocation5 + %s638_s25]]  ;;  %s659_s19 = sshra.s32 %s658_s8, 7 }
 0x319   : > { %s664_s13 = sand.u32 127, %s658_s8  ;;  %s661_s14 = sadd.s32 %s3798_s22, %s659_s19 }
 0x31a   : > { %s1706_s23 = scalar_lea.vmem %s4563_s29, 1 [#allocation2]  ;;  %s1996_s3 = sshll.u32 %s661_s14, 7 }
 0x31b   : > { %s679_s4 = sshll.u32 %s1706_s23, 4  ;;  %s665_s9 = sadd.s32 %s1996_s3, %s664_s13  ;;  %s4571_s4 = int_to_ptr.vmem [resolvable:$true] %s679_s4 }
 0x31c   : > { %s4574_s6 = sld [smem:[#allocation5 + %s665_s9]]  ;;  %s683_s15 = sadd.s32 2, %s4555_s0 }
 0x31d   : > { %s684_s16 = sshra.s32 %s683_s15, 7  ;;  %s4580_s24 = scalar_lea.sflag [#allocation3], %s630_s27 }
 0x31e   : > { %s641_s7 = sadd.s32 %s4558_s17, %s639_s10  ;;  %s4585_s13 = scalar_lea.hbm %s5274_s1, 8192 }
 0x31f   : > { %s1994_s2 = sshll.u32 %s641_s7, 4 }
 0x320   : > { %s643_s18 = scalar_lea.hbm %s5274_s1, %s1994_s2 }
 0x321   : > { %s2960_s25 = scalar_lea.hbm %s643_s18, 16  ;;  %p2963_p2 = scmp.lt.u32.totalorder %s643_s18, %s5274_s1 }
 0x322   : > { %p2961_p3 = scmp.ne.s32.totalorder %s643_s18, %s2960_s25  ;;  %p2964_p1 = scmp.lt.u32.totalorder %s4585_s13, %s2960_s25 }
 0x323   : > { %p2966_p7 = scmp.lt.u32.totalorder %s2960_s25, %s643_s18 }
 0x324   : > { %p2965_p4 = por %p2964_p1, %p2963_p2 }
 0x326   : > { %p2967_p5 = por %p2966_p7, %p2965_p4 }
 0x328   : > { %p2968_p6 = pnand %p2967_p5, %p2961_p3 }
 0x32a   : > { %2971 = shalt.err (!%p2968_p6)  }
 0x32b   : > { %s2972_s27 = scalar_lea.vmem %s4566_s30, 16  ;;  %s3837_s23 = smov [#allocation2]  }
 0x32c   : > { %p2973_p8 = scmp.ne.s32.totalorder %s4566_s30, %s2972_s27  ;;  %s2974_s3 = sshll.u32 %s3837_s23, 4  ;;  %s4593_s3 = int_to_ptr.vmem [resolvable:$false] %s2974_s3 }
 0x32d   : > { %s4596_s9 = scalar_lea.vmem %s4593_s3, 1024  ;;  %p2977_p9 = scmp.lt.s32.totalorder %s4566_s30, %s4593_s3 }
 0x32e   : > { %p2978_p10 = scmp.lt.s32.totalorder %s4596_s9, %s2972_s27 }
 0x330   : > { %p2979_p12 = por %p2978_p10, %p2977_p9 }
 0x332   : > { %p2980_p13 = pnand %p2979_p12, %p2973_p8 }
 0x334   : > { %2983 = shalt.err (!%p2980_p13)  }
 0x335   : > { %657 = dma.hbm_to_vmem [thread:$0]  %s643_s18, 16, %s4566_s30, %s4580_s24 }
 0x336   : > { %s686_s7 = sadd.s32 %s3798_s22, %s684_s16  ;;  %s689_s2 = sand.u32 127, %s683_s15 }
 0x337   : > { %s1999_s28 = sshll.u32 %s686_s7, 7  ;;  %s1713_s26 = scalar_lea.vmem %s4563_s29, 2 [#allocation2] }
 0x338   : > { %s667_s25 = sadd.s32 %s4558_s17, %s4574_s6  ;;  %s690_s8 = sadd.s32 %s1999_s28, %s689_s2 }
 0x339   : > { %s1997_s19 = sshll.u32 %s667_s25, 4  ;;  %s691_s14 = sld [smem:[#allocation5 + %s690_s8]] }
 0x33a   : > { %s669_s23 = scalar_lea.hbm %s5274_s1, %s1997_s19  ;;  %s704_s5 = sshll.u32 %s1713_s26, 4  ;;  %s4621_s5 = int_to_ptr.vmem [resolvable:$true] %s704_s5 }
 0x33b   : > { %s2984_s20 = scalar_lea.hbm %s669_s23, 16  ;;  %p2987_p3 = scmp.lt.u32.totalorder %s669_s23, %s5274_s1 }
 0x33c   : > { %p2985_p0 = scmp.ne.s32.totalorder %s669_s23, %s2984_s20  ;;  %p2988_p2 = scmp.lt.u32.totalorder %s4585_s13, %s2984_s20 }
 0x33d   : > { %p2990_p4 = scmp.lt.u32.totalorder %s2984_s20, %s669_s23 }
 0x33e   : > { %p2989_p1 = por %p2988_p2, %p2987_p3 }
 0x340   : > { %p2991_p7 = por %p2990_p4, %p2989_p1 }
 0x342   : > { %p2992_p5 = pnand %p2991_p7, %p2985_p0 }
 0x344   : > { %2995 = shalt.err (!%p2992_p5)  }
 0x345   : > { %s2996_s30 = scalar_lea.vmem %s4571_s4, 16  ;;  %p3001_p8 = scmp.lt.s32.totalorder %s4571_s4, %s4593_s3 }
 0x346   : > { %p2997_p6 = scmp.ne.s32.totalorder %s4571_s4, %s2996_s30  ;;  %p3002_p9 = scmp.lt.s32.totalorder %s4596_s9, %s2996_s30 }
 0x348   : > { %p3003_p10 = por %p3002_p9, %p3001_p8 }
 0x34a   : > { %p3004_p12 = pnand %p3003_p10, %p2997_p6 }
 0x34c   : > { %3007 = shalt.err (!%p3004_p12)  }
 0x34d   : > { %682 = dma.hbm_to_vmem [thread:$0]  %s669_s23, 16, %s4571_s4, %s4580_s24 }
 0x34e   : > { %s708_s20 = sadd.s32 3, %s4555_s0  ;;  %s1720_s15 = scalar_lea.vmem %s4563_s29, 3 [#allocation2] }
 0x34f   : > { %s709_s21 = sshra.s32 %s708_s20, 7  ;;  %s714_s12 = sand.u32 127, %s708_s20 }
 0x350   : > { %s711_s6 = sadd.s32 %s3798_s22, %s709_s21  ;;  %s692_s18 = sadd.s32 %s4558_s17, %s691_s14 }
 0x351   : > { %s2002_s16 = sshll.u32 %s711_s6, 7  ;;  %s2000_s7 = sshll.u32 %s692_s18, 4 }
 0x352   : > { %s715_s2 = sadd.s32 %s2002_s16, %s714_s12  ;;  %s694_s25 = scalar_lea.hbm %s5274_s1, %s2000_s7 }
 0x353   : > { %s716_s8 = sld [smem:[#allocation5 + %s715_s2]]  ;;  %s3008_s19 = scalar_lea.hbm %s694_s25, 16 }
 0x354   : > { %p3009_p13 = scmp.ne.s32.totalorder %s694_s25, %s3008_s19  ;;  %p3011_p0 = scmp.lt.u32.totalorder %s694_s25, %s5274_s1 }
 0x355   : > { %p3012_p3 = scmp.lt.u32.totalorder %s4585_s13, %s3008_s19  ;;  %p3014_p1 = scmp.lt.u32.totalorder %s3008_s19, %s694_s25 }
 0x357   : > { %p3013_p2 = por %p3012_p3, %p3011_p0 }
 0x359   : > { %p3015_p4 = por %p3014_p1, %p3013_p2 }
 0x35b   : > { %p3016_p7 = pnand %p3015_p4, %p3009_p13 }
 0x35d   : > { %3019 = shalt.err (!%p3016_p7)  }
 0x35e   : > { %s3020_s14 = scalar_lea.vmem %s4621_s5, 16  ;;  %p3025_p6 = scmp.lt.s32.totalorder %s4621_s5, %s4593_s3 }
 0x35f   : > { %p3021_p5 = scmp.ne.s32.totalorder %s4621_s5, %s3020_s14  ;;  %p3026_p8 = scmp.lt.s32.totalorder %s4596_s9, %s3020_s14 }
 0x361   : > { %p3027_p9 = por %p3026_p8, %p3025_p6 }
 0x363   : > { %p3028_p10 = pnand %p3027_p9, %p3021_p5 }
 0x365   : > { %3031 = shalt.err (!%p3028_p10)  }
 0x366   : > { %707 = dma.hbm_to_vmem [thread:$0]  %s694_s25, 16, %s4621_s5, %s4580_s24 }
 0x367   : > { %s729_s27 = sshll.u32 %s1720_s15, 4  ;;  %s733_s23 = sadd.s32 4, %s4555_s0  ;;  %s4642_s27 = int_to_ptr.vmem [resolvable:$true] %s729_s27 }
 0x368   : > { %s734_s30 = sshra.s32 %s733_s23, 7  ;;  %s739_s21 = sand.u32 127, %s733_s23 }
 0x369   : > { %s736_s20 = sadd.s32 %s3798_s22, %s734_s30  ;;  %s1727_s6 = scalar_lea.vmem %s4563_s29, 4 [#allocation2] }
 0x36a   : > { %s2005_s12 = sshll.u32 %s736_s20, 7  ;;  %s717_s18 = sadd.s32 %s4558_s17, %s716_s8 }
 0x36b   : > { %s740_s16 = sadd.s32 %s2005_s12, %s739_s21  ;;  %s2003_s7 = sshll.u32 %s717_s18, 4 }
 0x36c   : > { %s741_s2 = sld [smem:[#allocation5 + %s740_s16]]  ;;  %s719_s19 = scalar_lea.hbm %s5274_s1, %s2003_s7 }
 0x36d   : > { %s754_s4 = sshll.u32 %s1727_s6, 4  ;;  %s3032_s5 = scalar_lea.hbm %s719_s19, 16  ;;  %s4661_s4 = int_to_ptr.vmem [resolvable:$true] %s754_s4 }
 0x36e   : > { %p3033_p12 = scmp.ne.s32.totalorder %s719_s19, %s3032_s5  ;;  %p3035_p13 = scmp.lt.u32.totalorder %s719_s19, %s5274_s1 }
 0x36f   : > { %p3036_p0 = scmp.lt.u32.totalorder %s4585_s13, %s3032_s5  ;;  %p3038_p2 = scmp.lt.u32.totalorder %s3032_s5, %s719_s19 }
 0x371   : > { %p3037_p3 = por %p3036_p0, %p3035_p13 }
 0x373   : > { %p3039_p1 = por %p3038_p2, %p3037_p3 }
 0x375   : > { %p3040_p4 = pnand %p3039_p1, %p3033_p12 }
 0x377   : > { %3043 = shalt.err (!%p3040_p4)  }
 0x378   : > { %s3044_s8 = scalar_lea.vmem %s4642_s27, 16  ;;  %p3049_p5 = scmp.lt.s32.totalorder %s4642_s27, %s4593_s3 }
 0x379   : > { %p3045_p7 = scmp.ne.s32.totalorder %s4642_s27, %s3044_s8  ;;  %p3050_p6 = scmp.lt.s32.totalorder %s4596_s9, %s3044_s8 }
 0x37b   : > { %p3051_p8 = por %p3050_p6, %p3049_p5 }
 0x37d   : > { %p3052_p9 = pnand %p3051_p8, %p3045_p7 }
 0x37f   : > { %3055 = shalt.err (!%p3052_p9)  }
 0x380   : > { %732 = dma.hbm_to_vmem [thread:$0]  %s719_s19, 16, %s4642_s27, %s4580_s24 }
 0x381   : > { %s758_s10 = sadd.s32 5, %s4555_s0  ;;  %s1734_s20 = scalar_lea.vmem %s4563_s29, 5 [#allocation2] }
 0x382   : > { %s759_s14 = sshra.s32 %s758_s10, 7  ;;  %s764_s23 = sand.u32 127, %s758_s10 }
 0x383   : > { %s761_s30 = sadd.s32 %s3798_s22, %s759_s14  ;;  %s742_s21 = sadd.s32 %s4558_s17, %s741_s2 }
 0x384   : > { %s2008_s12 = sshll.u32 %s761_s30, 7  ;;  %s2006_s6 = sshll.u32 %s742_s21, 4 }
 0x385   : > { %s765_s18 = sadd.s32 %s2008_s12, %s764_s23  ;;  %s744_s28 = scalar_lea.hbm %s5274_s1, %s2006_s6 }
 0x386   : > { %s766_s26 = sld [smem:[#allocation5 + %s765_s18]]  ;;  %s3056_s5 = scalar_lea.hbm %s744_s28, 16 }
 0x387   : > { %p3057_p10 = scmp.ne.s32.totalorder %s744_s28, %s3056_s5  ;;  %p3059_p12 = scmp.lt.u32.totalorder %s744_s28, %s5274_s1 }
 0x388   : > { %p3060_p13 = scmp.lt.u32.totalorder %s4585_s13, %s3056_s5  ;;  %p3062_p3 = scmp.lt.u32.totalorder %s3056_s5, %s744_s28 }
 0x38a   : > { %p3061_p0 = por %p3060_p13, %p3059_p12 }
 0x38c   : > { %p3063_p2 = por %p3062_p3, %p3061_p0 }
 0x38e   : > { %p3064_p1 = pnand %p3063_p2, %p3057_p10 }
 0x390   : > { %3067 = shalt.err (!%p3064_p1)  }
 0x391   : > { %s3068_s2 = scalar_lea.vmem %s4661_s4, 16  ;;  %p3073_p7 = scmp.lt.s32.totalorder %s4661_s4, %s4593_s3 }
 0x392   : > { %p3069_p4 = scmp.ne.s32.totalorder %s4661_s4, %s3068_s2  ;;  %p3074_p5 = scmp.lt.s32.totalorder %s4596_s9, %s3068_s2 }
 0x394   : > { %p3075_p6 = por %p3074_p5, %p3073_p7 }
 0x396   : > { %p3076_p8 = pnand %p3075_p6, %p3069_p4 }
 0x398   : > { %3079 = shalt.err (!%p3076_p8)  }
 0x399   : > { %757 = dma.hbm_to_vmem [thread:$0]  %s744_s28, 16, %s4661_s4, %s4580_s24 }
 0x39a   : > { %s779_s15 = sshll.u32 %s1734_s20, 4  ;;  %s783_s25 = sadd.s32 6, %s4555_s0  ;;  %s4682_s15 = int_to_ptr.vmem [resolvable:$true] %s779_s15 }
 0x39b   : > { %s784_s8 = sshra.s32 %s783_s25, 7  ;;  %s789_s14 = sand.u32 127, %s783_s25 }
 0x39c   : > { %s786_s10 = sadd.s32 %s3798_s22, %s784_s8  ;;  %s1741_s30 = scalar_lea.vmem %s4563_s29, 6 [#allocation2] }
 0x39d   : > { %s2011_s23 = sshll.u32 %s786_s10, 7  ;;  %s767_s21 = sadd.s32 %s4558_s17, %s766_s26 }
 0x39e   : > { %s790_s12 = sadd.s32 %s2011_s23, %s789_s14  ;;  %s2009_s6 = sshll.u32 %s767_s21, 4 }
 0x39f   : > { %s791_s18 = sld [smem:[#allocation5 + %s790_s12]]  ;;  %s769_s5 = scalar_lea.hbm %s5274_s1, %s2009_s6 }
 0x3a0   : > { %s804_s27 = sshll.u32 %s1741_s30, 4  ;;  %s3080_s4 = scalar_lea.hbm %s769_s5, 16  ;;  %s4701_s27 = int_to_ptr.vmem [resolvable:$true] %s804_s27 }
 0x3a1   : > { %p3081_p9 = scmp.ne.s32.totalorder %s769_s5, %s3080_s4  ;;  %p3083_p10 = scmp.lt.u32.totalorder %s769_s5, %s5274_s1 }
 0x3a2   : > { %p3084_p12 = scmp.lt.u32.totalorder %s4585_s13, %s3080_s4  ;;  %p3086_p0 = scmp.lt.u32.totalorder %s3080_s4, %s769_s5 }
 0x3a4   : > { %p3085_p13 = por %p3084_p12, %p3083_p10 }
 0x3a6   : > { %p3087_p3 = por %p3086_p0, %p3085_p13 }
 0x3a8   : > { %p3088_p2 = pnand %p3087_p3, %p3081_p9 }
 0x3aa   : > { %3091 = shalt.err (!%p3088_p2)  }
 0x3ab   : > { %s3092_s26 = scalar_lea.vmem %s4682_s15, 16  ;;  %p3097_p4 = scmp.lt.s32.totalorder %s4682_s15, %s4593_s3 }
 0x3ac   : > { %p3093_p1 = scmp.ne.s32.totalorder %s4682_s15, %s3092_s26  ;;  %p3098_p7 = scmp.lt.s32.totalorder %s4596_s9, %s3092_s26 }
 0x3ae   : > { %p3099_p5 = por %p3098_p7, %p3097_p4 }
 0x3b0   : > { %p3100_p6 = pnand %p3099_p5, %p3093_p1 }
 0x3b2   : > { %3103 = shalt.err (!%p3100_p6)  }
 0x3b3   : > { %782 = dma.hbm_to_vmem [thread:$0]  %s769_s5, 16, %s4682_s15, %s4580_s24 }
 0x3b4   : > { %s808_s19 = sadd.s32 7, %s4555_s0  ;;  %s1748_s10 = scalar_lea.vmem %s4563_s29, 7 [#allocation2] }
 0x3b5   : > { %s809_s2 = sshra.s32 %s808_s19, 7  ;;  %s814_s25 = sand.u32 127, %s808_s19 }
 0x3b6   : > { %s811_s8 = sadd.s32 %s3798_s22, %s809_s2  ;;  %s792_s14 = sadd.s32 %s4558_s17, %s791_s18 }
 0x3b7   : > { %s2014_s23 = sshll.u32 %s811_s8, 7  ;;  %s2012_s30 = sshll.u32 %s792_s14, 4 }
 0x3b8   : > { %s815_s21 = sadd.s32 %s2014_s23, %s814_s25  ;;  %s794_s16 = scalar_lea.hbm %s5274_s1, %s2012_s30 }
 0x3b9   : > { %s816_s7 = sld [smem:[#allocation5 + %s815_s21]]  ;;  %s3104_s4 = scalar_lea.hbm %s794_s16, 16 }
 0x3ba   : > { %p3105_p8 = scmp.ne.s32.totalorder %s794_s16, %s3104_s4  ;;  %p3107_p9 = scmp.lt.u32.totalorder %s794_s16, %s5274_s1 }
 0x3bb   : > { %p3108_p10 = scmp.lt.u32.totalorder %s4585_s13, %s3104_s4  ;;  %p3110_p13 = scmp.lt.u32.totalorder %s3104_s4, %s794_s16 }
 0x3bd   : > { %p3109_p12 = por %p3108_p10, %p3107_p9 }
 0x3bf   : > { %p3111_p0 = por %p3110_p13, %p3109_p12 }
 0x3c1   : > { %p3112_p3 = pnand %p3111_p0, %p3105_p8 }
 0x3c3   : > { %3115 = shalt.err (!%p3112_p3)  }
 0x3c4   : > { %s3116_s18 = scalar_lea.vmem %s4701_s27, 16  ;;  %p3121_p1 = scmp.lt.s32.totalorder %s4701_s27, %s4593_s3 }
 0x3c5   : > { %p3117_p2 = scmp.ne.s32.totalorder %s4701_s27, %s3116_s18  ;;  %p3122_p4 = scmp.lt.s32.totalorder %s4596_s9, %s3116_s18 }
 0x3c7   : > { %p3123_p7 = por %p3122_p4, %p3121_p1 }
 0x3c9   : > { %p3124_p5 = pnand %p3123_p7, %p3117_p2 }
 0x3cb   : > { %3127 = shalt.err (!%p3124_p5)  }
 0x3cc   : > { %807 = dma.hbm_to_vmem [thread:$0]  %s794_s16, 16, %s4701_s27, %s4580_s24 }
 0x3cd   : > { %s829_s20 = sshll.u32 %s1748_s10, 4  ;;  %s833_s28 = sadd.s32 8, %s4555_s0  ;;  %s4722_s20 = int_to_ptr.vmem [resolvable:$true] %s829_s20 }
 0x3ce   : > { %s834_s26 = sshra.s32 %s833_s28, 7  ;;  %s839_s2 = sand.u32 127, %s833_s28 }
 0x3cf   : > { %s836_s19 = sadd.s32 %s3798_s22, %s834_s26  ;;  %s1755_s8 = scalar_lea.vmem %s4563_s29, 8 [#allocation2] }
 0x3d0   : > { %s2017_s25 = sshll.u32 %s836_s19, 7  ;;  %s817_s14 = sadd.s32 %s4558_s17, %s816_s7 }
 0x3d1   : > { %s840_s23 = sadd.s32 %s2017_s25, %s839_s2  ;;  %s2015_s30 = sshll.u32 %s817_s14, 4 }
 0x3d2   : > { %s841_s21 = sld [smem:[#allocation5 + %s840_s23]]  ;;  %s819_s4 = scalar_lea.hbm %s5274_s1, %s2015_s30 }
 0x3d3   : > { %s854_s15 = sshll.u32 %s1755_s8, 4  ;;  %s3128_s27 = scalar_lea.hbm %s819_s4, 16  ;;  %s4741_s15 = int_to_ptr.vmem [resolvable:$true] %s854_s15 }
 0x3d4   : > { %p3129_p6 = scmp.ne.s32.totalorder %s819_s4, %s3128_s27  ;;  %p3131_p8 = scmp.lt.u32.totalorder %s819_s4, %s5274_s1 }
 0x3d5   : > { %p3132_p9 = scmp.lt.u32.totalorder %s4585_s13, %s3128_s27  ;;  %p3134_p12 = scmp.lt.u32.totalorder %s3128_s27, %s819_s4 }
 0x3d7   : > { %p3133_p10 = por %p3132_p9, %p3131_p8 }
 0x3d9   : > { %p3135_p13 = por %p3134_p12, %p3133_p10 }
 0x3db   : > { %p3136_p0 = pnand %p3135_p13, %p3129_p6 }
 0x3dd   : > { %3139 = shalt.err (!%p3136_p0)  }
 0x3de   : > { %s3140_s7 = scalar_lea.vmem %s4722_s20, 16  ;;  %p3145_p2 = scmp.lt.s32.totalorder %s4722_s20, %s4593_s3 }
 0x3df   : > { %p3141_p3 = scmp.ne.s32.totalorder %s4722_s20, %s3140_s7  ;;  %p3146_p1 = scmp.lt.s32.totalorder %s4596_s9, %s3140_s7 }
 0x3e1   : > { %p3147_p4 = por %p3146_p1, %p3145_p2 }
 0x3e3   : > { %p3148_p7 = pnand %p3147_p4, %p3141_p3 }
 0x3e5   : > { %3151 = shalt.err (!%p3148_p7)  }
 0x3e6   : > { %832 = dma.hbm_to_vmem [thread:$0]  %s819_s4, 16, %s4722_s20, %s4580_s24 }
 0x3e7   : > { %s858_s5 = sadd.s32 9, %s4555_s0  ;;  %s1762_s19 = scalar_lea.vmem %s4563_s29, 9 [#allocation2] }
 0x3e8   : > { %s859_s18 = sshra.s32 %s858_s5, 7  ;;  %s864_s28 = sand.u32 127, %s858_s5 }
 0x3e9   : > { %s861_s26 = sadd.s32 %s3798_s22, %s859_s18  ;;  %s842_s2 = sadd.s32 %s4558_s17, %s841_s21 }
 0x3ea   : > { %s2020_s25 = sshll.u32 %s861_s26, 7  ;;  %s2018_s8 = sshll.u32 %s842_s2, 4 }
 0x3eb   : > { %s865_s14 = sadd.s32 %s2020_s25, %s864_s28  ;;  %s844_s12 = scalar_lea.hbm %s5274_s1, %s2018_s8 }
 0x3ec   : > { %s866_s6 = sld [smem:[#allocation5 + %s865_s14]]  ;;  %s3152_s27 = scalar_lea.hbm %s844_s12, 16 }
 0x3ed   : > { %p3153_p5 = scmp.ne.s32.totalorder %s844_s12, %s3152_s27  ;;  %p3155_p6 = scmp.lt.u32.totalorder %s844_s12, %s5274_s1 }
 0x3ee   : > { %p3156_p8 = scmp.lt.u32.totalorder %s4585_s13, %s3152_s27  ;;  %p3158_p10 = scmp.lt.u32.totalorder %s3152_s27, %s844_s12 }
 0x3f0   : > { %p3157_p9 = por %p3156_p8, %p3155_p6 }
 0x3f2   : > { %p3159_p12 = por %p3158_p10, %p3157_p9 }
 0x3f4   : > { %p3160_p13 = pnand %p3159_p12, %p3153_p5 }
 0x3f6   : > { %3163 = shalt.err (!%p3160_p13)  }
 0x3f7   : > { %s3164_s21 = scalar_lea.vmem %s4741_s15, 16  ;;  %p3169_p3 = scmp.lt.s32.totalorder %s4741_s15, %s4593_s3 }
 0x3f8   : > { %p3165_p0 = scmp.ne.s32.totalorder %s4741_s15, %s3164_s21  ;;  %p3170_p2 = scmp.lt.s32.totalorder %s4596_s9, %s3164_s21 }
 0x3fa   : > { %p3171_p1 = por %p3170_p2, %p3169_p3 }
 0x3fc   : > { %p3172_p4 = pnand %p3171_p1, %p3165_p0 }
 0x3fe   : > { %3175 = shalt.err (!%p3172_p4)  }
 0x3ff   : > { %857 = dma.hbm_to_vmem [thread:$0]  %s844_s12, 16, %s4741_s15, %s4580_s24 }
 0x400   : > { %s879_s10 = sshll.u32 %s1762_s19, 4  ;;  %s883_s16 = sadd.s32 10, %s4555_s0  ;;  %s4762_s10 = int_to_ptr.vmem [resolvable:$true] %s879_s10 }
 0x401   : > { %s884_s7 = sshra.s32 %s883_s16, 7  ;;  %s889_s18 = sand.u32 127, %s883_s16 }
 0x402   : > { %s886_s5 = sadd.s32 %s3798_s22, %s884_s7  ;;  %s1769_s26 = scalar_lea.vmem %s4563_s29, 10 [#allocation2] }
 0x403   : > { %s2023_s28 = sshll.u32 %s886_s5, 7  ;;  %s867_s2 = sadd.s32 %s4558_s17, %s866_s6 }
 0x404   : > { %s890_s25 = sadd.s32 %s2023_s28, %s889_s18  ;;  %s2021_s8 = sshll.u32 %s867_s2, 4 }
 0x405   : > { %s891_s14 = sld [smem:[#allocation5 + %s890_s25]]  ;;  %s869_s27 = scalar_lea.hbm %s5274_s1, %s2021_s8 }
 0x406   : > { %s904_s20 = sshll.u32 %s1769_s26, 4  ;;  %s3176_s15 = scalar_lea.hbm %s869_s27, 16  ;;  %s4781_s20 = int_to_ptr.vmem [resolvable:$true] %s904_s20 }
 0x407   : > { %p3177_p7 = scmp.ne.s32.totalorder %s869_s27, %s3176_s15  ;;  %p3179_p5 = scmp.lt.u32.totalorder %s869_s27, %s5274_s1 }
 0x408   : > { %p3180_p6 = scmp.lt.u32.totalorder %s4585_s13, %s3176_s15  ;;  %p3182_p9 = scmp.lt.u32.totalorder %s3176_s15, %s869_s27 }
 0x40a   : > { %p3181_p8 = por %p3180_p6, %p3179_p5 }
 0x40c   : > { %p3183_p10 = por %p3182_p9, %p3181_p8 }
 0x40e   : > { %p3184_p12 = pnand %p3183_p10, %p3177_p7 }
 0x410   : > { %3187 = shalt.err (!%p3184_p12)  }
 0x411   : > { %s3188_s6 = scalar_lea.vmem %s4762_s10, 16  ;;  %p3193_p0 = scmp.lt.s32.totalorder %s4762_s10, %s4593_s3 }
 0x412   : > { %p3189_p13 = scmp.ne.s32.totalorder %s4762_s10, %s3188_s6  ;;  %p3194_p3 = scmp.lt.s32.totalorder %s4596_s9, %s3188_s6 }
 0x414   : > { %p3195_p2 = por %p3194_p3, %p3193_p0 }
 0x416   : > { %p3196_p1 = pnand %p3195_p2, %p3189_p13 }
 0x418   : > { %3199 = shalt.err (!%p3196_p1)  }
 0x419   : > { %882 = dma.hbm_to_vmem [thread:$0]  %s869_s27, 16, %s4762_s10, %s4580_s24 }
 0x41a   : > { %s908_s4 = sadd.s32 11, %s4555_s0  ;;  %s1776_s5 = scalar_lea.vmem %s4563_s29, 11 [#allocation2] }
 0x41b   : > { %s909_s21 = sshra.s32 %s908_s4, 7  ;;  %s914_s16 = sand.u32 127, %s908_s4 }
 0x41c   : > { %s911_s7 = sadd.s32 %s3798_s22, %s909_s21  ;;  %s892_s18 = sadd.s32 %s4558_s17, %s891_s14 }
 0x41d   : > { %s2026_s28 = sshll.u32 %s911_s7, 7  ;;  %s2024_s26 = sshll.u32 %s892_s18, 4 }
 0x41e   : > { %s915_s2 = sadd.s32 %s2026_s28, %s914_s16  ;;  %s894_s23 = scalar_lea.hbm %s5274_s1, %s2024_s26 }
 0x41f   : > { %s916_s30 = sld [smem:[#allocation5 + %s915_s2]]  ;;  %s3200_s15 = scalar_lea.hbm %s894_s23, 16 }
 0x420   : > { %p3201_p4 = scmp.ne.s32.totalorder %s894_s23, %s3200_s15  ;;  %p3203_p7 = scmp.lt.u32.totalorder %s894_s23, %s5274_s1 }
 0x421   : > { %p3204_p5 = scmp.lt.u32.totalorder %s4585_s13, %s3200_s15  ;;  %p3206_p8 = scmp.lt.u32.totalorder %s3200_s15, %s894_s23 }
 0x423   : > { %p3205_p6 = por %p3204_p5, %p3203_p7 }
 0x425   : > { %p3207_p9 = por %p3206_p8, %p3205_p6 }
 0x427   : > { %p3208_p10 = pnand %p3207_p9, %p3201_p4 }
 0x429   : > { %3211 = shalt.err (!%p3208_p10)  }
 0x42a   : > { %s3212_s14 = scalar_lea.vmem %s4781_s20, 16  ;;  %p3217_p13 = scmp.lt.s32.totalorder %s4781_s20, %s4593_s3 }
 0x42b   : > { %p3213_p12 = scmp.ne.s32.totalorder %s4781_s20, %s3212_s14  ;;  %p3218_p0 = scmp.lt.s32.totalorder %s4596_s9, %s3212_s14 }
 0x42d   : > { %p3219_p3 = por %p3218_p0, %p3217_p13 }
 0x42f   : > { %p3220_p2 = pnand %p3219_p3, %p3213_p12 }
 0x431   : > { %3223 = shalt.err (!%p3220_p2)  }
 0x432   : > { %907 = dma.hbm_to_vmem [thread:$0]  %s894_s23, 16, %s4781_s20, %s4580_s24 }
 0x433   : > { %s929_s19 = sshll.u32 %s1776_s5, 4  ;;  %s933_s12 = sadd.s32 12, %s4555_s0  ;;  %s4802_s19 = int_to_ptr.vmem [resolvable:$true] %s929_s19 }
 0x434   : > { %s934_s6 = sshra.s32 %s933_s12, 7  ;;  %s939_s21 = sand.u32 127, %s933_s12 }
 0x435   : > { %s936_s4 = sadd.s32 %s3798_s22, %s934_s6  ;;  %s1783_s7 = scalar_lea.vmem %s4563_s29, 12 [#allocation2] }
 0x436   : > { %s2029_s16 = sshll.u32 %s936_s4, 7  ;;  %s917_s18 = sadd.s32 %s4558_s17, %s916_s30 }
 0x437   : > { %s940_s28 = sadd.s32 %s2029_s16, %s939_s21  ;;  %s2027_s26 = sshll.u32 %s917_s18, 4 }
 0x438   : > { %s941_s2 = sld [smem:[#allocation5 + %s940_s28]]  ;;  %s919_s15 = scalar_lea.hbm %s5274_s1, %s2027_s26 }
 0x439   : > { %s954_s10 = sshll.u32 %s1783_s7, 4  ;;  %s3224_s20 = scalar_lea.hbm %s919_s15, 16  ;;  %s4821_s10 = int_to_ptr.vmem [resolvable:$true] %s954_s10 }
 0x43a   : > { %p3225_p1 = scmp.ne.s32.totalorder %s919_s15, %s3224_s20  ;;  %p3227_p4 = scmp.lt.u32.totalorder %s919_s15, %s5274_s1 }
 0x43b   : > { %p3228_p7 = scmp.lt.u32.totalorder %s4585_s13, %s3224_s20  ;;  %p3230_p6 = scmp.lt.u32.totalorder %s3224_s20, %s919_s15 }
 0x43d   : > { %p3229_p5 = por %p3228_p7, %p3227_p4 }
 0x43f   : > { %p3231_p8 = por %p3230_p6, %p3229_p5 }
 0x441   : > { %p3232_p9 = pnand %p3231_p8, %p3225_p1 }
 0x443   : > { %3235 = shalt.err (!%p3232_p9)  }
 0x444   : > { %s3236_s30 = scalar_lea.vmem %s4802_s19, 16  ;;  %p3241_p12 = scmp.lt.s32.totalorder %s4802_s19, %s4593_s3 }
 0x445   : > { %p3237_p10 = scmp.ne.s32.totalorder %s4802_s19, %s3236_s30  ;;  %p3242_p13 = scmp.lt.s32.totalorder %s4596_s9, %s3236_s30 }
 0x447   : > { %p3243_p0 = por %p3242_p13, %p3241_p12 }
 0x449   : > { %p3244_p3 = pnand %p3243_p0, %p3237_p10 }
 0x44b   : > { %3247 = shalt.err (!%p3244_p3)  }
 0x44c   : > { %932 = dma.hbm_to_vmem [thread:$0]  %s919_s15, 16, %s4802_s19, %s4580_s24 }
 0x44d   : > { %s958_s27 = sadd.s32 13, %s4555_s0  ;;  %s1790_s4 = scalar_lea.vmem %s4563_s29, 13 [#allocation2] }
 0x44e   : > { %s959_s14 = sshra.s32 %s958_s27, 7  ;;  %s964_s12 = sand.u32 127, %s958_s27 }
 0x44f   : > { %s961_s6 = sadd.s32 %s3798_s22, %s959_s14  ;;  %s942_s21 = sadd.s32 %s4558_s17, %s941_s2 }
 0x450   : > { %s2032_s16 = sshll.u32 %s961_s6, 7  ;;  %s2030_s7 = sshll.u32 %s942_s21, 4 }
 0x451   : > { %s965_s18 = sadd.s32 %s2032_s16, %s964_s12  ;;  %s944_s25 = scalar_lea.hbm %s5274_s1, %s2030_s7 }
 0x452   : > { %s966_s8 = sld [smem:[#allocation5 + %s965_s18]]  ;;  %s3248_s20 = scalar_lea.hbm %s944_s25, 16 }
 0x453   : > { %p3249_p2 = scmp.ne.s32.totalorder %s944_s25, %s3248_s20  ;;  %p3251_p1 = scmp.lt.u32.totalorder %s944_s25, %s5274_s1 }
 0x454   : > { %p3252_p4 = scmp.lt.u32.totalorder %s4585_s13, %s3248_s20  ;;  %p3254_p5 = scmp.lt.u32.totalorder %s3248_s20, %s944_s25 }
 0x456   : > { %p3253_p7 = por %p3252_p4, %p3251_p1 }
 0x458   : > { %p3255_p6 = por %p3254_p5, %p3253_p7 }
 0x45a   : > { %p3256_p8 = pnand %p3255_p6, %p3249_p2 }
 0x45c   : > { %3259 = shalt.err (!%p3256_p8)  }
 0x45d   : > { %s3260_s2 = scalar_lea.vmem %s4821_s10, 16  ;;  %p3265_p10 = scmp.lt.s32.totalorder %s4821_s10, %s4593_s3 }
 0x45e   : > { %p3261_p9 = scmp.ne.s32.totalorder %s4821_s10, %s3260_s2  ;;  %p3266_p12 = scmp.lt.s32.totalorder %s4596_s9, %s3260_s2 }
 0x460   : > { %p3267_p13 = por %p3266_p12, %p3265_p10 }
 0x462   : > { %p3268_p0 = pnand %p3267_p13, %p3261_p9 }
 0x464   : > { %3271 = shalt.err (!%p3268_p0)  }
 0x465   : > { %957 = dma.hbm_to_vmem [thread:$0]  %s944_s25, 16, %s4821_s10, %s4580_s24 }
 0x466   : > { %s979_s5 = sshll.u32 %s1790_s4, 4  ;;  %s983_s23 = sadd.s32 14, %s4555_s0  ;;  %s4842_s5 = int_to_ptr.vmem [resolvable:$true] %s979_s5 }
 0x467   : > { %s984_s30 = sshra.s32 %s983_s23, 7  ;;  %s989_s14 = sand.u32 127, %s983_s23 }
 0x468   : > { %s986_s27 = sadd.s32 %s3798_s22, %s984_s30  ;;  %s1797_s6 = scalar_lea.vmem %s4563_s29, 14 [#allocation2] }
 0x469   : > { %s2035_s12 = sshll.u32 %s986_s27, 7  ;;  %s967_s21 = sadd.s32 %s4558_s17, %s966_s8 }
 0x46a   : > { %s990_s16 = sadd.s32 %s2035_s12, %s989_s14  ;;  %s2033_s7 = sshll.u32 %s967_s21, 4 }
 0x46b   : > { %s991_s18 = sld [smem:[#allocation5 + %s990_s16]]  ;;  %s969_s20 = scalar_lea.hbm %s5274_s1, %s2033_s7 }
 0x46c   : > { %s1004_s19 = sshll.u32 %s1797_s6, 4  ;;  %s3272_s10 = scalar_lea.hbm %s969_s20, 16  ;;  %s4861_s19 = int_to_ptr.vmem [resolvable:$true] %s1004_s19 }
 0x46d   : > { %p3273_p3 = scmp.ne.s32.totalorder %s969_s20, %s3272_s10  ;;  %p3275_p2 = scmp.lt.u32.totalorder %s969_s20, %s5274_s1 }
 0x46e   : > { %p3276_p1 = scmp.lt.u32.totalorder %s4585_s13, %s3272_s10  ;;  %p3278_p7 = scmp.lt.u32.totalorder %s3272_s10, %s969_s20 }
 0x470   : > { %p3277_p4 = por %p3276_p1, %p3275_p2 }
 0x472   : > { %p3279_p5 = por %p3278_p7, %p3277_p4 }
 0x474   : > { %p3280_p6 = pnand %p3279_p5, %p3273_p3 }
 0x476   : > { %3283 = shalt.err (!%p3280_p6)  }
 0x477   : > { %s3284_s8 = scalar_lea.vmem %s4842_s5, 16  ;;  %p3289_p9 = scmp.lt.s32.totalorder %s4842_s5, %s4593_s3 }
 0x478   : > { %p3285_p8 = scmp.ne.s32.totalorder %s4842_s5, %s3284_s8  ;;  %p3290_p10 = scmp.lt.s32.totalorder %s4596_s9, %s3284_s8 }
 0x47a   : > { %p3291_p12 = por %p3290_p10, %p3289_p9 }
 0x47c   : > { %p3292_p13 = pnand %p3291_p12, %p3285_p8 }
 0x47e   : > { %3295 = shalt.err (!%p3292_p13)  }
 0x47f   : > { %982 = dma.hbm_to_vmem [thread:$0]  %s969_s20, 16, %s4842_s5, %s4580_s24 }
 0x480   : > { %s1008_s15 = sadd.s32 15, %s4555_s0  ;;  %s1804_s27 = scalar_lea.vmem %s4563_s29, 15 [#allocation2] }
 0x481   : > { %s1009_s2 = sshra.s32 %s1008_s15, 7  ;;  %s1014_s23 = sand.u32 127, %s1008_s15 }
 0x482   : > { %s1011_s30 = sadd.s32 %s3798_s22, %s1009_s2  ;;  %s992_s14 = sadd.s32 %s4558_s17, %s991_s18 }
 0x483   : > { %s2038_s12 = sshll.u32 %s1011_s30, 7  ;;  %s2036_s6 = sshll.u32 %s992_s14, 4 }
 0x484   : > { %s1015_s21 = sadd.s32 %s2038_s12, %s1014_s23  ;;  %s994_s28 = scalar_lea.hbm %s5274_s1, %s2036_s6 }
 0x485   : > { %s1016_s26 = sld [smem:[#allocation5 + %s1015_s21]]  ;;  %s3296_s10 = scalar_lea.hbm %s994_s28, 16 }
 0x486   : > { %p3297_p0 = scmp.ne.s32.totalorder %s994_s28, %s3296_s10  ;;  %p3299_p3 = scmp.lt.u32.totalorder %s994_s28, %s5274_s1 }
 0x487   : > { %p3300_p2 = scmp.lt.u32.totalorder %s4585_s13, %s3296_s10  ;;  %p3302_p4 = scmp.lt.u32.totalorder %s3296_s10, %s994_s28 }
 0x489   : > { %p3301_p1 = por %p3300_p2, %p3299_p3 }
 0x48b   : > { %p3303_p7 = por %p3302_p4, %p3301_p1 }
 0x48d   : > { %p3304_p5 = pnand %p3303_p7, %p3297_p0 }
 0x48f   : > { %3307 = shalt.err (!%p3304_p5)  }
 0x490   : > { %s3308_s18 = scalar_lea.vmem %s4861_s19, 16  ;;  %p3313_p8 = scmp.lt.s32.totalorder %s4861_s19, %s4593_s3 }
 0x491   : > { %p3309_p6 = scmp.ne.s32.totalorder %s4861_s19, %s3308_s18  ;;  %p3314_p9 = scmp.lt.s32.totalorder %s4596_s9, %s3308_s18 }
 0x493   : > { %p3315_p10 = por %p3314_p9, %p3313_p8 }
 0x495   : > { %p3316_p12 = pnand %p3315_p10, %p3309_p6 }
 0x497   : > { %3319 = shalt.err (!%p3316_p12)  }
 0x498   : > { %1007 = dma.hbm_to_vmem [thread:$0]  %s994_s28, 16, %s4861_s19, %s4580_s24 }
 0x499   : > { %s1029_s4 = sshll.u32 %s1804_s27, 4  ;;  %s1033_s25 = sadd.s32 16, %s4555_s0  ;;  %s4882_s4 = int_to_ptr.vmem [resolvable:$true] %s1029_s4 }
 0x49a   : > { %s1034_s8 = sshra.s32 %s1033_s25, 7  ;;  %s1039_s2 = sand.u32 127, %s1033_s25 }
 0x49b   : > { %s1036_s15 = sadd.s32 %s3798_s22, %s1034_s8  ;;  %s1811_s30 = scalar_lea.vmem %s4563_s29, 16 [#allocation2] }
 0x49c   : > { %s2041_s23 = sshll.u32 %s1036_s15, 7  ;;  %s1017_s14 = sadd.s32 %s4558_s17, %s1016_s26 }
 0x49d   : > { %s1040_s12 = sadd.s32 %s2041_s23, %s1039_s2  ;;  %s2039_s6 = sshll.u32 %s1017_s14, 4 }
 0x49e   : > { %s1041_s21 = sld [smem:[#allocation5 + %s1040_s12]]  ;;  %s1019_s10 = scalar_lea.hbm %s5274_s1, %s2039_s6 }
 0x49f   : > { %s1054_s5 = sshll.u32 %s1811_s30, 4  ;;  %s3320_s19 = scalar_lea.hbm %s1019_s10, 16  ;;  %s4901_s5 = int_to_ptr.vmem [resolvable:$true] %s1054_s5 }
 0x4a0   : > { %p3321_p13 = scmp.ne.s32.totalorder %s1019_s10, %s3320_s19  ;;  %p3323_p0 = scmp.lt.u32.totalorder %s1019_s10, %s5274_s1 }
 0x4a1   : > { %p3324_p3 = scmp.lt.u32.totalorder %s4585_s13, %s3320_s19  ;;  %p3326_p1 = scmp.lt.u32.totalorder %s3320_s19, %s1019_s10 }
 0x4a3   : > { %p3325_p2 = por %p3324_p3, %p3323_p0 }
 0x4a5   : > { %p3327_p4 = por %p3326_p1, %p3325_p2 }
 0x4a7   : > { %p3328_p7 = pnand %p3327_p4, %p3321_p13 }
 0x4a9   : > { %3331 = shalt.err (!%p3328_p7)  }
 0x4aa   : > { %s3332_s26 = scalar_lea.vmem %s4882_s4, 16  ;;  %p3337_p6 = scmp.lt.s32.totalorder %s4882_s4, %s4593_s3 }
 0x4ab   : > { %p3333_p5 = scmp.ne.s32.totalorder %s4882_s4, %s3332_s26  ;;  %p3338_p8 = scmp.lt.s32.totalorder %s4596_s9, %s3332_s26 }
 0x4ad   : > { %p3339_p9 = por %p3338_p8, %p3337_p6 }
 0x4af   : > { %p3340_p10 = pnand %p3339_p9, %p3333_p5 }
 0x4b1   : > { %3343 = shalt.err (!%p3340_p10)  }
 0x4b2   : > { %1032 = dma.hbm_to_vmem [thread:$0]  %s1019_s10, 16, %s4882_s4, %s4580_s24 }
 0x4b3   : > { %s1058_s20 = sadd.s32 17, %s4555_s0  ;;  %s1818_s15 = scalar_lea.vmem %s4563_s29, 17 [#allocation2] }
 0x4b4   : > { %s1059_s18 = sshra.s32 %s1058_s20, 7  ;;  %s1064_s25 = sand.u32 127, %s1058_s20 }
 0x4b5   : > { %s1061_s8 = sadd.s32 %s3798_s22, %s1059_s18  ;;  %s1042_s2 = sadd.s32 %s4558_s17, %s1041_s21 }
 0x4b6   : > { %s2044_s23 = sshll.u32 %s1061_s8, 7  ;;  %s2042_s30 = sshll.u32 %s1042_s2, 4 }
 0x4b7   : > { %s1065_s14 = sadd.s32 %s2044_s23, %s1064_s25  ;;  %s1044_s16 = scalar_lea.hbm %s5274_s1, %s2042_s30 }
 0x4b8   : > { %s1066_s7 = sld [smem:[#allocation5 + %s1065_s14]]  ;;  %s3344_s19 = scalar_lea.hbm %s1044_s16, 16 }
 0x4b9   : > { %p3345_p12 = scmp.ne.s32.totalorder %s1044_s16, %s3344_s19  ;;  %p3347_p13 = scmp.lt.u32.totalorder %s1044_s16, %s5274_s1 }
 0x4ba   : > { %p3348_p0 = scmp.lt.u32.totalorder %s4585_s13, %s3344_s19  ;;  %p3350_p2 = scmp.lt.u32.totalorder %s3344_s19, %s1044_s16 }
 0x4bc   : > { %p3349_p3 = por %p3348_p0, %p3347_p13 }
 0x4be   : > { %p3351_p1 = por %p3350_p2, %p3349_p3 }
 0x4c0   : > { %p3352_p4 = pnand %p3351_p1, %p3345_p12 }
 0x4c2   : > { %3355 = shalt.err (!%p3352_p4)  }
 0x4c3   : > { %s3356_s21 = scalar_lea.vmem %s4901_s5, 16  ;;  %p3361_p5 = scmp.lt.s32.totalorder %s4901_s5, %s4593_s3 }
 0x4c4   : > { %p3357_p7 = scmp.ne.s32.totalorder %s4901_s5, %s3356_s21  ;;  %p3362_p6 = scmp.lt.s32.totalorder %s4596_s9, %s3356_s21 }
 0x4c6   : > { %p3363_p8 = por %p3362_p6, %p3361_p5 }
 0x4c8   : > { %p3364_p9 = pnand %p3363_p8, %p3357_p7 }
 0x4ca   : > { %3367 = shalt.err (!%p3364_p9)  }
 0x4cb   : > { %1057 = dma.hbm_to_vmem [thread:$0]  %s1044_s16, 16, %s4901_s5, %s4580_s24 }
 0x4cc   : > { %s1079_s27 = sshll.u32 %s1818_s15, 4  ;;  %s1083_s28 = sadd.s32 18, %s4555_s0  ;;  %s4922_s27 = int_to_ptr.vmem [resolvable:$true] %s1079_s27 }
 0x4cd   : > { %s1084_s26 = sshra.s32 %s1083_s28, 7  ;;  %s1089_s18 = sand.u32 127, %s1083_s28 }
 0x4ce   : > { %s1086_s20 = sadd.s32 %s3798_s22, %s1084_s26  ;;  %s1825_s8 = scalar_lea.vmem %s4563_s29, 18 [#allocation2] }
 0x4cf   : > { %s2047_s25 = sshll.u32 %s1086_s20, 7  ;;  %s1067_s2 = sadd.s32 %s4558_s17, %s1066_s7 }
 0x4d0   : > { %s1090_s23 = sadd.s32 %s2047_s25, %s1089_s18  ;;  %s2045_s30 = sshll.u32 %s1067_s2, 4 }
 0x4d1   : > { %s1091_s14 = sld [smem:[#allocation5 + %s1090_s23]]  ;;  %s1069_s19 = scalar_lea.hbm %s5274_s1, %s2045_s30 }
 0x4d2   : > { %s1104_s4 = sshll.u32 %s1825_s8, 4  ;;  %s3368_s5 = scalar_lea.hbm %s1069_s19, 16  ;;  %s4941_s4 = int_to_ptr.vmem [resolvable:$true] %s1104_s4 }
 0x4d3   : > { %p3369_p10 = scmp.ne.s32.totalorder %s1069_s19, %s3368_s5  ;;  %p3371_p12 = scmp.lt.u32.totalorder %s1069_s19, %s5274_s1 }
 0x4d4   : > { %p3372_p13 = scmp.lt.u32.totalorder %s4585_s13, %s3368_s5  ;;  %p3374_p3 = scmp.lt.u32.totalorder %s3368_s5, %s1069_s19 }
 0x4d6   : > { %p3373_p0 = por %p3372_p13, %p3371_p12 }
 0x4d8   : > { %p3375_p2 = por %p3374_p3, %p3373_p0 }
 0x4da   : > { %p3376_p1 = pnand %p3375_p2, %p3369_p10 }
 0x4dc   : > { %3379 = shalt.err (!%p3376_p1)  }
 0x4dd   : > { %s3380_s7 = scalar_lea.vmem %s4922_s27, 16  ;;  %p3385_p7 = scmp.lt.s32.totalorder %s4922_s27, %s4593_s3 }
 0x4de   : > { %p3381_p4 = scmp.ne.s32.totalorder %s4922_s27, %s3380_s7  ;;  %p3386_p5 = scmp.lt.s32.totalorder %s4596_s9, %s3380_s7 }
 0x4e0   : > { %p3387_p6 = por %p3386_p5, %p3385_p7 }
 0x4e2   : > { %p3388_p8 = pnand %p3387_p6, %p3381_p4 }
 0x4e4   : > { %3391 = shalt.err (!%p3388_p8)  }
 0x4e5   : > { %1082 = dma.hbm_to_vmem [thread:$0]  %s1069_s19, 16, %s4922_s27, %s4580_s24 }
 0x4e6   : > { %s1108_s10 = sadd.s32 19, %s4555_s0  ;;  %s1832_s20 = scalar_lea.vmem %s4563_s29, 19 [#allocation2] }
 0x4e7   : > { %s1109_s21 = sshra.s32 %s1108_s10, 7  ;;  %s1114_s28 = sand.u32 127, %s1108_s10 }
 0x4e8   : > { %s1111_s26 = sadd.s32 %s3798_s22, %s1109_s21  ;;  %s1092_s18 = sadd.s32 %s4558_s17, %s1091_s14 }
 0x4e9   : > { %s2050_s25 = sshll.u32 %s1111_s26, 7  ;;  %s2048_s8 = sshll.u32 %s1092_s18, 4 }
 0x4ea   : > { %s1115_s2 = sadd.s32 %s2050_s25, %s1114_s28  ;;  %s1094_s12 = scalar_lea.hbm %s5274_s1, %s2048_s8 }
 0x4eb   : > { %s1116_s6 = sld [smem:[#allocation5 + %s1115_s2]]  ;;  %s3392_s5 = scalar_lea.hbm %s1094_s12, 16 }
 0x4ec   : > { %p3393_p9 = scmp.ne.s32.totalorder %s1094_s12, %s3392_s5  ;;  %p3395_p10 = scmp.lt.u32.totalorder %s1094_s12, %s5274_s1 }
 0x4ed   : > { %p3396_p12 = scmp.lt.u32.totalorder %s4585_s13, %s3392_s5  ;;  %p3398_p0 = scmp.lt.u32.totalorder %s3392_s5, %s1094_s12 }
 0x4ef   : > { %p3397_p13 = por %p3396_p12, %p3395_p10 }
 0x4f1   : > { %p3399_p3 = por %p3398_p0, %p3397_p13 }
 0x4f3   : > { %p3400_p2 = pnand %p3399_p3, %p3393_p9 }
 0x4f5   : > { %3403 = shalt.err (!%p3400_p2)  }
 0x4f6   : > { %s3404_s14 = scalar_lea.vmem %s4941_s4, 16  ;;  %p3409_p4 = scmp.lt.s32.totalorder %s4941_s4, %s4593_s3 }
 0x4f7   : > { %p3405_p1 = scmp.ne.s32.totalorder %s4941_s4, %s3404_s14  ;;  %p3410_p7 = scmp.lt.s32.totalorder %s4596_s9, %s3404_s14 }
 0x4f9   : > { %p3411_p5 = por %p3410_p7, %p3409_p4 }
 0x4fb   : > { %p3412_p6 = pnand %p3411_p5, %p3405_p1 }
 0x4fd   : > { %3415 = shalt.err (!%p3412_p6)  }
 0x4fe   : > { %1107 = dma.hbm_to_vmem [thread:$0]  %s1094_s12, 16, %s4941_s4, %s4580_s24 }
 0x4ff   : > { %s1129_s15 = sshll.u32 %s1832_s20, 4  ;;  %s1133_s16 = sadd.s32 20, %s4555_s0  ;;  %s4962_s15 = int_to_ptr.vmem [resolvable:$true] %s1129_s15 }
 0x500   : > { %s1134_s7 = sshra.s32 %s1133_s16, 7  ;;  %s1139_s21 = sand.u32 127, %s1133_s16 }
 0x501   : > { %s1136_s10 = sadd.s32 %s3798_s22, %s1134_s7  ;;  %s1839_s26 = scalar_lea.vmem %s4563_s29, 20 [#allocation2] }
 0x502   : > { %s2053_s28 = sshll.u32 %s1136_s10, 7  ;;  %s1117_s18 = sadd.s32 %s4558_s17, %s1116_s6 }
 0x503   : > { %s1140_s25 = sadd.s32 %s2053_s28, %s1139_s21  ;;  %s2051_s8 = sshll.u32 %s1117_s18, 4 }
 0x504   : > { %s1141_s2 = sld [smem:[#allocation5 + %s1140_s25]]  ;;  %s1119_s5 = scalar_lea.hbm %s5274_s1, %s2051_s8 }
 0x505   : > { %s1154_s27 = sshll.u32 %s1839_s26, 4  ;;  %s3416_s4 = scalar_lea.hbm %s1119_s5, 16  ;;  %s4981_s27 = int_to_ptr.vmem [resolvable:$true] %s1154_s27 }
 0x506   : > { %p3417_p8 = scmp.ne.s32.totalorder %s1119_s5, %s3416_s4  ;;  %p3419_p9 = scmp.lt.u32.totalorder %s1119_s5, %s5274_s1 }
 0x507   : > { %p3420_p10 = scmp.lt.u32.totalorder %s4585_s13, %s3416_s4  ;;  %p3422_p13 = scmp.lt.u32.totalorder %s3416_s4, %s1119_s5 }
 0x509   : > { %p3421_p12 = por %p3420_p10, %p3419_p9 }
 0x50b   : > { %p3423_p0 = por %p3422_p13, %p3421_p12 }
 0x50d   : > { %p3424_p3 = pnand %p3423_p0, %p3417_p8 }
 0x50f   : > { %3427 = shalt.err (!%p3424_p3)  }
 0x510   : > { %s3428_s6 = scalar_lea.vmem %s4962_s15, 16  ;;  %p3433_p1 = scmp.lt.s32.totalorder %s4962_s15, %s4593_s3 }
 0x511   : > { %p3429_p2 = scmp.ne.s32.totalorder %s4962_s15, %s3428_s6  ;;  %p3434_p4 = scmp.lt.s32.totalorder %s4596_s9, %s3428_s6 }
 0x513   : > { %p3435_p7 = por %p3434_p4, %p3433_p1 }
 0x515   : > { %p3436_p5 = pnand %p3435_p7, %p3429_p2 }
 0x517   : > { %3439 = shalt.err (!%p3436_p5)  }
 0x518   : > { %1132 = dma.hbm_to_vmem [thread:$0]  %s1119_s5, 16, %s4962_s15, %s4580_s24 }
 0x519   : > { %s1158_s19 = sadd.s32 21, %s4555_s0  ;;  %s1846_s10 = scalar_lea.vmem %s4563_s29, 21 [#allocation2] }
 0x51a   : > { %s1159_s14 = sshra.s32 %s1158_s19, 7  ;;  %s1164_s16 = sand.u32 127, %s1158_s19 }
 0x51b   : > { %s1161_s7 = sadd.s32 %s3798_s22, %s1159_s14  ;;  %s1142_s21 = sadd.s32 %s4558_s17, %s1141_s2 }
 0x51c   : > { %s2056_s28 = sshll.u32 %s1161_s7, 7  ;;  %s2054_s26 = sshll.u32 %s1142_s21, 4 }
 0x51d   : > { %s1165_s18 = sadd.s32 %s2056_s28, %s1164_s16  ;;  %s1144_s23 = scalar_lea.hbm %s5274_s1, %s2054_s26 }
 0x51e   : > { %s1166_s30 = sld [smem:[#allocation5 + %s1165_s18]]  ;;  %s3440_s4 = scalar_lea.hbm %s1144_s23, 16 }
 0x51f   : > { %p3441_p6 = scmp.ne.s32.totalorder %s1144_s23, %s3440_s4  ;;  %p3443_p8 = scmp.lt.u32.totalorder %s1144_s23, %s5274_s1 }
 0x520   : > { %p3444_p9 = scmp.lt.u32.totalorder %s4585_s13, %s3440_s4  ;;  %p3446_p12 = scmp.lt.u32.totalorder %s3440_s4, %s1144_s23 }
 0x522   : > { %p3445_p10 = por %p3444_p9, %p3443_p8 }
 0x524   : > { %p3447_p13 = por %p3446_p12, %p3445_p10 }
 0x526   : > { %p3448_p0 = pnand %p3447_p13, %p3441_p6 }
 0x528   : > { %3451 = shalt.err (!%p3448_p0)  }
 0x529   : > { %s3452_s2 = scalar_lea.vmem %s4981_s27, 16  ;;  %p3457_p2 = scmp.lt.s32.totalorder %s4981_s27, %s4593_s3 }
 0x52a   : > { %p3453_p3 = scmp.ne.s32.totalorder %s4981_s27, %s3452_s2  ;;  %p3458_p1 = scmp.lt.s32.totalorder %s4596_s9, %s3452_s2 }
 0x52c   : > { %p3459_p4 = por %p3458_p1, %p3457_p2 }
 0x52e   : > { %p3460_p7 = pnand %p3459_p4, %p3453_p3 }
 0x530   : > { %3463 = shalt.err (!%p3460_p7)  }
 0x531   : > { %1157 = dma.hbm_to_vmem [thread:$0]  %s1144_s23, 16, %s4981_s27, %s4580_s24 }
 0x532   : > { %s1179_s20 = sshll.u32 %s1846_s10, 4  ;;  %s1183_s12 = sadd.s32 22, %s4555_s0  ;;  %s5002_s20 = int_to_ptr.vmem [resolvable:$true] %s1179_s20 }
 0x533   : > { %s1184_s6 = sshra.s32 %s1183_s12, 7  ;;  %s1189_s14 = sand.u32 127, %s1183_s12 }
 0x534   : > { %s1186_s19 = sadd.s32 %s3798_s22, %s1184_s6  ;;  %s1853_s7 = scalar_lea.vmem %s4563_s29, 22 [#allocation2] }
 0x535   : > { %s2059_s16 = sshll.u32 %s1186_s19, 7  ;;  %s1167_s21 = sadd.s32 %s4558_s17, %s1166_s30 }
 0x536   : > { %s1190_s28 = sadd.s32 %s2059_s16, %s1189_s14  ;;  %s2057_s26 = sshll.u32 %s1167_s21, 4 }
 0x537   : > { %s1191_s18 = sld [smem:[#allocation5 + %s1190_s28]]  ;;  %s1169_s4 = scalar_lea.hbm %s5274_s1, %s2057_s26 }
 0x538   : > { %s1204_s15 = sshll.u32 %s1853_s7, 4  ;;  %s3464_s27 = scalar_lea.hbm %s1169_s4, 16  ;;  %s5021_s15 = int_to_ptr.vmem [resolvable:$true] %s1204_s15 }
 0x539   : > { %p3465_p5 = scmp.ne.s32.totalorder %s1169_s4, %s3464_s27  ;;  %p3467_p6 = scmp.lt.u32.totalorder %s1169_s4, %s5274_s1 }
 0x53a   : > { %p3468_p8 = scmp.lt.u32.totalorder %s4585_s13, %s3464_s27  ;;  %p3470_p10 = scmp.lt.u32.totalorder %s3464_s27, %s1169_s4 }
 0x53c   : > { %p3469_p9 = por %p3468_p8, %p3467_p6 }
 0x53e   : > { %p3471_p12 = por %p3470_p10, %p3469_p9 }
 0x540   : > { %p3472_p13 = pnand %p3471_p12, %p3465_p5 }
 0x542   : > { %3475 = shalt.err (!%p3472_p13)  }
 0x543   : > { %s3476_s30 = scalar_lea.vmem %s5002_s20, 16  ;;  %p3481_p3 = scmp.lt.s32.totalorder %s5002_s20, %s4593_s3 }
 0x544   : > { %p3477_p0 = scmp.ne.s32.totalorder %s5002_s20, %s3476_s30  ;;  %p3482_p2 = scmp.lt.s32.totalorder %s4596_s9, %s3476_s30 }
 0x546   : > { %p3483_p1 = por %p3482_p2, %p3481_p3 }
 0x548   : > { %p3484_p4 = pnand %p3483_p1, %p3477_p0 }
 0x54a   : > { %3487 = shalt.err (!%p3484_p4)  }
 0x54b   : > { %1182 = dma.hbm_to_vmem [thread:$0]  %s1169_s4, 16, %s5002_s20, %s4580_s24 }
 0x54c   : > { %s1208_s5 = sadd.s32 23, %s4555_s0  ;;  %s1860_s19 = scalar_lea.vmem %s4563_s29, 23 [#allocation2] }
 0x54d   : > { %s1209_s2 = sshra.s32 %s1208_s5, 7  ;;  %s1214_s12 = sand.u32 127, %s1208_s5 }
 0x54e   : > { %s1211_s6 = sadd.s32 %s3798_s22, %s1209_s2  ;;  %s1192_s14 = sadd.s32 %s4558_s17, %s1191_s18 }
 0x54f   : > { %s2062_s16 = sshll.u32 %s1211_s6, 7  ;;  %s2060_s7 = sshll.u32 %s1192_s14, 4 }
 0x550   : > { %s1215_s21 = sadd.s32 %s2062_s16, %s1214_s12  ;;  %s1194_s25 = scalar_lea.hbm %s5274_s1, %s2060_s7 }
 0x551   : > { %s1216_s8 = sld [smem:[#allocation5 + %s1215_s21]]  ;;  %s3488_s27 = scalar_lea.hbm %s1194_s25, 16 }
 0x552   : > { %p3489_p7 = scmp.ne.s32.totalorder %s1194_s25, %s3488_s27  ;;  %p3491_p5 = scmp.lt.u32.totalorder %s1194_s25, %s5274_s1 }
 0x553   : > { %p3492_p6 = scmp.lt.u32.totalorder %s4585_s13, %s3488_s27  ;;  %p3494_p9 = scmp.lt.u32.totalorder %s3488_s27, %s1194_s25 }
 0x555   : > { %p3493_p8 = por %p3492_p6, %p3491_p5 }
 0x557   : > { %p3495_p10 = por %p3494_p9, %p3493_p8 }
 0x559   : > { %p3496_p12 = pnand %p3495_p10, %p3489_p7 }
 0x55b   : > { %3499 = shalt.err (!%p3496_p12)  }
 0x55c   : > { %s3500_s18 = scalar_lea.vmem %s5021_s15, 16  ;;  %p3505_p0 = scmp.lt.s32.totalorder %s5021_s15, %s4593_s3 }
 0x55d   : > { %p3501_p13 = scmp.ne.s32.totalorder %s5021_s15, %s3500_s18  ;;  %p3506_p3 = scmp.lt.s32.totalorder %s4596_s9, %s3500_s18 }
 0x55f   : > { %p3507_p2 = por %p3506_p3, %p3505_p0 }
 0x561   : > { %p3508_p1 = pnand %p3507_p2, %p3501_p13 }
 0x563   : > { %3511 = shalt.err (!%p3508_p1)  }
 0x564   : > { %1207 = dma.hbm_to_vmem [thread:$0]  %s1194_s25, 16, %s5021_s15, %s4580_s24 }
 0x565   : > { %s1229_s10 = sshll.u32 %s1860_s19, 4  ;;  %s1233_s23 = sadd.s32 24, %s4555_s0  ;;  %s5042_s10 = int_to_ptr.vmem [resolvable:$true] %s1229_s10 }
 0x566   : > { %s1234_s30 = sshra.s32 %s1233_s23, 7  ;;  %s1239_s2 = sand.u32 127, %s1233_s23 }
 0x567   : > { %s1236_s5 = sadd.s32 %s3798_s22, %s1234_s30  ;;  %s1867_s6 = scalar_lea.vmem %s4563_s29, 24 [#allocation2] }
 0x568   : > { %s2065_s12 = sshll.u32 %s1236_s5, 7  ;;  %s1217_s14 = sadd.s32 %s4558_s17, %s1216_s8 }
 0x569   : > { %s1240_s16 = sadd.s32 %s2065_s12, %s1239_s2  ;;  %s2063_s7 = sshll.u32 %s1217_s14, 4 }
 0x56a   : > { %s1241_s21 = sld [smem:[#allocation5 + %s1240_s16]]  ;;  %s1219_s27 = scalar_lea.hbm %s5274_s1, %s2063_s7 }
 0x56b   : > { %s1254_s20 = sshll.u32 %s1867_s6, 4  ;;  %s3512_s15 = scalar_lea.hbm %s1219_s27, 16  ;;  %s5061_s20 = int_to_ptr.vmem [resolvable:$true] %s1254_s20 }
 0x56c   : > { %p3513_p4 = scmp.ne.s32.totalorder %s1219_s27, %s3512_s15  ;;  %p3515_p7 = scmp.lt.u32.totalorder %s1219_s27, %s5274_s1 }
 0x56d   : > { %p3516_p5 = scmp.lt.u32.totalorder %s4585_s13, %s3512_s15  ;;  %p3518_p8 = scmp.lt.u32.totalorder %s3512_s15, %s1219_s27 }
 0x56f   : > { %p3517_p6 = por %p3516_p5, %p3515_p7 }
 0x571   : > { %p3519_p9 = por %p3518_p8, %p3517_p6 }
 0x573   : > { %p3520_p10 = pnand %p3519_p9, %p3513_p4 }
 0x575   : > { %3523 = shalt.err (!%p3520_p10)  }
 0x576   : > { %s3524_s8 = scalar_lea.vmem %s5042_s10, 16  ;;  %p3529_p13 = scmp.lt.s32.totalorder %s5042_s10, %s4593_s3 }
 0x577   : > { %p3525_p12 = scmp.ne.s32.totalorder %s5042_s10, %s3524_s8  ;;  %p3530_p0 = scmp.lt.s32.totalorder %s4596_s9, %s3524_s8 }
 0x579   : > { %p3531_p3 = por %p3530_p0, %p3529_p13 }
 0x57b   : > { %p3532_p2 = pnand %p3531_p3, %p3525_p12 }
 0x57d   : > { %3535 = shalt.err (!%p3532_p2)  }
 0x57e   : > { %1232 = dma.hbm_to_vmem [thread:$0]  %s1219_s27, 16, %s5042_s10, %s4580_s24 }
 0x57f   : > { %s1258_s4 = sadd.s32 25, %s4555_s0  ;;  %s1874_s5 = scalar_lea.vmem %s4563_s29, 25 [#allocation2] }
 0x580   : > { %s1259_s18 = sshra.s32 %s1258_s4, 7  ;;  %s1264_s23 = sand.u32 127, %s1258_s4 }
 0x581   : > { %s1261_s30 = sadd.s32 %s3798_s22, %s1259_s18  ;;  %s1242_s2 = sadd.s32 %s4558_s17, %s1241_s21 }
 0x582   : > { %s2068_s12 = sshll.u32 %s1261_s30, 7  ;;  %s2066_s6 = sshll.u32 %s1242_s2, 4 }
 0x583   : > { %s1265_s14 = sadd.s32 %s2068_s12, %s1264_s23  ;;  %s1244_s28 = scalar_lea.hbm %s5274_s1, %s2066_s6 }
 0x584   : > { %s1266_s26 = sld [smem:[#allocation5 + %s1265_s14]]  ;;  %s3536_s15 = scalar_lea.hbm %s1244_s28, 16 }
 0x585   : > { %p3537_p1 = scmp.ne.s32.totalorder %s1244_s28, %s3536_s15  ;;  %p3539_p4 = scmp.lt.u32.totalorder %s1244_s28, %s5274_s1 }
 0x586   : > { %p3540_p7 = scmp.lt.u32.totalorder %s4585_s13, %s3536_s15  ;;  %p3542_p6 = scmp.lt.u32.totalorder %s3536_s15, %s1244_s28 }
 0x588   : > { %p3541_p5 = por %p3540_p7, %p3539_p4 }
 0x58a   : > { %p3543_p8 = por %p3542_p6, %p3541_p5 }
 0x58c   : > { %p3544_p9 = pnand %p3543_p8, %p3537_p1 }
 0x58e   : > { %3547 = shalt.err (!%p3544_p9)  }
 0x58f   : > { %s3548_s21 = scalar_lea.vmem %s5061_s20, 16  ;;  %p3553_p12 = scmp.lt.s32.totalorder %s5061_s20, %s4593_s3 }
 0x590   : > { %p3549_p10 = scmp.ne.s32.totalorder %s5061_s20, %s3548_s21  ;;  %p3554_p13 = scmp.lt.s32.totalorder %s4596_s9, %s3548_s21 }
 0x592   : > { %p3555_p0 = por %p3554_p13, %p3553_p12 }
 0x594   : > { %p3556_p3 = pnand %p3555_p0, %p3549_p10 }
 0x596   : > { %3559 = shalt.err (!%p3556_p3)  }
 0x597   : > { %1257 = dma.hbm_to_vmem [thread:$0]  %s1244_s28, 16, %s5061_s20, %s4580_s24 }
 0x598   : > { %s1279_s19 = sshll.u32 %s1874_s5, 4  ;;  %s1283_s25 = sadd.s32 26, %s4555_s0  ;;  %s5082_s19 = int_to_ptr.vmem [resolvable:$true] %s1279_s19 }
 0x599   : > { %s1284_s8 = sshra.s32 %s1283_s25, 7  ;;  %s1289_s18 = sand.u32 127, %s1283_s25 }
 0x59a   : > { %s1286_s4 = sadd.s32 %s3798_s22, %s1284_s8  ;;  %s1881_s30 = scalar_lea.vmem %s4563_s29, 26 [#allocation2] }
 0x59b   : > { %s2071_s23 = sshll.u32 %s1286_s4, 7  ;;  %s1267_s2 = sadd.s32 %s4558_s17, %s1266_s26 }
 0x59c   : > { %s1290_s12 = sadd.s32 %s2071_s23, %s1289_s18  ;;  %s2069_s6 = sshll.u32 %s1267_s2, 4 }
 0x59d   : > { %s1291_s14 = sld [smem:[#allocation5 + %s1290_s12]]  ;;  %s1269_s15 = scalar_lea.hbm %s5274_s1, %s2069_s6 }
 0x59e   : > { %s1304_s10 = sshll.u32 %s1881_s30, 4  ;;  %s3560_s20 = scalar_lea.hbm %s1269_s15, 16  ;;  %s5101_s10 = int_to_ptr.vmem [resolvable:$true] %s1304_s10 }
 0x59f   : > { %p3561_p2 = scmp.ne.s32.totalorder %s1269_s15, %s3560_s20  ;;  %p3563_p1 = scmp.lt.u32.totalorder %s1269_s15, %s5274_s1 }
 0x5a0   : > { %p3564_p4 = scmp.lt.u32.totalorder %s4585_s13, %s3560_s20  ;;  %p3566_p5 = scmp.lt.u32.totalorder %s3560_s20, %s1269_s15 }
 0x5a2   : > { %p3565_p7 = por %p3564_p4, %p3563_p1 }
 0x5a4   : > { %p3567_p6 = por %p3566_p5, %p3565_p7 }
 0x5a6   : > { %p3568_p8 = pnand %p3567_p6, %p3561_p2 }
 0x5a8   : > { %3571 = shalt.err (!%p3568_p8)  }
 0x5a9   : > { %s3572_s26 = scalar_lea.vmem %s5082_s19, 16  ;;  %p3577_p10 = scmp.lt.s32.totalorder %s5082_s19, %s4593_s3 }
 0x5aa   : > { %p3573_p9 = scmp.ne.s32.totalorder %s5082_s19, %s3572_s26  ;;  %p3578_p12 = scmp.lt.s32.totalorder %s4596_s9, %s3572_s26 }
 0x5ac   : > { %p3579_p13 = por %p3578_p12, %p3577_p10 }
 0x5ae   : > { %p3580_p0 = pnand %p3579_p13, %p3573_p9 }
 0x5b0   : > { %3583 = shalt.err (!%p3580_p0)  }
 0x5b1   : > { %1282 = dma.hbm_to_vmem [thread:$0]  %s1269_s15, 16, %s5082_s19, %s4580_s24 }
 0x5b2   : > { %s1308_s27 = sadd.s32 27, %s4555_s0  ;;  %s1888_s4 = scalar_lea.vmem %s4563_s29, 27 [#allocation2] }
 0x5b3   : > { %s1309_s21 = sshra.s32 %s1308_s27, 7  ;;  %s1314_s25 = sand.u32 127, %s1308_s27 }
 0x5b4   : > { %s1311_s8 = sadd.s32 %s3798_s22, %s1309_s21  ;;  %s1292_s18 = sadd.s32 %s4558_s17, %s1291_s14 }
 0x5b5   : > { %s2074_s23 = sshll.u32 %s1311_s8, 7  ;;  %s2072_s30 = sshll.u32 %s1292_s18, 4 }
 0x5b6   : > { %s1315_s2 = sadd.s32 %s2074_s23, %s1314_s25  ;;  %s1294_s16 = scalar_lea.hbm %s5274_s1, %s2072_s30 }
 0x5b7   : > { %s1316_s7 = sld [smem:[#allocation5 + %s1315_s2]]  ;;  %s3584_s20 = scalar_lea.hbm %s1294_s16, 16 }
 0x5b8   : > { %p3585_p3 = scmp.ne.s32.totalorder %s1294_s16, %s3584_s20  ;;  %p3587_p2 = scmp.lt.u32.totalorder %s1294_s16, %s5274_s1 }
 0x5b9   : > { %p3588_p1 = scmp.lt.u32.totalorder %s4585_s13, %s3584_s20  ;;  %p3590_p7 = scmp.lt.u32.totalorder %s3584_s20, %s1294_s16 }
 0x5bb   : > { %p3589_p4 = por %p3588_p1, %p3587_p2 }
 0x5bd   : > { %p3591_p5 = por %p3590_p7, %p3589_p4 }
 0x5bf   : > { %p3592_p6 = pnand %p3591_p5, %p3585_p3 }
 0x5c1   : > { %3595 = shalt.err (!%p3592_p6)  }
 0x5c2   : > { %s3596_s14 = scalar_lea.vmem %s5101_s10, 16  ;;  %p3601_p9 = scmp.lt.s32.totalorder %s5101_s10, %s4593_s3 }
 0x5c3   : > { %p3597_p8 = scmp.ne.s32.totalorder %s5101_s10, %s3596_s14  ;;  %p3602_p10 = scmp.lt.s32.totalorder %s4596_s9, %s3596_s14 }
 0x5c5   : > { %p3603_p12 = por %p3602_p10, %p3601_p9 }
 0x5c7   : > { %p3604_p13 = pnand %p3603_p12, %p3597_p8 }
 0x5c9   : > { %3607 = shalt.err (!%p3604_p13)  }
 0x5ca   : > { %1307 = dma.hbm_to_vmem [thread:$0]  %s1294_s16, 16, %s5101_s10, %s4580_s24 }
 0x5cb   : > { %s1329_s5 = sshll.u32 %s1888_s4, 4  ;;  %s1333_s28 = sadd.s32 28, %s4555_s0  ;;  %s5122_s5 = int_to_ptr.vmem [resolvable:$true] %s1329_s5 }
 0x5cc   : > { %s1334_s26 = sshra.s32 %s1333_s28, 7  ;;  %s1339_s21 = sand.u32 127, %s1333_s28 }
 0x5cd   : > { %s1336_s27 = sadd.s32 %s3798_s22, %s1334_s26  ;;  %s1895_s8 = scalar_lea.vmem %s4563_s29, 28 [#allocation2] }
 0x5ce   : > { %s2077_s25 = sshll.u32 %s1336_s27, 7  ;;  %s1317_s18 = sadd.s32 %s4558_s17, %s1316_s7 }
 0x5cf   : > { %s1340_s23 = sadd.s32 %s2077_s25, %s1339_s21  ;;  %s2075_s30 = sshll.u32 %s1317_s18, 4 }
 0x5d0   : > { %s1341_s2 = sld [smem:[#allocation5 + %s1340_s23]]  ;;  %s1319_s20 = scalar_lea.hbm %s5274_s1, %s2075_s30 }
 0x5d1   : > { %s1354_s19 = sshll.u32 %s1895_s8, 4  ;;  %s3608_s10 = scalar_lea.hbm %s1319_s20, 16  ;;  %s5141_s19 = int_to_ptr.vmem [resolvable:$true] %s1354_s19 }
 0x5d2   : > { %p3609_p0 = scmp.ne.s32.totalorder %s1319_s20, %s3608_s10  ;;  %p3611_p3 = scmp.lt.u32.totalorder %s1319_s20, %s5274_s1 }
 0x5d3   : > { %p3612_p2 = scmp.lt.u32.totalorder %s4585_s13, %s3608_s10  ;;  %p3614_p4 = scmp.lt.u32.totalorder %s3608_s10, %s1319_s20 }
 0x5d5   : > { %p3613_p1 = por %p3612_p2, %p3611_p3 }
 0x5d7   : > { %p3615_p7 = por %p3614_p4, %p3613_p1 }
 0x5d9   : > { %p3616_p5 = pnand %p3615_p7, %p3609_p0 }
 0x5db   : > { %3619 = shalt.err (!%p3616_p5)  }
 0x5dc   : > { %s3620_s7 = scalar_lea.vmem %s5122_s5, 16  ;;  %p3625_p8 = scmp.lt.s32.totalorder %s5122_s5, %s4593_s3 }
 0x5dd   : > { %p3621_p6 = scmp.ne.s32.totalorder %s5122_s5, %s3620_s7  ;;  %p3626_p9 = scmp.lt.s32.totalorder %s4596_s9, %s3620_s7 }
 0x5df   : > { %p3627_p10 = por %p3626_p9, %p3625_p8 }
 0x5e1   : > { %p3628_p12 = pnand %p3627_p10, %p3621_p6 }
 0x5e3   : > { %3631 = shalt.err (!%p3628_p12)  }
 0x5e4   : > { %1332 = dma.hbm_to_vmem [thread:$0]  %s1319_s20, 16, %s5122_s5, %s4580_s24 }
 0x5e5   : > { %s1358_s15 = sadd.s32 29, %s4555_s0  ;;  %s1902_s27 = scalar_lea.vmem %s4563_s29, 29 [#allocation2] }
 0x5e6   : > { %s1359_s14 = sshra.s32 %s1358_s15, 7  ;;  %s1364_s28 = sand.u32 127, %s1358_s15 }
 0x5e7   : > { %s1361_s26 = sadd.s32 %s3798_s22, %s1359_s14  ;;  %s1342_s21 = sadd.s32 %s4558_s17, %s1341_s2 }
 0x5e8   : > { %s2080_s25 = sshll.u32 %s1361_s26, 7  ;;  %s2078_s8 = sshll.u32 %s1342_s21, 4 }
 0x5e9   : > { %s1365_s18 = sadd.s32 %s2080_s25, %s1364_s28  ;;  %s1344_s12 = scalar_lea.hbm %s5274_s1, %s2078_s8 }
 0x5ea   : > { %s1366_s6 = sld [smem:[#allocation5 + %s1365_s18]]  ;;  %s3632_s10 = scalar_lea.hbm %s1344_s12, 16 }
 0x5eb   : > { %p3633_p13 = scmp.ne.s32.totalorder %s1344_s12, %s3632_s10  ;;  %p3635_p0 = scmp.lt.u32.totalorder %s1344_s12, %s5274_s1 }
 0x5ec   : > { %p3636_p3 = scmp.lt.u32.totalorder %s4585_s13, %s3632_s10  ;;  %p3638_p1 = scmp.lt.u32.totalorder %s3632_s10, %s1344_s12 }
 0x5ee   : > { %p3637_p2 = por %p3636_p3, %p3635_p0 }
 0x5f0   : > { %p3639_p4 = por %p3638_p1, %p3637_p2 }
 0x5f2   : > { %p3640_p7 = pnand %p3639_p4, %p3633_p13 }
 0x5f4   : > { %3643 = shalt.err (!%p3640_p7)  }
 0x5f5   : > { %s3644_s2 = scalar_lea.vmem %s5141_s19, 16  ;;  %p3649_p6 = scmp.lt.s32.totalorder %s5141_s19, %s4593_s3 }
 0x5f6   : > { %p3645_p5 = scmp.ne.s32.totalorder %s5141_s19, %s3644_s2  ;;  %p3650_p8 = scmp.lt.s32.totalorder %s4596_s9, %s3644_s2 }
 0x5f8   : > { %p3651_p9 = por %p3650_p8, %p3649_p6 }
 0x5fa   : > { %p3652_p10 = pnand %p3651_p9, %p3645_p5 }
 0x5fc   : > { %3655 = shalt.err (!%p3652_p10)  }
 0x5fd   : > { %1357 = dma.hbm_to_vmem [thread:$0]  %s1344_s12, 16, %s5141_s19, %s4580_s24 }
 0x5fe   : > { %s1379_s4 = sshll.u32 %s1902_s27, 4  ;;  %s1383_s16 = sadd.s32 30, %s4555_s0  ;;  %s5162_s4 = int_to_ptr.vmem [resolvable:$true] %s1379_s4 }
 0x5ff   : > { %s1384_s7 = sshra.s32 %s1383_s16, 7  ;;  %s1389_s14 = sand.u32 127, %s1383_s16 }
 0x600   : > { %s1386_s15 = sadd.s32 %s3798_s22, %s1384_s7  ;;  %s1909_s26 = scalar_lea.vmem %s4563_s29, 30 [#allocation2] }
 0x601   : > { %s2083_s28 = sshll.u32 %s1386_s15, 7  ;;  %s1367_s21 = sadd.s32 %s4558_s17, %s1366_s6 }
 0x602   : > { %s1390_s25 = sadd.s32 %s2083_s28, %s1389_s14  ;;  %s2081_s8 = sshll.u32 %s1367_s21, 4 }
 0x603   : > { %s1391_s18 = sld [smem:[#allocation5 + %s1390_s25]]  ;;  %s1369_s10 = scalar_lea.hbm %s5274_s1, %s2081_s8 }
 0x604   : > { %s1404_s5 = sshll.u32 %s1909_s26, 4  ;;  %s3656_s19 = scalar_lea.hbm %s1369_s10, 16  ;;  %s5181_s5 = int_to_ptr.vmem [resolvable:$true] %s1404_s5 }
 0x605   : > { %p3657_p12 = scmp.ne.s32.totalorder %s1369_s10, %s3656_s19  ;;  %p3659_p13 = scmp.lt.u32.totalorder %s1369_s10, %s5274_s1 }
 0x606   : > { %p3660_p0 = scmp.lt.u32.totalorder %s4585_s13, %s3656_s19  ;;  %p3662_p2 = scmp.lt.u32.totalorder %s3656_s19, %s1369_s10 }
 0x608   : > { %p3661_p3 = por %p3660_p0, %p3659_p13 }
 0x60a   : > { %p3663_p1 = por %p3662_p2, %p3661_p3 }
 0x60c   : > { %p3664_p4 = pnand %p3663_p1, %p3657_p12 }
 0x60e   : > { %3667 = shalt.err (!%p3664_p4)  }
 0x60f   : > { %s3668_s6 = scalar_lea.vmem %s5162_s4, 16  ;;  %p3673_p5 = scmp.lt.s32.totalorder %s5162_s4, %s4593_s3 }
 0x610   : > { %p3669_p7 = scmp.ne.s32.totalorder %s5162_s4, %s3668_s6  ;;  %p3674_p6 = scmp.lt.s32.totalorder %s4596_s9, %s3668_s6 }
 0x612   : > { %p3675_p8 = por %p3674_p6, %p3673_p5 }
 0x614   : > { %p3676_p9 = pnand %p3675_p8, %p3669_p7 }
 0x616   : > { %3679 = shalt.err (!%p3676_p9)  }
 0x617   : > { %1382 = dma.hbm_to_vmem [thread:$0]  %s1369_s10, 16, %s5162_s4, %s4580_s24 }
 0x618   : > { %s1408_s20 = sadd.s32 31, %s4555_s0  ;;  %s1916_s15 = scalar_lea.vmem %s4563_s29, 31 [#allocation2] }
 0x619   : > { %s1409_s2 = sshra.s32 %s1408_s20, 7  ;;  %s1414_s16 = sand.u32 127, %s1408_s20 }
 0x61a   : > { %s1411_s7 = sadd.s32 %s3798_s22, %s1409_s2  ;;  %s1392_s14 = sadd.s32 %s4558_s17, %s1391_s18 }
 0x61b   : > { %s2086_s28 = sshll.u32 %s1411_s7, 7  ;;  %s2084_s26 = sshll.u32 %s1392_s14, 4 }
 0x61c   : > { %s1415_s21 = sadd.s32 %s2086_s28, %s1414_s16  ;;  %s1394_s23 = scalar_lea.hbm %s5274_s1, %s2084_s26 }
 0x61d   : > { %s1416_s30 = sld [smem:[#allocation5 + %s1415_s21]]  ;;  %s3680_s19 = scalar_lea.hbm %s1394_s23, 16 }
 0x61e   : > { %p3681_p10 = scmp.ne.s32.totalorder %s1394_s23, %s3680_s19  ;;  %p3683_p12 = scmp.lt.u32.totalorder %s1394_s23, %s5274_s1 }
 0x61f   : > { %p3684_p13 = scmp.lt.u32.totalorder %s4585_s13, %s3680_s19  ;;  %p3686_p3 = scmp.lt.u32.totalorder %s3680_s19, %s1394_s23 }
 0x621   : > { %p3685_p0 = por %p3684_p13, %p3683_p12 }
 0x623   : > { %p3687_p2 = por %p3686_p3, %p3685_p0 }
 0x625   : > { %p3688_p1 = pnand %p3687_p2, %p3681_p10 }
 0x627   : > { %3691 = shalt.err (!%p3688_p1)  }
 0x628   : > { %s3692_s0 = scalar_lea.vmem %s5181_s5, 16  ;;  %p3697_p7 = scmp.lt.s32.totalorder %s5181_s5, %s4593_s3 }
 0x629   : > { %p3693_p4 = scmp.ne.s32.totalorder %s5181_s5, %s3692_s0  ;;  %p3698_p5 = scmp.lt.s32.totalorder %s4596_s9, %s3692_s0 }
 0x62b   : > { %p3699_p6 = por %p3698_p5, %p3697_p7 }
 0x62d   : > { %p3700_p8 = pnand %p3699_p6, %p3693_p4 }
 0x62f   : > { %3703 = shalt.err (!%p3700_p8)  }
 0x630   : > { %1407 = dma.hbm_to_vmem [thread:$0]  %s1394_s23, 16, %s5181_s5, %s4580_s24 }
 0x631   : > { %s1429_s29 = sshll.u32 %s1916_s15, 4  ;;  %s1417_s18 = sadd.s32 %s4558_s17, %s1416_s30  ;;  %s1430_s29 = int_to_ptr.vmem [resolvable:$true] %s1429_s29 }
 0x632   : > { %s2087_s27 = sshll.u32 %s1417_s18, 4 }
 0x633   : > { %s1419_s20 = scalar_lea.hbm %s5274_s1, %s2087_s27 }
 0x634   : > { %s3704_s2 = scalar_lea.hbm %s1419_s20, 16  ;;  %p3707_p10 = scmp.lt.u32.totalorder %s1419_s20, %s5274_s1 }
 0x635   : > { %p3705_p9 = scmp.ne.s32.totalorder %s1419_s20, %s3704_s2  ;;  %p3708_p12 = scmp.lt.u32.totalorder %s4585_s13, %s3704_s2 }
 0x636   : > { %p3710_p0 = scmp.lt.u32.totalorder %s3704_s2, %s1419_s20 }
 0x637   : > { %p3709_p13 = por %p3708_p12, %p3707_p10 }
 0x639   : > { %p3711_p3 = por %p3710_p0, %p3709_p13 }
 0x63b   : > { %p3712_p2 = pnand %p3711_p3, %p3705_p9 }
 0x63d   : > { %3715 = shalt.err (!%p3712_p2)  }
 0x63e   : > { %s3716_s5 = scalar_lea.vmem %s1430_s29, 16  ;;  %p3721_p4 = scmp.lt.s32.totalorder %s1430_s29, %s4593_s3 }
 0x63f   : > { %p3717_p1 = scmp.ne.s32.totalorder %s1430_s29, %s3716_s5  ;;  %p3722_p7 = scmp.lt.s32.totalorder %s4596_s9, %s3716_s5 }
 0x641   : > { %p3723_p5 = por %p3722_p7, %p3721_p4 }
 0x643   : > { %p3724_p6 = pnand %p3723_p5, %p3717_p1 }
 0x645   : > { %3727 = shalt.err (!%p3724_p6)  }
 0x646   : > { %1432 = dma.hbm_to_vmem [thread:$0]  %s1419_s20, 16, %s1430_s29, %s4580_s24 }
 0x647 PF: > { %s1433_s17 = scalar_lea.sflag [#allocation3], %s5325_s11 }
 0x648   : > { %3778 = dma.done.wait %s1433_s17, 512 }
 0x649   : > { %3779 = vsyncadd %s1433_s17, 4294966784  ;;  %s5303_s13 = sld [smem:[#allocation143_spill]]  ;;  %s5304_s15 = sld [smem:[#allocation150_spill]] }
 0x64a   : > { %s2089_s14 = sshll.u32 %s5325_s11, 5  ;;  %s5305_s9 = sld [smem:[#allocation142_spill]] }
 0x64b   : > { %s2092_s28 = sshll.u32 %s3798_s22, 4  ;;  %s1500_s8 = scalar_lea.vmem [#allocation2], %s2089_s14 }
 0x64c   : > { %v1501_v0 = vld [vmem:[%s1500_s8] sm:$0xff]  ;;  %v1502_v1 = vld [vmem:[%s1500_s8 + $0x8] sm:$0xff]  ;;  %v1503_v2 = vld [vmem:[%s1500_s8 + $0x10] sm:$0xff]  ;;  %s5307_s19 = sld [smem:[#allocation151_spill]]  ;;  %s3838_s29 = smov [#allocation6]  }
 0x64d   : > { %v1504_v3 = vld [vmem:[%s1500_s8 + $0x18] sm:$0xff]  ;;  %s3732_s18 = sshll.u32 %s3838_s29, 4  ;;  %s3733_s18 = int_to_ptr.vmem [resolvable:$false] %s3732_s18 }
 0x64e   : > { %s3734_s27 = scalar_lea.vmem %s3733_s18, 1024 }
 0x64f   : > { %s2091_s3 = sshll.u32 %s5303_s13, 2  ;;  %s1525_s21 = sshll.u32 %s5304_s15, 4  ;;  %1505 = vst [vmem:[%s5304_s15] sm:$0xff] %v1501_v0  ;;  %1506 = vst [vmem:[%s5304_s15 + $0x8] sm:$0xff] %v1502_v1  ;;  %s5217_s21 = int_to_ptr.vmem [resolvable:$true] %s1525_s21 }
 0x650   : > { %s1522_s26 = sadd.s32 %s2092_s28, %s2091_s3  ;;  %1507 = vst [vmem:[%s5304_s15 + $0x10] sm:$0xff] %v1503_v2  ;;  %1508 = vst [vmem:[%s5304_s15 + $0x18] sm:$0xff] %v1504_v3  ;;  %s5309_s22 = sand.u32 1, %s5305_s9  }
 0x651   : > { %s2093_s25 = sshll.u32 %s1522_s26, 7  ;;  %s5230_s10 = scalar_lea.sflag [#allocation7], %s5309_s22 }
 0x652   : > { %s5308_s4 = smov %s5307_s19  ;;  %s5222_s11 = scalar_lea.hbm %s5307_s19, %s2093_s25 }
 0x653   : > { %s3728_s0 = scalar_lea.vmem %s5217_s21, 512  ;;  %p3735_p12 = scmp.lt.s32.totalorder %s5217_s21, %s3733_s18 }
 0x654   : > { %p3729_p8 = scmp.ne.s32.totalorder %s5217_s21, %s3728_s0  ;;  %p3736_p13 = scmp.lt.s32.totalorder %s3734_s27, %s3728_s0 }
 0x656   : > { %p3730_p9 = pnand %p3729_p8, %p3924_p11  ;;  %p3737_p0 = por %p3736_p13, %p3735_p12 }
 0x658   : > { %p3731_p10 = pneg %p3730_p9 }
 0x65a   : > { %p3738_p3 = pnand %p3737_p0, %p3731_p10 }
 0x65c   : > { %3741 = shalt.err (!%p3738_p3)
}
 0x65d   : > { %s3742_s12 = scalar_lea.hbm %s5222_s11, 512  ;;  %s3746_s2 = scalar_lea.hbm %s5308_s4, 4096 }
 0x65e   : > { %p3743_p2 = scmp.ne.s32.totalorder %s5222_s11, %s3742_s12  ;;  %p3747_p7 = scmp.lt.u32.totalorder %s5222_s11, %s5308_s4 }
 0x65f   : > { %p3748_p5 = scmp.lt.u32.totalorder %s3746_s2, %s3742_s12  ;;  %p3750_p8 = scmp.lt.u32.totalorder %s3742_s12, %s5222_s11 }
 0x660   : > { %p3744_p1 = pnand %p3743_p2, %p3924_p11 }
 0x661   : > { %p3749_p6 = por %p3748_p5, %p3747_p7 }
 0x662   : > { %p3745_p4 = pneg %p3744_p1 }
 0x663   : > { %p3751_p9 = por %p3750_p8, %p3749_p6 }
 0x665   : > { %p3752_p10 = pnand %p3751_p9, %p3745_p4 }
 0x667   : > { %3755 = shalt.err (!%p3752_p10)
}
 0x668   : > { %s3839_s5 = smov 128   ;;  %s3840_s17 = smov 8  }
 0x669   : > { %2100 = dma.vmem_to_hbm [thread:$0]  (%p3924_p11), %s5217_s21, 512, %s5222_s11, %s5230_s10, %s3839_s5, %s3839_s5, %s3840_s17  }
 0x66a PF: > { %s5310_s13 = sld [smem:[#allocation144_spill]]  ;;  %s5311_s15 = sld [smem:[#allocation141_spill]] }
 0x66b   : > { %s5312_s14 = sld [smem:[#allocation147_spill]] }
 0x670   : > { %p2106_p12 = scmp.ge.s32.totalorder %s5310_s13, 1  ;;  %s1540_s3 = sand.u32 1, %s5311_s15  }
 0x671   : > { %p5313_p13 = scmp.ne.s32.totalorder %s5312_s14, 0  ;;  %s1541_s9 = scalar_lea.sflag [#allocation7], %s1540_s3 }
 0x673   : > { %p2103_p0 = pnand %p2106_p12, %p5313_p13 }
 0x675   : > { %3781 = dma.done.wait (!%p2103_p0), %s1541_s9, 512  }
 0x676   : > { %3783 = vsyncadd (!%p2103_p0), %s1541_s9, 4294966784  ;;  %s19_s23 = sadd.s32 1, %s5310_s13   ;;  %s5314_s19 = sld [smem:[#allocation142_spill]] }
 0x677   : > { %p16_p3 = scmp.ge.s32.totalorder %s19_s23, 9   ;;  %s5315_s20 = sld [smem:[#allocation148_spill]] }
 0x678   : > { %s5316_s21 = sld [smem:[#allocation145_spill]]  ;;  %s5317_s22 = sld [smem:[#allocation146_spill]] }
 0x679   :  { %18 = sbr.rel (!%p16_p3) target bundleno = 16 (0x10), region = 439 }
 0x680   :  { %1546 = vsyncpa [#allocation7], 1 }
 0x681   :  { %1548 = vsyncpa [#allocation7 + $0x1], 1 }
 0x682   :  { %1549 = vsyncmov [#allocation3] }
 0x685   :  { %s1550_s28 = vpop.sfrf %1549 }
 0x686   :  { %p2096_p11 = scmp.ne.s32.totalorder %s1550_s28, 0 }
 0x688   :  { %1554 = shalt.err (%p2096_p11)  }
 0x689   :  { %1556 = vsyncmov [#allocation3 + $0x1] }
 0x68c   :  { %s1557_s26 = vpop.sfrf %1556 }
 0x68d   :  { %p2097_p2 = scmp.ne.s32.totalorder %s1557_s26, 0 }
 0x68f   :  { %1561 = shalt.err (%p2097_p2)  }

</bundles_post_ra>
